<compile_context>
chip_gen: v5e
topology: v5e:2x2
jax: 0.10.0
libtpu: 0.0.40
codegen_flags: <defaults>
</compile_context>

<pallas_src>
from functools import partial

import numpy as np
import jax
import jax.numpy as jnp
from jax import lax
from jax.experimental import pallas as pl
from jax.experimental.pallas import tpu as pltpu

TWO_PI_APPROX = 2.0 * 3.1415        # the reference module uses 3.1415, not math.pi
HALF_PI = float(np.pi / 2.0)        # cos(t) == sin(t + pi/2)


def _round_up(v, m):
    return ((v + m - 1) // m) * m


# -----------------------------------------------------------------------------------
# Kernel: one batch tile of the full-width output per grid step.
#   w_theta_ref : (C+1, T) f32  frequency weights + phase row   (constant block)
#   r_id_ref    : (C+1, T) f32  0/1 identity pass-through       (constant block)
#   amp_ref     : (1,   T) f32  per-column amplitude            (constant block)
#   xa_ref      : (tb, C+1)     batch tile of x_aug = [x, 1]
#   o_ref       : (tb, T)       output tile
# -----------------------------------------------------------------------------------
def _encoding_kernel(w_theta_ref, r_id_ref, amp_ref, xa_ref, o_ref, *, dot_precision):
    xa = xa_ref[...].astype(jnp.float32)                       # f32 compute (bf16-safe)
    theta = jnp.dot(xa, w_theta_ref[...],
                    precision=dot_precision,
                    preferred_element_type=jnp.float32)        # (tb, T) on the MXU
    ident = jnp.dot(xa, r_id_ref[...],
                    precision=dot_precision,
                    preferred_element_type=jnp.float32)        # x on identity cols, 0 else
    out = amp_ref[...] * jnp.sin(theta) + ident                # sin poly + 1 mul + 1 add
    o_ref[...] = out.astype(o_ref.dtype)                       # single lane-dense store


def make_encoding_mats(avals, bvals, in_channels):
    """Build the (C+1, T) theta weights, the (C+1, T) identity pass-through and the
    (1, T) amplitude row for T = C*(2N+1) columns laid out exactly like the reference
    concat: [x | sin_f1 | cos_f1 | ... | sin_fN | cos_fN]."""
    avals = np.asarray(avals, np.float32)
    bvals = np.asarray(bvals, np.float32)
    C = int(in_channels)
    N = int(bvals.shape[0])
    T = C * (2 * N + 1)
    eye_c = np.eye(C, dtype=np.float32)

    w_theta = np.zeros((C + 1, T), np.float32)
    r_id = np.zeros((C + 1, T), np.float32)
    amp = np.zeros((1, T), np.float32)

    r_id[:C, :C] = eye_c                                 # identity columns: out = x
    for i in range(N):
        w = np.float32(TWO_PI_APPROX) * bvals[i]         # same f32 value as the reference
        s0 = C * (1 + 2 * i)                             # sin block of frequency i
        c0 = s0 + C                                      # cos block of frequency i
        w_theta[:C, s0:s0 + C] = w * eye_c
        w_theta[:C, c0:c0 + C] = w * eye_c
        w_theta[C, c0:c0 + C] = HALF_PI                  # cos(t) = sin(t + pi/2)
        amp[0, s0:c0 + C] = avals[i]
    return jnp.asarray(w_theta), jnp.asarray(r_id), jnp.asarray(amp)


def encoding_style2_pallas(x, avals, bvals, *, block_b=None, out_dtype=None):
    """Fourier-feature embed x (B, C) -> (B, C*(2*N_freqs+1)), matching EncodingStyle2."""
    if avals is None:
        # TODO(synk): encoding=None keeps avals=None; the reference forward itself cannot
        # run in that mode (zip over None), so there is nothing to translate.
        raise ValueError("encoding=None has avals=None; the forward has no valid path")
    B, C = x.shape
    if out_dtype is None:
        out_dtype = x.dtype     # tip: jnp.bfloat16 halves HBM writes (v5e write roofline)

    avals_np = np.asarray(avals, np.float32)   # module buffers -> concrete constants
    bvals_np = np.asarray(bvals, np.float32)
    n_freqs = int(bvals_np.shape[0])

    # encoding==1000 fast path: frequencies whose amplitude is exactly 0 contribute
    # identically-zero columns -> skip their sin work, append zeros afterwards.
    nz = np.nonzero(avals_np != 0.0)[0]
    n_active = max(int(nz[-1]) + 1 if nz.size else 0, 1)

    w_theta, r_id, amp = make_encoding_mats(avals_np[:n_active], bvals_np[:n_active], C)
    out_c = int(w_theta.shape[1])              # C * (2*n_active + 1)

    # Constant-1 column so frequency scaling AND the cos phase both ride the MXU.
    xa = jnp.concatenate([x, jnp.ones((B, 1), x.dtype)], axis=-1)       # (B, C+1)

    # Batch tile: big enough to amortize the ~0.35us/step overhead, small enough for
    # v7x's 64 MiB VMEM (out tile + f32 temporaries ~ 5 * block_b*out_c*4 B), >= 2 grid
    # steps when B allows it (v7x megacore), and always sublane(8)-aligned or == B.
    if block_b is None:
        block_b = 2048
    block_b = int(block_b)
    if B >= 16:
        block_b = min(block_b, _round_up((B + 1) // 2, 8))
    if block_b >= B:
        block_b = B
    else:
        block_b = _round_up(block_b, 8)
    grid = (pl.cdiv(B, block_b),)

    def _run(dot_precision):
        return pl.pallas_call(
            partial(_encoding_kernel, dot_precision=dot_precision),
            out_shape=jax.ShapeDtypeStruct((B, out_c), out_dtype),
            grid_spec=pltpu.PrefetchScalarGridSpec(
                num_scalar_prefetch=0,
                grid=grid,
                in_specs=[
                    # constant blocks: same block index every step -> not re-fetched
                    pl.BlockSpec((C + 1, out_c), lambda i: (0, 0)),    # W_theta
                    pl.BlockSpec((C + 1, out_c), lambda i: (0, 0)),    # R_id
                    pl.BlockSpec((1, out_c), lambda i: (0, 0)),        # amp
                    pl.BlockSpec((block_b, C + 1), lambda i: (i, 0)),  # x_aug tile
                ],
                out_specs=pl.BlockSpec((block_b, out_c), lambda i: (i, 0)),
            ),
            compiler_params=pltpu.CompilerParams(
                dimension_semantics=("parallel",),
                vmem_limit_bytes=48 * 1024 * 1024,
            ),
        )(w_theta, r_id, amp, xa)

    try:
        out = _run(lax.Precision.HIGHEST)      # keep theta f32-exact on the MXU
    except Exception:
        # Fallback for Pallas lowerings that do not accept an explicit dot precision;
        # f32 operands still contract at f32 precision there.
        out = _run(None)

    if n_active < n_freqs:
        # Remaining columns are exactly 0 in the reference (amplitude == 0).
        zeros = jnp.zeros((B, 2 * (n_freqs - n_active) * C), out_dtype)
        out = jnp.concatenate([out, zeros], axis=-1)
    return out


def make_params(n_freqs=16, encoding=1):
    """Deterministic reproduction of EncodingStyle2.__init__ buffers.

    Note: for encoding==1000 the module reports scale_factor=3, but its forward still
    iterates over all N_freqs frequencies (amplitudes [1,0,...,0]), so the true output
    width is C*(2*N_freqs+1); we reproduce the forward semantics."""
    bvals = np.arange(1, n_freqs + 1, dtype=np.float32)
    if encoding is None:
        avals = None
        scale_factor = 0
    elif encoding == 1000:
        avals = np.eye(bvals.shape[0], dtype=np.float32)[0]
        scale_factor = 2 + 1
    else:
        avals = (bvals ** (-np.float32(encoding))).astype(np.float32)
        scale_factor = 2 * bvals.shape[0] + 1
    avals_j = None if avals is None else jnp.asarray(avals)
    return avals_j, jnp.asarray(bvals), scale_factor


def encoding_style2_ref(x, avals, bvals):
    """Pure-JAX reference mirroring the PyTorch forward, for validation."""
    parts = [x]
    for i in range(int(bvals.shape[0])):
        a = avals[i]
        b = bvals[i]
        parts.append(a * jnp.sin(TWO_PI_APPROX * b * x))
        parts.append(a * jnp.cos(TWO_PI_APPROX * b * x))
    return jnp.concatenate(parts, axis=-1)


if __name__ == "__main__":
    N_FREQS = 16
    B, C = 64, 16          # x: (batch, in_channels), small smoke-test shape

    key = jax.random.PRNGKey(0)
    x = jax.random.normal(key, (B, C), dtype=jnp.float32)

    # --- encoding = 1: power-law amplitudes a_i = b_i ** -1 ------------------------
    avals, bvals, scale = make_params(N_FREQS, 1)
    out = jax.block_until_ready(encoding_style2_pallas(x, avals, bvals, block_b=16))
    assert out.shape == (B, C * scale), out.shape
    ref = jax.block_until_ready(encoding_style2_ref(x, avals, bvals))
    # Tolerance covers the cos-as-sin(theta+pi/2) phase rounding and the multi-pass f32
    # MXU contraction; both errors are attenuated by the a_i = 1/b_i amplitudes.
    np.testing.assert_allclose(np.asarray(out), np.asarray(ref), rtol=2e-5, atol=5e-5)

    # --- encoding = 1000: single nonzero amplitude -> zero-column fast path --------
    avals2, bvals2, _ = make_params(N_FREQS, 1000)
    out2 = jax.block_until_ready(encoding_style2_pallas(x, avals2, bvals2, block_b=16))
    assert out2.shape == (B, C * (2 * N_FREQS + 1)), out2.shape
    ref2 = jax.block_until_ready(encoding_style2_ref(x, avals2, bvals2))
    np.testing.assert_allclose(np.asarray(out2), np.asarray(ref2), rtol=2e-5, atol=5e-5)

    print("KERNEL_OK")
</pallas_src>

<mosaic_0001>
module attributes {stable_mosaic.version = 11 : i64} {
  func.func @_encoding_kernel(%arg0: i32, %arg1: memref<17x528xf32, #tpu.memory_space<vmem>>, %arg2: memref<17x528xf32, #tpu.memory_space<vmem>>, %arg3: memref<1x528xf32, #tpu.memory_space<vmem>>, %arg4: memref<16x17xf32, #tpu.memory_space<vmem>>, %arg5: memref<16x528xf32, #tpu.memory_space<vmem>>) attributes {dimension_semantics = [#tpu.dimension_semantics<parallel>], iteration_bounds = array<i64: 4>, scalar_prefetch = 0 : i64, scratch_operands = 0 : i64, tpu.core_type = #tpu.core_type<tc>, window_params = [{pipeline_mode = #tpu.pipeline_mode<synchronous>, transform_indices = @transform_0, window_bounds = array<i64: 17, 528>}, {pipeline_mode = #tpu.pipeline_mode<synchronous>, transform_indices = @transform_1, window_bounds = array<i64: 17, 528>}, {pipeline_mode = #tpu.pipeline_mode<synchronous>, transform_indices = @transform_2, window_bounds = array<i64: 1, 528>}, {transform_indices = @transform_3, window_bounds = array<i64: 16, 17>}, {transform_indices = @transform_4, window_bounds = array<i64: 16, 528>}]} {
    %c0 = arith.constant 0 : index
    %c0_0 = arith.constant 0 : index
    %0 = vector.load %arg4[%c0, %c0_0] : memref<16x17xf32, #tpu.memory_space<vmem>>, vector<16x17xf32>
    %c0_1 = arith.constant 0 : index
    %c0_2 = arith.constant 0 : index
    %1 = vector.load %arg1[%c0_1, %c0_2] : memref<17x528xf32, #tpu.memory_space<vmem>>, vector<17x528xf32>
    %cst = arith.constant dense<0.000000e+00> : vector<16x528xf32>
    %2 = tpu.matmul %0, %1, %cst {dimension_numbers = #tpu.dot_dimension_numbers<[1], [0], [0], [1], [0, 0, 1, 1], [], []>, precision = #tpu.contract_precision<fp32>} : vector<16x17xf32>, vector<17x528xf32>, vector<16x528xf32> -> vector<16x528xf32>
    %c0_3 = arith.constant 0 : index
    %c0_4 = arith.constant 0 : index
    %3 = vector.load %arg2[%c0_3, %c0_4] : memref<17x528xf32, #tpu.memory_space<vmem>>, vector<17x528xf32>
    %cst_5 = arith.constant dense<0.000000e+00> : vector<16x528xf32>
    %4 = tpu.matmul %0, %3, %cst_5 {dimension_numbers = #tpu.dot_dimension_numbers<[1], [0], [0], [1], [0, 0, 1, 1], [], []>, precision = #tpu.contract_precision<fp32>} : vector<16x17xf32>, vector<17x528xf32>, vector<16x528xf32> -> vector<16x528xf32>
    %c0_6 = arith.constant 0 : index
    %c0_7 = arith.constant 0 : index
    %5 = vector.load %arg3[%c0_6, %c0_7] : memref<1x528xf32, #tpu.memory_space<vmem>>, vector<1x528xf32>
    %6 = math.sin %2 : vector<16x528xf32>
    %7 = vector.broadcast %5 : vector<1x528xf32> to vector<16x528xf32>
    %8 = arith.mulf %7, %6 : vector<16x528xf32>
    %9 = arith.addf %8, %4 : vector<16x528xf32>
    %c0_8 = arith.constant 0 : index
    %c0_9 = arith.constant 0 : index
    %10 = vector.load %arg5[%c0_8, %c0_9] : memref<16x528xf32, #tpu.memory_space<vmem>>, vector<16x528xf32>
    tpu.vector_store %arg5[%c0_8, %c0_9], %9 {strides = array<i32>} : memref<16x528xf32, #tpu.memory_space<vmem>>, vector<16x528xf32>,
    return
  }
  func.func @transform_0(%arg0: i32) -> (i32, i32) {
    %c0_i32 = arith.constant 0 : i32
    %c0_i32_0 = arith.constant 0 : i32
    %c0_i32_1 = arith.constant 0 : i32
    return %c0_i32, %c0_i32_0 : i32, i32
  }
  func.func @transform_1(%arg0: i32) -> (i32, i32) {
    %c0_i32 = arith.constant 0 : i32
    %c0_i32_0 = arith.constant 0 : i32
    %c0_i32_1 = arith.constant 0 : i32
    return %c0_i32, %c0_i32_0 : i32, i32
  }
  func.func @transform_2(%arg0: i32) -> (i32, i32) {
    %c0_i32 = arith.constant 0 : i32
    %c0_i32_0 = arith.constant 0 : i32
    %c0_i32_1 = arith.constant 0 : i32
    return %c0_i32, %c0_i32_0 : i32, i32
  }
  func.func @transform_3(%arg0: i32) -> (i32, i32) {
    %c0_i32 = arith.constant 0 : i32
    %c0_i32_0 = arith.constant 0 : i32
    return %arg0, %c0_i32 : i32, i32
  }
  func.func @transform_4(%arg0: i32) -> (i32, i32) {
    %c0_i32 = arith.constant 0 : i32
    %c0_i32_0 = arith.constant 0 : i32
    return %arg0, %c0_i32 : i32, i32
  }
}

module attributes {stable_mosaic.version = 11 : i64} {
  func.func @_encoding_kernel(%arg0: i32, %arg1: memref<17x528xf32, #tpu.memory_space<vmem>>, %arg2: memref<17x528xf32, #tpu.memory_space<vmem>>, %arg3: memref<1x528xf32, #tpu.memory_space<vmem>>, %arg4: memref<16x17xf32, #tpu.memory_space<vmem>>, %arg5: memref<16x528xf32, #tpu.memory_space<vmem>>) attributes {dimension_semantics = [#tpu.dimension_semantics<parallel>], iteration_bounds = array<i64: 4>, scalar_prefetch = 0 : i64, scratch_operands = 0 : i64, tpu.core_type = #tpu.core_type<tc>, window_params = [{pipeline_mode = #tpu.pipeline_mode<synchronous>, transform_indices = @transform_0, window_bounds = array<i64: 17, 528>}, {pipeline_mode = #tpu.pipeline_mode<synchronous>, transform_indices = @transform_1, window_bounds = array<i64: 17, 528>}, {pipeline_mode = #tpu.pipeline_mode<synchronous>, transform_indices = @transform_2, window_bounds = array<i64: 1, 528>}, {transform_indices = @transform_3, window_bounds = array<i64: 16, 17>}, {transform_indices = @transform_4, window_bounds = array<i64: 16, 528>}]} {
    %c0 = arith.constant 0 : index
    %c0_0 = arith.constant 0 : index
    %0 = vector.load %arg4[%c0, %c0_0] : memref<16x17xf32, #tpu.memory_space<vmem>>, vector<16x17xf32>
    %c0_1 = arith.constant 0 : index
    %c0_2 = arith.constant 0 : index
    %1 = vector.load %arg1[%c0_1, %c0_2] : memref<17x528xf32, #tpu.memory_space<vmem>>, vector<17x528xf32>
    %cst = arith.constant dense<0.000000e+00> : vector<16x528xf32>
    %2 = tpu.matmul %0, %1, %cst {dimension_numbers = #tpu.dot_dimension_numbers<[1], [0], [0], [1], [0, 0, 1, 1], [], []>} : vector<16x17xf32>, vector<17x528xf32>, vector<16x528xf32> -> vector<16x528xf32>
    %c0_3 = arith.constant 0 : index
    %c0_4 = arith.constant 0 : index
    %3 = vector.load %arg2[%c0_3, %c0_4] : memref<17x528xf32, #tpu.memory_space<vmem>>, vector<17x528xf32>
    %cst_5 = arith.constant dense<0.000000e+00> : vector<16x528xf32>
    %4 = tpu.matmul %0, %3, %cst_5 {dimension_numbers = #tpu.dot_dimension_numbers<[1], [0], [0], [1], [0, 0, 1, 1], [], []>} : vector<16x17xf32>, vector<17x528xf32>, vector<16x528xf32> -> vector<16x528xf32>
    %c0_6 = arith.constant 0 : index
    %c0_7 = arith.constant 0 : index
    %5 = vector.load %arg3[%c0_6, %c0_7] : memref<1x528xf32, #tpu.memory_space<vmem>>, vector<1x528xf32>
    %6 = math.sin %2 : vector<16x528xf32>
    %7 = vector.broadcast %5 : vector<1x528xf32> to vector<16x528xf32>
    %8 = arith.mulf %7, %6 : vector<16x528xf32>
    %9 = arith.addf %8, %4 : vector<16x528xf32>
    %c0_8 = arith.constant 0 : index
    %c0_9 = arith.constant 0 : index
    %10 = vector.load %arg5[%c0_8, %c0_9] : memref<16x528xf32, #tpu.memory_space<vmem>>, vector<16x528xf32>
    tpu.vector_store %arg5[%c0_8, %c0_9], %9 {strides = array<i32>} : memref<16x528xf32, #tpu.memory_space<vmem>>, vector<16x528xf32>,
    return
  }
  func.func @transform_0(%arg0: i32) -> (i32, i32) {
    %c0_i32 = arith.constant 0 : i32
    %c0_i32_0 = arith.constant 0 : i32
    %c0_i32_1 = arith.constant 0 : i32
    return %c0_i32, %c0_i32_0 : i32, i32
  }
  func.func @transform_1(%arg0: i32) -> (i32, i32) {
    %c0_i32 = arith.constant 0 : i32
    %c0_i32_0 = arith.constant 0 : i32
    %c0_i32_1 = arith.constant 0 : i32
    return %c0_i32, %c0_i32_0 : i32, i32
  }
  func.func @transform_2(%arg0: i32) -> (i32, i32) {
    %c0_i32 = arith.constant 0 : i32
    %c0_i32_0 = arith.constant 0 : i32
    %c0_i32_1 = arith.constant 0 : i32
    return %c0_i32, %c0_i32_0 : i32, i32
  }
  func.func @transform_3(%arg0: i32) -> (i32, i32) {
    %c0_i32 = arith.constant 0 : i32
    %c0_i32_0 = arith.constant 0 : i32
    return %arg0, %c0_i32 : i32, i32
  }
  func.func @transform_4(%arg0: i32) -> (i32, i32) {
    %c0_i32 = arith.constant 0 : i32
    %c0_i32_0 = arith.constant 0 : i32
    return %arg0, %c0_i32 : i32, i32
  }
}

</mosaic_0001>

<bundles_post_ra>
// kernel: tpu_custom_call.1
= control target key start
LH: loop header
LB: loop body
LE: loop exit
PB: predicated region body
PF: predicated region fallthrough
CT: control target
= control target key end

     0   :  { %9 = vsyncpa [#allocation3], 0  ;;  %s6748_s0 = inlined_call_operand.hbm [shape: f32[17,528], index: 0, kind: input, shape index: {}]   ;;  %s6749_s1 = inlined_call_operand.hbm [shape: f32[17,528], index: 1, kind: input, shape index: {}]   ;;  %s6750_s2 = inlined_call_operand.vmem [shape: f32[1,528], index: 2, kind: input, shape index: {}]   ;;  %s6751_s3 = inlined_call_operand.vmem [shape: f32[64,17], index: 3, kind: input, shape index: {}]   ;;  %s6752_s4 = inlined_call_operand.hbm [shape: f32[64,528], index: 4, kind: output, shape index: {}]  }
   0x1   :  { %10 = vsyncpa [#allocation6], 0 }
   0x2   :  { %11 = vsyncpa [#allocation4], 0 }
   0x3   :  { %13 = vsyncpa [#allocation4 + $0x1], 0  ;;  %s4315_s15 = smov 0   ;;  %s4317_s16 = smov 0  }
   0x4   :  { %s4319_s17 = smov 0   ;;  %s4321_s18 = smov 0  }
   0x5 LB: > { %s4336_s19 = sadd.s32 4294967295, %s4275_s18   ;;  %s4027_s20 = sadd.s32 4294967294, %s4275_s18   ;;  %s4275_s18 = sphi %s4321_s18, %s7008_s18   ;;  %s4271_s17 = sphi %s4319_s17, %s7007_s17   ;;  %s4267_s16 = sphi %s4317_s16, %s7006_s16   ;;  %s4263_s15 = sphi %s4315_s15, %s7005_s15  }
   0x6   : > { %s4340_s21 = sadd.s32 1, %s4275_s18   ;;  %s115_s22 = sadd.s32 1, %s4271_s17 }
   0x7   : > { %s112_s23 = ssub.s32 %s4275_s18, %s4340_s21  ;;  %p125_p0 = scmp.ne.s32.totalorder %s4271_s17, %s4267_s16 }
   0x8   : > { %p113_p1 = scmp.eq.s32.totalorder %s112_s23, 0  ;;  %p126_p2 = scmp.eq.s32.totalorder %s4336_s19, 3 }
   0x9   : > { %p131_p3 = scmp.ne.s32.totalorder %s4267_s16, %s4263_s15  ;;  %p132_p4 = scmp.eq.s32.totalorder %s4027_s20, 3 }
   0xa   : > { %s4351_s24 = scalar_select %p113_p1, %s4271_s17, %s115_s22  }
   0xb   : > { %p4353_p5 = por %p126_p2, %p125_p0  ;;  %p4357_p6 = por %p132_p4, %p131_p3 }
   0xc   : > { %p4028_p7 = scmp.ge.s32.totalorder %s4275_s18, 1  ;;  %p139_p8 = scmp.lt.s32.totalorder %s4275_s18, 5 }
   0xd   : > { %p4095_p9 = scmp.eq.s32.totalorder %s4336_s19, 0  ;;  %s150_s30 = sshll.u32 %s6748_s0, 4  ;;  %s151_s30 = int_to_ptr.hbm [resolvable:$true] %s150_s30 }
   0xe   : > { %p4364_p10 = pnand %p4028_p7, %p139_p8  ;;  %s4277_s5 = smov [#allocation2]  }
   0xf   : > { %s152_s6 = sshll.u32 %s4277_s5, 4  ;;  %s164_s9 = sshll.u32 %s6749_s1, 4  ;;  %s153_s6 = int_to_ptr.vmem [resolvable:$true] %s152_s6  ;;  %s165_s9 = int_to_ptr.hbm [resolvable:$true] %s164_s9 }
  0x10   : > { %p4084_p11 = pneg %p4364_p10  ;;  %s4278_s10 = smov 640  }
  0x11   : > { %s4279_s11 = smov 40   ;;  %s4280_s12 = smov [#allocation5]  }
  0x12   : > { %p4085_p12 = pnand %p4095_p9, %p4084_p11  ;;  %s166_s13 = sshll.u32 %s4280_s12, 4  ;;  %s167_s13 = int_to_ptr.vmem [resolvable:$true] %s166_s13 }
  0x13   : > { %194 = sbr.rel (%p4364_p10) target bundleno = 626 (0x272), region = 36 }
  0x14   : > { %4087 = dma.hbm_to_vmem [thread:$0]  (!%p4085_p12), %s151_s30, 1920, %s153_s6, [#allocation3], %s4278_s10, %s4278_s10, %s4279_s11  }
  0x15   : > { %4090 = dma.hbm_to_vmem [thread:$0]  (!%p4085_p12), %s165_s9, 1920, %s167_s13, [#allocation6], %s4278_s10, %s4278_s10, %s4279_s11  }
  0x18   : > { %4250 = dma.done.wait (%p4095_p9), [#allocation3], 1920  }
  0x19   : > { %4252 = vsyncadd (%p4095_p9), [#allocation3], 4294965376 }
  0x1a   : > { %4254 = dma.done.wait (%p4095_p9), [#allocation6], 1920  }
  0x1b   : > { %4256 = vsyncadd (%p4095_p9), [#allocation6], 4294965376  ;;  %s4035_s14 = sshll.u32 %s4336_s19, 1  ;;  %vm257_vm0 = vcmask 1040384   ;;  %vm250_vm1 = vcmask 138240   ;;  %v240_v1 = vld [vmem:[#allocation2 + $0x28] sm:$0xff] }
  0x1c   : > { %p227_p13 = scmp.lt.s32.totalorder %s4035_s14, 7  ;;  %v245_v0 = vld [vmem:[#allocation2 + $0x50] sm:$0x1]  ;;  %v235_v2 = vld [vmem:[#allocation2] sm:$0xff]  ;;  %v4393_v4 = vand.u32 4294901760, %v240_v1  ;;  %v236_v13 = vld [vmem:[#allocation2 + $0x8] sm:$0xff] }
  0x1d   : > { %v259_v3 = vsel %vm257_vm0, %v245_v0, 0  ;;  %v4395_v5 = vand.u32 4294901760, %v235_v2  ;;  %v246_v7 = vld [vmem:[#allocation2 + $0x58] sm:$0x1]  ;;  %v241_v11 = vld [vmem:[#allocation2 + $0x30] sm:$0xff]  ;;  %v4413_v21 = vand.u32 4294901760, %v236_v13 }
  0x1e   : > { %s7010_s14 = smov (!%p227_p13, %s4035_s14), 7  ;;  %v4397_v8 = vand.u32 4294901760, %v259_v3  ;;  %v262_v10 = vsel %vm257_vm0, %v246_v7, 0  ;;  %v329_v14 = vsub.f32 %v240_v1, %v4393_v4  ;;  %v4410_v19 = vand.u32 4294901760, %v241_v11  ;;  %v247_v51 = vld [vmem:[#allocation2 + $0x60] sm:$0x1] }
  0x1f   : > { %s4036_s20 = sshll.u32 %s7010_s14, 3  ;;  %v335_v16 = vsub.f32 %v235_v2, %v4395_v5  ;;  %v4405_v17 = vand.u32 4294901760, %v262_v10  ;;  %v4426_v29 = vsub.f32 %v236_v13, %v4413_v21  ;;  %v265_v52 = vsel %vm257_vm0, %v247_v51, 0  ;;  %v242_v55 = vld [vmem:[#allocation2 + $0x38] sm:$0xff]  ;;  %v237_v59 = vld [vmem:[#allocation2 + $0x10] sm:$0xff]  ;;  %s223_s30 = sand.u32 1, %s4267_s16  }
  0x20   : > { %s230_s27 = scalar_lea.vmem %s6751_s3, %s4036_s20  ;;  %287 = vmatpush.msra.mxu0 %v4397_v8  ;;  %v323_v18 = vsub.f32 %v259_v3, %v4397_v8  ;;  %396 = vmatpush.msra.mxu3 %v4397_v8  ;;  %v330_v23 = vand.u32 4294901760, %v329_v14  ;;  %v4423_v28 = vsub.f32 %v241_v11, %v4410_v19  ;;  %v4456_v53 = vand.u32 4294901760, %v265_v52  ;;  %v248_v3 = vld [vmem:[#allocation2 + $0x68] sm:$0x1]  ;;  %v238_v13 = vld [vmem:[#allocation2 + $0x18] sm:$0xff]  ;;  %s6354_s5 = smul.u32 80, %s223_s30 }
  0x21   : > { %v233_v6 = vld [vmem:[%s230_s27] sm:$0xff]  ;;  %v234_v12 = vld [vmem:[%s230_s27 + $0x8] sm:$0xff]  ;;  %v526_v24 = vsub.f32 %v262_v10, %v4405_v17  ;;  %v336_v25 = vand.u32 4294901760, %v335_v16  ;;  %v539_v37 = vand.u32 4294901760, %v4426_v29  ;;  %v4467_v57 = vand.u32 4294901760, %v242_v55  ;;  %s4073_s7 = smul.u32 80, %s4336_s19 }
  0x22   : > { %v252_v9 = vsel %vm250_vm1, %v233_v6, 0  ;;  %v255_v20 = vsel %vm250_vm1, %v234_v12, 0  ;;  %364 = vmatpush.msra.mxu2 %v323_v18  ;;  %289 = vmatpush.msra.mxu0 %v4393_v4  ;;  %v324_v26 = vand.u32 4294901760, %v323_v18  ;;  %v331_v31 = vsub.f32 %v329_v14, %v330_v23  ;;  %s6390_s6 = scalar_lea.vmem [#allocation7], %s6354_s5  ;;  %s3927_s12 = scalar_lea.sflag [#allocation4], %s223_s30 }
  0x23   : > { %v4402_v15 = vand.u32 4294901760, %v252_v9  ;;  %v4420_v27 = vand.u32 4294901760, %v255_v20  ;;  %398 = vmatpush.msra.mxu3 %v4393_v4  ;;  %v527_v32 = vand.u32 4294901760, %v526_v24  ;;  %v337_v33 = vsub.f32 %v335_v16, %v336_v25  ;;  %s3939_s19 = scalar_lea.hbm %s6752_s4, %s4073_s7  ;;  %s3940_s10 = sshll.u32 %s6390_s6, 4  ;;  %s3941_s10 = int_to_ptr.vmem [resolvable:$true] %s3940_s10 }
  0x24   : > { %367 = vmatpush.msra.mxu2 %v329_v14  ;;  %291 = vmatpush.msra.mxu0 %v4395_v5  ;;  %v325_v34 = vsub.f32 %v323_v18, %v324_v26  ;;  %v533_v36 = vand.u32 4294901760, %v4423_v28  ;;  %v332_v39 = vand.u32 4294901760, %v331_v31  ;;  %v540_v44 = vsub.f32 %v4426_v29, %v539_v37  ;;  %s3942_s11 = sshll.u32 %s3939_s19, 4  ;;  %s4225_s23 = scalar_lea.hbm %s6752_s4, 320  ;;  %s3943_s11 = int_to_ptr.hbm [resolvable:$true] %s3942_s11 }
  0x25   : > { %v4416_v22 = vsub.f32 %v252_v9, %v4402_v15  ;;  %v4434_v35 = vsub.f32 %v255_v20, %v4420_v27  ;;  %400 = vmatpush.msra.mxu3 %v4395_v5  ;;  %v528_v40 = vsub.f32 %v526_v24, %v527_v32  ;;  %v338_v47 = vand.u32 4294901760, %v337_v33  ;;  %v243_v9 = vld [vmem:[#allocation2 + $0x40] sm:$0xff]  ;;  %v244_v33 = vld [vmem:[#allocation2 + $0x48] sm:$0xff]  ;;  %s4219_s13 = sshra.s32 %s3943_s11, 4  ;;  %s4220_s13 = int_to_ptr.hbm [resolvable:$true] %s4219_s13 }
  0x26   : > { %430 = vmatpush.msrb.mxu0 %v324_v26  ;;  %v326_v41 = vand.u32 4294901760, %v325_v34  ;;  %370 = vmatpush.msra.mxu2 %v335_v16  ;;  %v534_v43 = vsub.f32 %v4423_v28, %v533_v36  ;;  %v541_v50 = vand.u32 4294901760, %v540_v44  ;;  %v4465_v56 = vsub.f32 %v265_v52, %v4456_v53  ;;  %s4221_s14 = scalar_lea.hbm %s4220_s13, 80  ;;  %p4226_p3 = scmp.lt.s32.totalorder %s4220_s13, %s6752_s4 }
  0x27   : > { %v4430_v30 = vand.u32 4294901760, %v4416_v22  ;;  %v4443_v42 = vand.u32 4294901760, %v4434_v35  ;;  %373 = vmatmul.f32.vlgmr.msra.gmra.mxu2 %v4416_v22  ;;  %v529_v46 = vand.u32 4294901760, %v528_v40  ;;  %v4472_v58 = vsub.f32 %v242_v55, %v4467_v57  ;;  %v1293_v55 = vld [vmem:[#allocation5 + $0x28] sm:$0xff]  ;;  %p4222_p0 = scmp.ne.s32.totalorder %s4220_s13, %s4221_s14  ;;  %p4227_p4 = scmp.lt.s32.totalorder %s4225_s23, %s4221_s14 }
  0x28   : > { %434 = vmatpush.msrb.mxu0 %v330_v23  ;;  %327 = vmatpush.msra.mxu1 %v326_v41  ;;  %v535_v48 = vand.u32 4294901760, %v534_v43  ;;  %v730_v60 = vand.u32 4294901760, %v4465_v56  ;;  %v4478_v61 = vand.u32 4294901760, %v237_v59  ;;  %v268_v6 = vsel %vm257_vm0, %v248_v3, 0 }
  0x29   : > { %v295_v38 = vsub.f32 %v4416_v22, %v4430_v30  ;;  %404 = vmatmul.f32.vlgmr.msra.gmra.mxu3 %v4430_v30  ;;  %490 = vmatpush.msrb.mxu2 %v4405_v17  ;;  %v303_v49 = vsub.f32 %v4434_v35, %v4443_v42  ;;  %v736_v62 = vand.u32 4294901760, %v4472_v58  ;;  %v4507_v7 = vand.u32 4294901760, %v268_v6  ;;  %p4223_p1 = pnand %p4222_p0, %p4353_p5  ;;  %p4228_p7 = por %p4227_p4, %p4226_p3 }
  0x2a   : > { %530 = vmatpush.msrb.mxu3 %v529_v46  ;;  %333 = vmatpush.msra.mxu1 %v332_v39  ;;  %v4485_v63 = vsub.f32 %v237_v59, %v4478_v61  ;;  %v731_v0 = vsub.f32 %v4465_v56, %v730_v60  ;;  %v4514_v11 = vand.u32 4294901760, %v243_v9  ;;  %v1288_v59 = vld [vmem:[#allocation5] sm:$0xff] }
  0x2b   : > { %v4447_v45 = vand.u32 4294901760, %v295_v38  ;;  %492 = vmatpush.msrb.mxu2 %v4410_v19  ;;  %438 = vmatpush.msrb.mxu0 %v336_v25  ;;  %v4460_v54 = vand.u32 4294901760, %v303_v49  ;;  %v737_v2 = vsub.f32 %v4472_v58, %v736_v62  ;;  %v932_v10 = vsub.f32 %v268_v6, %v4507_v7  ;;  %v239_v38 = vld [vmem:[#allocation2 + $0x20] sm:$0xff]  ;;  %p4224_p2 = pneg %p4223_p1 }
  0x2c   : > { %536 = vmatpush.msrb.mxu3 %v535_v48  ;;  %339 = vmatpush.msra.mxu1 %v338_v47  ;;  %v742_v1 = vand.u32 4294901760, %v4485_v63  ;;  %v938_v16 = vsub.f32 %v243_v9, %v4514_v11  ;;  %v4560_v40 = vand.u32 4294901760, %v239_v38  ;;  %v1298_v48 = vld [vmem:[#allocation5 + $0x50] sm:$0x1] }
  0x2d   : > { %297 = vmatmul.f32.vlgmr.msra.gmra.mxu0 %v4447_v45  ;;  %494 = vmatpush.msrb.mxu2 %v4413_v21  ;;  %v933_v14 = vand.u32 4294901760, %v932_v10  ;;  %v1304_v51 = vsel %vm257_vm0, %v1298_v48, 0  ;;  %p4229_p8 = pnand %p4228_p7, %p4224_p2 }
  0x2e   : > { %341 = vmatmul.f32.vlgmr.msra.gmra.mxu1 %v4402_v15  ;;  %542 = vmatpush.msrb.mxu3 %v541_v50  ;;  %v4564_v43 = vsub.f32 %v239_v38, %v4560_v40  ;;  %v4581_v52 = vand.u32 4294901760, %v1304_v51 }
  0x2f   : > { %462 = vmatpush.msrb.mxu1 %v4397_v8  ;;  %378 = vmatmul.f32.gmra.mxu2 %v4434_v35  ;;  %v738_v8 = vand.u32 4294901760, %v737_v2  ;;  %v934_v18 = vsub.f32 %v932_v10, %v933_v14 }
  0x30   : > { %567 = vmatpush.msra.mxu0 %v526_v24  ;;  %633 = vmatpush.msra.mxu2 %v527_v32  ;;  %v1148_v46 = vand.u32 4294901760, %v4564_v43 }
  0x31   : > { %410 = vmatmul.f32.gmra.mxu3 %v4443_v42  ;;  %464 = vmatpush.msrb.mxu1 %v4393_v4  ;;  %v732_v4 = vand.u32 4294901760, %v731_v0 }
  0x32   : > { %665 = vmatpush.msra.mxu3 %v4405_v17  ;;  %637 = vmatpush.msra.mxu2 %v533_v36  ;;  %v4551_v36 = vand.u32 4294901760, %v244_v33  ;;  %v1149_v50 = vsub.f32 %v4564_v43, %v1148_v46 }
  0x33   : > { %466 = vmatpush.msrb.mxu1 %v4395_v5  ;;  %570 = vmatpush.msra.mxu0 %v4423_v28  ;;  %v743_v5 = vsub.f32 %v4485_v63, %v742_v1 }
  0x34   : > { %667 = vmatpush.msra.mxu3 %v4410_v19  ;;  %641 = vmatpush.msra.mxu2 %v539_v37  ;;  %v4556_v37 = vsub.f32 %v244_v33, %v4551_v36 }
  0x35   : > { %305 = vmatmul.f32.gmra.mxu0 %v4460_v54  ;;  %599 = vmatpush.msra.mxu1 %v4405_v17  ;;  %v744_v12 = vand.u32 4294901760, %v743_v5  ;;  %v899_v17 = vand.u32 4294901760, %v238_v13 }
  0x36   : > { %345 = vmatmul.f32.gmra.mxu1 %v4420_v27  ;;  %573 = vmatpush.msra.mxu0 %v4426_v29  ;;  %v249_v29 = vld [vmem:[#allocation2 + $0x70] sm:$0x1]  ;;  %v1142_v41 = vand.u32 4294901760, %v4556_v37 }
  0x37   : > { %601 = vmatpush.msra.mxu1 %v4410_v19  ;;  %500 = vmatmul.f32.vlgmr.msrb.gmra.mxu2 %v4447_v45  ;;  %v939_v19 = vand.u32 4294901760, %v938_v16  ;;  %v944_v20 = vsub.f32 %v238_v13, %v899_v17  ;;  %v271_v31 = vsel %vm257_vm0, %v249_v29, 0 }
  0x38   : > { %669 = vmatpush.msra.mxu3 %v4413_v21  ;;  %770 = vmatpush.msrb.mxu2 %v4465_v56  ;;  %v4543_v32 = vand.u32 4294901760, %v271_v31  ;;  %v1143_v47 = vsub.f32 %v4556_v37, %v1142_v41  ;;  %v1368_v56 = vsub.f32 %v1304_v51, %v4581_v52 }
  0x39   : > { %544 = vmatmul.f32.vlgmr.msrb.gmra.mxu3 %v4402_v15  ;;  %603 = vmatpush.msra.mxu1 %v4413_v21  ;;  %v935_v21 = vand.u32 4294901760, %v934_v18  ;;  %v940_v23 = vsub.f32 %v938_v16, %v939_v19  ;;  %v945_v24 = vand.u32 4294901760, %v944_v20 }
  0x3a   : > { %802 = vmatpush.msrb.mxu3 %v4456_v53  ;;  %773 = vmatpush.msrb.mxu2 %v4472_v58  ;;  %v4549_v34 = vsub.f32 %v271_v31, %v4543_v32  ;;  %v1150_v58 = vand.u32 4294901760, %v1149_v50 }
  0x3b   : > { %v941_v25 = vand.u32 4294901760, %v940_v23  ;;  %v946_v26 = vsub.f32 %v944_v20, %v945_v24 }
  0x3c   : > { %804 = vmatpush.msrb.mxu3 %v4467_v57  ;;  %776 = vmatpush.msrb.mxu2 %v4485_v63  ;;  %v1136_v39 = vand.u32 4294901760, %v4549_v34 }
  0x3d   : > { %440 = vmatmul.f32.vlgmr.msrb.gmra.mxu0 %v4402_v15  ;;  %v947_v28 = vand.u32 4294901760, %v946_v26 }
  0x3e   : > { %693 = vmatpush.msrb.mxu0 %v4456_v53  ;;  %468 = vmatmul.f32.vlgmr.msrb.gmra.mxu1 %v4402_v15  ;;  %v1137_v44 = vsub.f32 %v4549_v34, %v1136_v39 }
  0x3f   : > { %806 = vmatpush.msrb.mxu3 %v4478_v61  ;;  %733 = vmatpush.msrb.mxu1 %v732_v4 }
  0x40   : > { %695 = vmatpush.msrb.mxu0 %v4467_v57  ;;  %508 = vmatmul.f32.gmra.mxu2 %v4460_v54  ;;  %v1138_v49 = vand.u32 4294901760, %v1137_v44 }
  0x41   : > { %548 = vmatmul.f32.gmra.mxu3 %v4420_v27  ;;  %739 = vmatpush.msrb.mxu1 %v738_v8  ;;  %v1299_v8 = vld [vmem:[#allocation5 + $0x58] sm:$0x1] }
  0x42   : > { %697 = vmatpush.msrb.mxu0 %v4478_v61  ;;  %v1307_v9 = vsel %vm257_vm0, %v1299_v8, 0 }
  0x43   : > { %745 = vmatpush.msrb.mxu1 %v744_v12  ;;  %v1294_v12 = vld [vmem:[#allocation5 + $0x30] sm:$0xff] }
  0x44   : > { %v4624_v13 = vand.u32 4294901760, %v1294_v12 }
  0x45   : > { %444 = vmatmul.f32.gmra.mxu0 %v4420_v27 }
  0x46   : > { %472 = vmatmul.f32.gmra.mxu1 %v4420_v27 }
  0x48   : > { %643 = vmatmul.f32.vlgmr.msra.gmra.mxu2 %v4402_v15 }
  0x49   : > { %671 = vmatmul.f32.vlgmr.msra.gmra.mxu3 %v4402_v15  ;;  %896 = vmatpush.msra.mxu2 %v4507_v7 }
  0x4a   : > { %936 = vmatpush.msra.mxu3 %v935_v21 }
  0x4b   : > { %898 = vmatpush.msra.mxu2 %v4514_v11 }
  0x4c   : > { %942 = vmatpush.msra.mxu3 %v941_v25  ;;  %v1300_v25 = vld [vmem:[#allocation5 + $0x60] sm:$0x1] }
  0x4d   : > { %576 = vmatmul.f32.vlgmr.msra.gmra.mxu0 %v4416_v22  ;;  %900 = vmatpush.msra.mxu2 %v899_v17  ;;  %v1310_v29 = vsel %vm257_vm0, %v1300_v25, 0 }
  0x4e   : > { %836 = vmatpush.msra.mxu0 %v730_v60  ;;  %948 = vmatpush.msra.mxu3 %v947_v28  ;;  %v1369_v60 = vand.u32 4294901760, %v1368_v56  ;;  %v4643_v31 = vand.u32 4294901760, %v1310_v29 }
  0x4f   : > { %607 = vmatmul.f32.vlgmr.msra.gmra.mxu1 %v4430_v30 }
  0x50   : > { %840 = vmatpush.msra.mxu0 %v736_v62  ;;  %868 = vmatpush.msra.mxu1 %v4456_v53  ;;  %v1144_v53 = vand.u32 4294901760, %v1143_v47  ;;  %v1335_v62 = vand.u32 4294901760, %v1288_v59  ;;  %v1370_v63 = vsub.f32 %v1368_v56, %v1369_v60  ;;  %v4648_v33 = vsub.f32 %v1310_v29, %v4643_v31 }
  0x51   : > { %675 = vmatmul.f32.gmra.mxu3 %v4420_v27  ;;  %647 = vmatmul.f32.gmra.mxu2 %v4420_v27 }
  0x52   : > { %844 = vmatpush.msra.mxu0 %v742_v1  ;;  %870 = vmatpush.msra.mxu1 %v4467_v57  ;;  %v4587_v57 = vand.u32 4294901760, %v1293_v55  ;;  %v1380_v1 = vsub.f32 %v1288_v59, %v1335_v62  ;;  %v1371_v2 = vand.u32 4294901760, %v1370_v63  ;;  %v1775_v38 = vand.u32 4294901760, %v4648_v33 }
  0x54   : > { %872 = vmatpush.msra.mxu1 %v4478_v61  ;;  %v1374_v61 = vsub.f32 %v1293_v55, %v4587_v57  ;;  %v1381_v4 = vand.u32 4294901760, %v1380_v1 }
  0x55   : > { %581 = vmatmul.f32.gmra.mxu0 %v4434_v35 }
  0x56   : > { %v1375_v0 = vand.u32 4294901760, %v1374_v61  ;;  %v1382_v6 = vsub.f32 %v1380_v1, %v1381_v4 }
  0x57   : > { %613 = vmatmul.f32.gmra.mxu1 %v4443_v42 }
  0x58   : > { %v1376_v3 = vsub.f32 %v1374_v61, %v1375_v0 }
  0x59   : > { %810 = vmatmul.f32.vlgmr.msrb.gmra.mxu3 %v4430_v30  ;;  %779 = vmatmul.f32.vlgmr.msrb.gmra.mxu2 %v4416_v22 }
  0x5a   : > { %1071 = vmatpush.msrb.mxu3 %v4507_v7  ;;  %1039 = vmatpush.msrb.mxu2 %v933_v14  ;;  %v1377_v5 = vand.u32 4294901760, %v1376_v3 }
  0x5c   : > { %1073 = vmatpush.msrb.mxu3 %v4514_v11  ;;  %1043 = vmatpush.msrb.mxu2 %v939_v19 }
  0x5d   : > { %703 = vmatmul.f32.vlgmr.msrb.gmra.mxu0 %v4447_v45 }
  0x5e   : > { %973 = vmatpush.msrb.mxu0 %v932_v10  ;;  %1075 = vmatpush.msrb.mxu3 %v899_v17  ;;  %v4614_v10 = vand.u32 4294901760, %v1307_v9 }
  0x5f   : > { %1047 = vmatpush.msrb.mxu2 %v945_v24  ;;  %747 = vmatmul.f32.vlgmr.msrb.gmra.mxu1 %v4402_v15 }
  0x60   : > { %976 = vmatpush.msrb.mxu0 %v938_v16  ;;  %1005 = vmatpush.msrb.mxu1 %v4507_v7  ;;  %v1383_v7 = vand.u32 4294901760, %v1382_v6  ;;  %v1577_v16 = vsub.f32 %v1294_v12, %v4624_v13 }
  0x61   : > { %816 = vmatmul.f32.gmra.mxu3 %v4443_v42  ;;  %784 = vmatmul.f32.gmra.mxu2 %v4434_v35 }
  0x62   : > { %979 = vmatpush.msrb.mxu0 %v944_v20  ;;  %1007 = vmatpush.msrb.mxu1 %v4514_v11  ;;  %v4620_v11 = vsub.f32 %v1307_v9, %v4614_v10  ;;  %v1578_v19 = vand.u32 4294901760, %v1577_v16 }
  0x64   : > { %1009 = vmatpush.msrb.mxu1 %v899_v17  ;;  %v1572_v14 = vand.u32 4294901760, %v4620_v11  ;;  %v1289_v17 = vld [vmem:[#allocation5 + $0x8] sm:$0xff]  ;;  %v1579_v24 = vsub.f32 %v1577_v16, %v1578_v19 }
  0x65   : > { %711 = vmatmul.f32.gmra.mxu0 %v4460_v54  ;;  %v4629_v18 = vand.u32 4294901760, %v1289_v17 }
  0x66   : > { %v1573_v21 = vsub.f32 %v4620_v11, %v1572_v14 }
  0x67   : > { %751 = vmatmul.f32.gmra.mxu1 %v4420_v27  ;;  %v1583_v20 = vsub.f32 %v1289_v17, %v4629_v18 }
  0x68   : > { %v1574_v26 = vand.u32 4294901760, %v1573_v21 }
  0x69   : > { %950 = vmatmul.f32.vlgmr.msra.gmra.mxu3 %v4402_v15  ;;  %906 = vmatmul.f32.vlgmr.msra.gmra.mxu2 %v4447_v45  ;;  %v1584_v23 = vand.u32 4294901760, %v1583_v20 }
  0x6a   : > { %1208 = vmatpush.msra.mxu3 %v4543_v32  ;;  %1176 = vmatpush.msra.mxu2 %v4549_v34 }
  0x6b   : > { %v1585_v28 = vsub.f32 %v1583_v20, %v1584_v23 }
  0x6c   : > { %1210 = vmatpush.msra.mxu3 %v4551_v36  ;;  %1179 = vmatpush.msra.mxu2 %v4556_v37 }
  0x6d   : > { %846 = vmatmul.f32.vlgmr.msra.gmra.mxu0 %v4402_v15  ;;  %v1586_v34 = vand.u32 4294901760, %v1585_v28 }
  0x6e   : > { %1099 = vmatpush.msra.mxu0 %v4543_v32  ;;  %1212 = vmatpush.msra.mxu3 %v4560_v40 }
  0x6f   : > { %1182 = vmatpush.msra.mxu2 %v4564_v43  ;;  %874 = vmatmul.f32.vlgmr.msra.gmra.mxu1 %v4402_v15 }
  0x70   : > { %1101 = vmatpush.msra.mxu0 %v4551_v36  ;;  %1139 = vmatpush.msra.mxu1 %v1138_v49  ;;  %v1290_v49 = vld [vmem:[#allocation5 + $0x10] sm:$0xff] }
  0x71   : > { %954 = vmatmul.f32.gmra.mxu3 %v4420_v27  ;;  %914 = vmatmul.f32.gmra.mxu2 %v4460_v54  ;;  %v1741_v50 = vand.u32 4294901760, %v1290_v49 }
  0x72   : > { %1103 = vmatpush.msra.mxu0 %v4560_v40  ;;  %1145 = vmatpush.msra.mxu1 %v1144_v53 }
  0x73   : > { %v1786_v53 = vsub.f32 %v1290_v49, %v1741_v50 }
  0x74   : > { %1151 = vmatpush.msra.mxu1 %v1150_v58 }
  0x75   : > { %850 = vmatmul.f32.gmra.mxu0 %v4420_v27 }
  0x77   : > { %878 = vmatmul.f32.gmra.mxu1 %v4420_v27 }
  0x79   : > { %1077 = vmatmul.f32.vlgmr.msrb.gmra.mxu3 %v4402_v15  ;;  %1049 = vmatmul.f32.vlgmr.msrb.gmra.mxu2 %v4402_v15 }
  0x7a   : > { %1372 = vmatpush.msrb.mxu3 %v1371_v2  ;;  %1332 = vmatpush.msrb.mxu2 %v4581_v52 }
  0x7c   : > { %1378 = vmatpush.msrb.mxu3 %v1377_v5  ;;  %1334 = vmatpush.msrb.mxu2 %v4587_v57 }
  0x7d   : > { %982 = vmatmul.f32.vlgmr.msrb.gmra.mxu0 %v4416_v22 }
  0x7e   : > { %1242 = vmatpush.msrb.mxu0 %v1136_v39  ;;  %1384 = vmatpush.msrb.mxu3 %v1383_v7 }
  0x7f   : > { %1336 = vmatpush.msrb.mxu2 %v1335_v62  ;;  %1013 = vmatmul.f32.vlgmr.msrb.gmra.mxu1 %v4430_v30 }
  0x80   : > { %1246 = vmatpush.msrb.mxu0 %v1142_v41  ;;  %1274 = vmatpush.msrb.mxu1 %v4543_v32  ;;  %v1580_v32 = vand.u32 4294901760, %v1579_v24 }
  0x81   : > { %1081 = vmatmul.f32.gmra.mxu3 %v4420_v27  ;;  %1053 = vmatmul.f32.gmra.mxu2 %v4420_v27 }
  0x82   : > { %1250 = vmatpush.msrb.mxu0 %v1148_v46  ;;  %1276 = vmatpush.msrb.mxu1 %v4551_v36  ;;  %v1295_v36 = vld [vmem:[#allocation5 + $0x38] sm:$0xff] }
  0x83   : > { %v4653_v37 = vand.u32 4294901760, %v1295_v36 }
  0x84   : > { %1278 = vmatpush.msrb.mxu1 %v4560_v40  ;;  %v1776_v40 = vsub.f32 %v4648_v33, %v1775_v38 }
  0x85   : > { %987 = vmatmul.f32.gmra.mxu0 %v4434_v35  ;;  %v1780_v39 = vsub.f32 %v1295_v36, %v4653_v37 }
  0x86   : > { %v1777_v43 = vand.u32 4294901760, %v1776_v40 }
  0x87   : > { %1019 = vmatmul.f32.gmra.mxu1 %v4443_v42  ;;  %v1781_v41 = vand.u32 4294901760, %v1780_v39 }
  0x89   : > { %1216 = vmatmul.f32.vlgmr.msra.gmra.mxu3 %v4430_v30  ;;  %1185 = vmatmul.f32.vlgmr.msra.gmra.mxu2 %v4416_v22  ;;  %v1782_v44 = vsub.f32 %v1780_v39, %v1781_v41 }
  0x8a   : > { %1507 = vmatpush.msra.mxu3 %v4581_v52  ;;  %1475 = vmatpush.msra.mxu2 %v1369_v60 }
  0x8b   : > { %v1783_v47 = vand.u32 4294901760, %v1782_v44  ;;  %v6759_v44 = vmov 2102212464  }
  0x8c   : > { %1509 = vmatpush.msra.mxu3 %v4587_v57  ;;  %1479 = vmatpush.msra.mxu2 %v1375_v0 }
  0x8d   : > { %1109 = vmatmul.f32.vlgmr.msra.gmra.mxu0 %v4447_v45 }
  0x8e   : > { %1409 = vmatpush.msra.mxu0 %v1368_v56  ;;  %1511 = vmatpush.msra.mxu3 %v1335_v62  ;;  %v1787_v56 = vand.u32 4294901760, %v1786_v53 }
  0x8f   : > { %1483 = vmatpush.msra.mxu2 %v1381_v4  ;;  %1153 = vmatmul.f32.vlgmr.msra.gmra.mxu1 %v4402_v15 }
  0x90   : > { %1412 = vmatpush.msra.mxu0 %v1374_v61  ;;  %1441 = vmatpush.msra.mxu1 %v4581_v52  ;;  %v1788_v58 = vsub.f32 %v1786_v53, %v1787_v56 }
  0x91   : > { %1222 = vmatmul.f32.gmra.mxu3 %v4443_v42  ;;  %1190 = vmatmul.f32.gmra.mxu2 %v4434_v35 }
  0x92   : > { %1415 = vmatpush.msra.mxu0 %v1380_v1  ;;  %1443 = vmatpush.msra.mxu1 %v4587_v57  ;;  %v1789_v61 = vand.u32 4294901760, %v1788_v58 }
  0x94   : > { %1445 = vmatpush.msra.mxu1 %v1335_v62 }
  0x95   : > { %1117 = vmatmul.f32.gmra.mxu0 %v4460_v54 }
  0x97   : > { %1157 = vmatmul.f32.gmra.mxu1 %v4420_v27 }
  0x99   : > { %1386 = vmatmul.f32.vlgmr.msrb.gmra.mxu3 %v4402_v15  ;;  %1342 = vmatmul.f32.vlgmr.msrb.gmra.mxu2 %v4447_v45 }
  0x9a   : > { %1644 = vmatpush.msrb.mxu3 %v4614_v10  ;;  %1612 = vmatpush.msrb.mxu2 %v4620_v11 }
  0x9c   : > { %1646 = vmatpush.msrb.mxu3 %v4624_v13  ;;  %1615 = vmatpush.msrb.mxu2 %v1577_v16 }
  0x9d   : > { %1252 = vmatmul.f32.vlgmr.msrb.gmra.mxu0 %v4402_v15 }
  0x9e   : > { %1535 = vmatpush.msrb.mxu0 %v4614_v10  ;;  %1648 = vmatpush.msrb.mxu3 %v4629_v18 }
  0x9f   : > { %1618 = vmatpush.msrb.mxu2 %v1583_v20  ;;  %1280 = vmatmul.f32.vlgmr.msrb.gmra.mxu1 %v4402_v15 }
  0xa0   : > { %1537 = vmatpush.msrb.mxu0 %v4624_v13  ;;  %1575 = vmatpush.msrb.mxu1 %v1574_v26 }
  0xa1   : > { %1390 = vmatmul.f32.gmra.mxu3 %v4420_v27  ;;  %1350 = vmatmul.f32.gmra.mxu2 %v4460_v54 }
  0xa2   : > { %1539 = vmatpush.msrb.mxu0 %v4629_v18  ;;  %1581 = vmatpush.msrb.mxu1 %v1580_v32 }
  0xa4   : > { %1587 = vmatpush.msrb.mxu1 %v1586_v34  ;;  %v6757_v34 = vmov 1326507024  }
  0xa5   : > { %1256 = vmatmul.f32.gmra.mxu0 %v4420_v27 }
  0xa7   : > { %1284 = vmatmul.f32.gmra.mxu1 %v4420_v27 }
  0xa9   : > { %1513 = vmatmul.f32.vlgmr.msra.gmra.mxu3 %v4402_v15  ;;  %1485 = vmatmul.f32.vlgmr.msra.gmra.mxu2 %v4402_v15 }
  0xaa   : > { %v298_v46 = vpop.f32.mrf.mxu0  ;;  %1778 = vmatpush.msra.mxu3 %v1777_v43  ;;  %1738 = vmatpush.msra.mxu2 %v4643_v31  ;;  %v374_v51 = vpop.f32.mrf.mxu2 }
  0xab   : > { %v342_v48 = vpop.f32.mrf.mxu1 }
  0xac   : > { %1784 = vmatpush.msra.mxu3 %v1783_v47  ;;  %1740 = vmatpush.msra.mxu2 %v4653_v37  ;;  %v343_v55 = vadd.f32 %v342_v48, %v298_v46  ;;  %v405_v60 = vpop.f32.mrf.mxu3  ;;  %v6755_v47 = vmov 920167782  }
  0xad   : > { %1418 = vmatmul.f32.vlgmr.msra.gmra.mxu0 %v4416_v22 }
  0xae   : > { %1678 = vmatpush.msra.mxu0 %v1572_v14  ;;  %1742 = vmatpush.msra.mxu2 %v1741_v50  ;;  %v375_v59 = vadd.f32 %v374_v51, %v343_v55 }
  0xaf   : > { %1449 = vmatmul.f32.vlgmr.msra.gmra.mxu1 %v4430_v30  ;;  %1790 = vmatpush.msra.mxu3 %v1789_v61 }
  0xb0   : > { %1682 = vmatpush.msra.mxu0 %v1578_v19  ;;  %1710 = vmatpush.msra.mxu1 %v4614_v10  ;;  %v406_v63 = vadd.f32 %v405_v60, %v375_v59 }
  0xb1   : > { %1517 = vmatmul.f32.gmra.mxu3 %v4420_v27  ;;  %1489 = vmatmul.f32.gmra.mxu2 %v4420_v27 }
  0xb2   : > { %v306_v52 = vpop.f32.mrf.mxu0  ;;  %1686 = vmatpush.msra.mxu0 %v1584_v23  ;;  %1712 = vmatpush.msra.mxu1 %v4624_v13  ;;  %v379_v1 = vpop.f32.mrf.mxu2 }
  0xb3   : > { %v346_v57 = vpop.f32.mrf.mxu1 }
  0xb4   : > { %1714 = vmatpush.msra.mxu1 %v4629_v18  ;;  %v347_v0 = vadd.f32 %v346_v57, %v306_v52  ;;  %v411_v6 = vpop.f32.mrf.mxu3 }
  0xb5   : > { %1423 = vmatmul.f32.gmra.mxu0 %v4434_v35 }
  0xb6   : > { %v380_v4 = vadd.f32 %v379_v1, %v347_v0 }
  0xb7   : > { %1455 = vmatmul.f32.gmra.mxu1 %v4443_v42 }
  0xb8   : > { %v412_v9 = vadd.f32 %v411_v6, %v380_v4 }
  0xb9   : > { %1652 = vmatmul.f32.vlgmr.msrb.gmra.mxu3 %v4430_v30  ;;  %1621 = vmatmul.f32.vlgmr.msrb.gmra.mxu2 %v4416_v22 }
  0xba   : > { %v441_v62 = vpop.f32.mrf.mxu0  ;;  %1881 = vmatpush.msrb.mxu2 %v1775_v38  ;;  %1913 = vmatpush.msrb.mxu3 %v4643_v31  ;;  %v501_v19 = vpop.f32.mrf.mxu2 }
  0xbb   : > { %v442_v2 = vadd.f32 %v441_v62, %v406_v63  ;;  %v469_v3 = vpop.f32.mrf.mxu1 }
  0xbc   : > { %1885 = vmatpush.msrb.mxu2 %v1781_v41  ;;  %1915 = vmatpush.msrb.mxu3 %v4653_v37  ;;  %v545_v23 = vpop.f32.mrf.mxu3  ;;  %v6761_v41 = vmov 2131351028  }
  0xbd   : > { %1545 = vmatmul.f32.vlgmr.msrb.gmra.mxu0 %v4447_v45  ;;  %v4678_v5 = vadd.f32 %v469_v3, %v442_v2 }
  0xbe   : > { %1815 = vmatpush.msrb.mxu0 %v4648_v33  ;;  %1889 = vmatpush.msrb.mxu2 %v1787_v56  ;;  %v546_v33 = vadd.f32 %v545_v23, %v501_v19 }
  0xbf   : > { %6839 = vst [vmem:[#allocation11_spill] sm:$0xff] %v4678_v5  ;;  %1589 = vmatmul.f32.vlgmr.msrb.gmra.mxu1 %v4402_v15  ;;  %1917 = vmatpush.msrb.mxu3 %v1741_v50  ;;  %v2337_v7 = vand.u32 2139095040, %v4678_v5  ;;  %v6754_v32 = vand.u32 2147483647, %v4678_v5 }
  0xc0   : > { %1818 = vmatpush.msrb.mxu0 %v1780_v39  ;;  %1847 = vmatpush.msrb.mxu1 %v4643_v31 }
  0xc1   : > { %1658 = vmatmul.f32.gmra.mxu3 %v4443_v42  ;;  %1626 = vmatmul.f32.gmra.mxu2 %v4434_v35  ;;  %v2338_v11 = vshrl.u32 %v2337_v7, 23  ;;  %v2341_v49 = vand.u32 8388607, %v6754_v32 }
  0xc2   : > { %v445_v8 = vpop.f32.mrf.mxu0  ;;  %1821 = vmatpush.msrb.mxu0 %v1786_v53  ;;  %1849 = vmatpush.msrb.mxu1 %v4653_v37  ;;  %v6763_v53 = vmov 2475754826  }
  0xc3   : > { %v446_v10 = vadd.f32 %v445_v8, %v412_v9  ;;  %v473_v12 = vpop.f32.mrf.mxu1  ;;  %v4037_v14 = vadd.s32 4294967169, %v2338_v11  ;;  %v4702_v26 = vpop.f32.mrf.mxu2  ;;  %v2342_v1 = vor.u32 8388608, %v2341_v49  ;;  %v1301_v8 = vld [vmem:[#allocation5 + $0x68] sm:$0x1] }
  0xc4   : > { %1851 = vmatpush.msrb.mxu1 %v1741_v50  ;;  %v4715_v38 = vpop.f32.mrf.mxu3 }
  0xc5   : > { %1553 = vmatmul.f32.gmra.mxu0 %v4460_v54  ;;  %v4688_v13 = vadd.f32 %v473_v12, %v446_v10  ;;  %v2344_v17 = vadd.s32 1, %v4037_v14 }
  0xc7   : > { %6840 = vst [vmem:[#allocation12_spill] sm:$0xff] %v4688_v13  ;;  %1593 = vmatmul.f32.gmra.mxu1 %v4420_v27  ;;  %v3112_v16 = vand.u32 2139095040, %v4688_v13  ;;  %vm2345_vm2 = vcmp.gt.s32.totalorder %v2344_v17, 0  ;;  %v6753_v6 = vand.u32 2147483647, %v4688_v13 }
  0xc8   : > { %v2346_v21 = vsel %vm2345_vm2, %v2344_v17, 0 }
  0xc9   : > { %1792 = vmatmul.f32.vlgmr.msra.gmra.mxu3 %v4402_v15  ;;  %1748 = vmatmul.f32.vlgmr.msra.gmra.mxu2 %v4447_v45  ;;  %v3113_v18 = vshrl.u32 %v3112_v16, 23  ;;  %v4699_v25 = vand.u32 31, %v2346_v21  ;;  %v4727_v50 = vshrl.u32 %v2346_v21, 5 }
  0xca   : > { %v577_v31 = vpop.f32.mrf.mxu0 }
  0xcb   : > { %v4052_v20 = vadd.s32 4294967169, %v3113_v18  ;;  %v4707_v28 = vsub.s32 32, %v4699_v25  ;;  %v578_v40 = vadd.f32 %v577_v31, %v546_v33  ;;  %v2363_v48 = vshll.u32 %v6755_v47, %v4699_v25  ;;  %v644_v59 = vpop.f32.mrf.mxu2  ;;  %v1296_v33 = vld [vmem:[#allocation5 + $0x40] sm:$0xff] }
  0xcc   : > { %v608_v39 = vpop.f32.mrf.mxu1  ;;  %v2354_v55 = vshll.u32 %v6763_v53, %v4699_v25  ;;  %v2357_v56 = vshll.u32 %v6761_v41, %v4699_v25  ;;  %v2360_v60 = vshll.u32 %v6759_v44, %v4699_v25  ;;  %vm2369_vm4 = vcmp.lt.s32.totalorder %v4727_v50, 4  ;;  %v672_v14 = vpop.f32.mrf.mxu3 }
  0xcd   : > { %1688 = vmatmul.f32.vlgmr.msra.gmra.mxu0 %v4402_v15  ;;  %v3119_v24 = vadd.s32 1, %v4052_v20  ;;  %v2364_v36 = vshrl.u32 %v6757_v34, %v4707_v28  ;;  %v2355_v43 = vshrl.u32 %v6761_v41, %v4707_v28  ;;  %v2358_v46 = vshrl.u32 %v6759_v44, %v4707_v28 }
  0xce   : > { %v2361_v51 = vshrl.u32 %v6755_v47, %v4707_v28  ;;  %v609_v52 = vadd.f32 %v608_v39, %v578_v40  ;;  %v2352_v4 = vshrl.u32 %v6763_v53, %v4707_v28  ;;  %vm2366_vm5 = vcmp.lt.s32.totalorder %v4727_v50, 1 }
  0xcf   : > { %1716 = vmatmul.f32.vlgmr.msra.gmra.mxu1 %v4402_v15  ;;  %vm3120_vm3 = vcmp.gt.s32.totalorder %v3119_v24, 0  ;;  %v2365_v57 = vor.u32 %v2364_v36, %v2363_v48  ;;  %v4742_v61 = vor.u32 %v2355_v43, %v2354_v55  ;;  %v4744_v62 = vor.u32 %v2358_v46, %v2357_v56 }
  0xd0   : > { %v3121_v29 = vsel %vm3120_vm3, %v3119_v24, 0  ;;  %v2362_v63 = vor.u32 %v2361_v51, %v2360_v60  ;;  %v645_v0 = vadd.f32 %v644_v59, %v609_v52  ;;  %vm2368_vm6 = vcmp.lt.s32.totalorder %v4727_v50, 3 }
  0xd1   : > { %1796 = vmatmul.f32.gmra.mxu3 %v4420_v27  ;;  %1756 = vmatmul.f32.gmra.mxu2 %v4460_v54  ;;  %v4713_v37 = vand.u32 31, %v3121_v29  ;;  %v2379_v2 = vsel %vm2369_vm4, %v2365_v57, 1326507024  ;;  %v2378_v9 = vsel %vm2366_vm5, %v4742_v61, %v4744_v62  ;;  %v4771_v17 = vshrl.u32 %v3121_v29, 5 }
  0xd2   : > { %v4756_v7 = vpop.f32.mrf.mxu0  ;;  %v2380_v16 = vsel %vm2368_vm6, %v2362_v63, %v2379_v2  ;;  %v4775_v19 = vadd.f32 %v672_v14, %v645_v0  ;;  %v1313_v31 = vsel %vm257_vm0, %v1301_v8, 0  ;;  %v6765_v36 = vmov 683565275  }
  0xd3   : > { %v4737_v58 = vsub.s32 32, %v4713_v37  ;;  %v3138_v12 = vshll.u32 %v6755_v47, %v4713_v37  ;;  %v3129_v21 = vshll.u32 %v6763_v53, %v4713_v37  ;;  %v3132_v23 = vshll.u32 %v6761_v41, %v4713_v37 }
  0xd4   : > { %6841 = vst [vmem:[#allocation13_spill] sm:$0xff] %v4775_v19  ;;  %v4777_v20 = vpop.f32.mrf.mxu1  ;;  %v2351_v29 = vshll.u32 %v6765_v36, %v4699_v25  ;;  %vm2367_vm7 = vcmp.lt.s32.totalorder %v4727_v50, 2  ;;  %v3116_v39 = vand.u32 8388607, %v6753_v6  ;;  %v3135_v40 = vshll.u32 %v6759_v44, %v4713_v37 }
  0xd5   : > { %1692 = vmatmul.f32.gmra.mxu0 %v4420_v27  ;;  %v3139_v3 = vshrl.u32 %v6757_v34, %v4737_v58  ;;  %v3130_v10 = vshrl.u32 %v6761_v41, %v4737_v58  ;;  %v3133_v11 = vshrl.u32 %v6759_v44, %v4737_v58  ;;  %v3136_v18 = vshrl.u32 %v6755_v47, %v4737_v58 }
  0xd6   : > { %v4793_v43 = vsel %vm2367_vm7, %v2378_v9, %v2380_v16  ;;  %v4799_v49 = vand.u32 4294901760, %v1313_v31  ;;  %vm3144_vm8 = vcmp.lt.s32.totalorder %v4771_v17, 4  ;;  %v2492_v25 = vand.u32 2139095040, %v4775_v19 }
  0xd7   : > { %1720 = vmatmul.f32.gmra.mxu1 %v4420_v27  ;;  %v3140_v24 = vor.u32 %v3139_v3, %v3138_v12  ;;  %v4795_v46 = vor.u32 %v3130_v10, %v3129_v21  ;;  %v4797_v48 = vor.u32 %v3133_v11, %v3132_v23  ;;  %v3137_v51 = vor.u32 %v3136_v18, %v3135_v40 }
  0xd8   : > { %v4803_v52 = vand.u32 4294901760, %v1296_v33  ;;  %v2353_v55 = vor.u32 %v2352_v4, %v2351_v29  ;;  %v4805_v56 = vshll.u32 %v2342_v1, 8  ;;  %1941 = vmatpush.msra.mxu0 %v4799_v49  ;;  %2050 = vmatpush.msra.mxu3 %v4799_v49  ;;  %v2350_v59 = vshrl.u32 %v6765_v36, %v4707_v28 }
  0xd9   : > { %1919 = vmatmul.f32.vlgmr.msrb.gmra.mxu3 %v4402_v15  ;;  %1891 = vmatmul.f32.vlgmr.msrb.gmra.mxu2 %v4402_v15  ;;  %v3154_v57 = vsel %vm3144_vm8, %v3140_v24, 1326507024  ;;  %v2371_v60 = vsel %vm2369_vm4, %v4744_v62, 2102212464  ;;  %v3117_v0 = vor.u32 8388608, %v3116_v39  ;;  %v4817_v2 = vsub.f32 %v1313_v31, %v4799_v49 }
  0xda   : > { %6842 = vst [vmem:[#allocation14_spill] sm:$0xff] %v4805_v56  ;;  %v2375_v1 = vsel %vm2369_vm4, %v2362_v63, 920167782  ;;  %v2386_v3 = vshrl.u32 %v4793_v43, 16  ;;  %vm3141_vm9 = vcmp.lt.s32.totalorder %v4771_v17, 1  ;;  %vm3143_vm10 = vcmp.lt.s32.totalorder %v4771_v17, 3  ;;  %1943 = vmatpush.msra.mxu0 %v4803_v52  ;;  %2052 = vmatpush.msra.mxu3 %v4803_v52  ;;  %v4832_v63 = vpop.f32.mrf.mxu0 }
  0xdb   : > { %v3153_v28 = vsel %vm3141_vm9, %v4795_v46, %v4797_v48  ;;  %v3155_v4 = vsel %vm3143_vm10, %v3137_v51, %v3154_v57  ;;  %v2493_v8 = vshrl.u32 %v2492_v25, 23  ;;  %2018 = vmatpush.msra.mxu2 %v4817_v2  ;;  %v4836_v9 = vsub.f32 %v1296_v33, %v4803_v52  ;;  %v648_v33 = vpop.f32.mrf.mxu2 }
  0xdc   : > { %v2370_v10 = vsel %vm2366_vm5, %v2350_v59, %v2353_v55  ;;  %v2374_v11 = vsel %vm2366_vm5, %v2353_v55, %v4742_v61  ;;  %v2383_v12 = vand.u32 65535, %v4805_v56  ;;  %v2372_v14 = vsel %vm2368_vm6, %v4742_v61, %v2371_v60  ;;  %v748_v21 = vpop.f32.mrf.mxu1 }
  0xdd   : > { %1824 = vmatmul.f32.vlgmr.msrb.gmra.mxu0 %v4416_v22  ;;  %v2376_v16 = vsel %vm2368_vm6, %v4744_v62, %v2375_v1  ;;  %v3127_v18 = vshrl.u32 %v6763_v53, %v4737_v58  ;;  %vm3142_vm11 = vcmp.lt.s32.totalorder %v4771_v17, 2  ;;  %2021 = vmatpush.msra.mxu2 %v4836_v9  ;;  %v3126_v61 = vshll.u32 %v6765_v36, %v4713_v37 }
  0xde   : > { %v4854_v23 = vmul.u32 %v2386_v3, %v2383_v12  ;;  %v4858_v24 = vsel %vm3142_vm11, %v3153_v28, %v3155_v4  ;;  %v4862_v31 = vshll.u32 %v3117_v0, 8  ;;  %v4040_v62 = vadd.s32 4294967169, %v2493_v8 }
  0xdf   : > { %1855 = vmatmul.f32.vlgmr.msrb.gmra.mxu1 %v4430_v30  ;;  %v4866_v29 = vsel %vm2367_vm7, %v2370_v10, %v2372_v14  ;;  %v2377_v39 = vsel %vm2367_vm7, %v2374_v11, %v2376_v16  ;;  %v2385_v40 = vand.u32 65535, %v4793_v43  ;;  %v550_v25 = vadd.f32 %v4715_v38, %v4702_v26  ;;  %v676_v16 = vpop.f32.mrf.mxu3 }
  0xe0   : > { %6843 = vst [vmem:[#allocation15_spill] sm:$0xff] %v4854_v23  ;;  %v2384_v55 = vshrl.u32 %v4805_v56, 16  ;;  %v3128_v57 = vor.u32 %v3127_v18, %v3126_v61  ;;  %v3161_v37 = vshrl.u32 %v4858_v24, 16  ;;  %v2391_v59 = vshll.u32 %v4854_v23, 16 }
  0xe1   : > { %1923 = vmatmul.f32.gmra.mxu3 %v4420_v27  ;;  %1895 = vmatmul.f32.gmra.mxu2 %v4420_v27  ;;  %6844 = vst [vmem:[#allocation16_spill] sm:$0xff] %v4862_v31  ;;  %v3150_v60 = vsel %vm3144_vm8, %v3137_v51, 920167782  ;;  %v583_v0 = vadd.f32 %v4756_v7, %v550_v25  ;;  %v1978_v50 = vand.u32 4294901760, %v4817_v2  ;;  %v2407_v1 = vand.u32 65535, %v2377_v39 }
  0xe2   : > { %6845 = vst [vmem:[#allocation17_spill] sm:$0xff] %v4866_v29  ;;  %v4883_v26 = vand.u32 65535, %v4862_v31  ;;  %v2499_v38 = vadd.s32 1, %v4040_v62  ;;  %v2387_v28 = vmul.u32 %v2385_v40, %v2383_v12  ;;  %v2408_v4 = vshrl.u32 %v2377_v39, 16  ;;  %v4903_v18 = vpop.f32.mrf.mxu0 }
  0xe3   : > { %v4886_v8 = vshrl.u32 %v4862_v31, 16  ;;  %v615_v10 = vadd.f32 %v4777_v20, %v583_v0  ;;  %v3146_v7 = vsel %vm3144_vm8, %v4797_v48, 2102212464  ;;  %v3149_v51 = vsel %vm3141_vm9, %v3128_v57, %v4795_v46  ;;  %v4914_v0 = vld [vmem:[#allocation5 + $0x18] sm:$0xff]  ;;  %v780_v41 = vpop.f32.mrf.mxu2 }
  0xe4   : > { %v3151_v11 = vsel %vm3143_vm10, %v4797_v48, %v3150_v60  ;;  %v4901_v14 = vmul.u32 %v3161_v37, %v4883_v26  ;;  %vm2395_vm12 = vc.u32 %v2387_v28, %v2391_v59  ;;  %v3125_v20 = vshrl.u32 %v6765_v36, %v4737_v58  ;;  %v752_v60 = vpop.f32.mrf.mxu1 }
  0xe5   : > { %1829 = vmatmul.f32.gmra.mxu0 %v4434_v35  ;;  %v6767_v61 = vand.u32 2147483647, %v4775_v19  ;;  %v1979_v62 = vsub.f32 %v4817_v2, %v1978_v50  ;;  %v4911_v39 = vmul.u32 %v2385_v40, %v2384_v55  ;;  %v2390_v48 = vmul.u32 %v2386_v3, %v2384_v55 }
  0xe6   : > { %6846 = vst [vmem:[#allocation18_spill] sm:$0xff] %v4901_v14  ;;  %v3160_v25 = vand.u32 65535, %v4858_v24  ;;  %vm2500_vm13 = vcmp.gt.s32.totalorder %v2499_v38, 0  ;;  %v3145_v6 = vsel %vm3141_vm9, %v3125_v20, %v3128_v57  ;;  %v3147_v58 = vsel %vm3143_vm10, %v4795_v46, %v3146_v7 }
  0xe7   : > { %1861 = vmatmul.f32.gmra.mxu1 %v4443_v42  ;;  %6847 = vst [vmem:[#allocation19_spill] sm:$0xff] %v4911_v39  ;;  %v3152_v32 = vsel %vm3142_vm11, %v3149_v51, %v3151_v11  ;;  %v649_v43 = vadd.f32 %v648_v33, %v615_v10  ;;  %v6768_v40 = vmov 0   ;;  %v4924_v47 = vmul.u32 %v2407_v1, %v2383_v12 }
  0xe8   : > { %v2396_v3 = vsel %vm2395_vm12, 1, %v6768_v40  ;;  %v4926_v34 = vmul.u32 %v2408_v4, %v2383_v12  ;;  %v3166_v44 = vshll.u32 %v4901_v14, 16  ;;  %v2496_v57 = vand.u32 8388607, %v6767_v61 }
  0xe9   : > { %6848 = vst [vmem:[#allocation20_spill] sm:$0xff] %v4924_v47  ;;  %v2501_v20 = vsel %vm2500_vm13, %v2499_v38, 0  ;;  %v1980_v53 = vand.u32 4294901760, %v1979_v62  ;;  %v4932_v46 = vand.u32 4294901760, %v4914_v0  ;;  %v4936_v33 = vsel %vm3142_vm11, %v3145_v6, %v3147_v58 }
  0xea   : > { %6849 = vst [vmem:[#allocation21_spill] sm:$0xff] %v4926_v34  ;;  %v3162_v10 = vmul.u32 %v3160_v25, %v4883_v26  ;;  %v3182_v7 = vand.u32 65535, %v3152_v32  ;;  %v749_v12 = vadd.f32 %v748_v21, %v4832_v63  ;;  %v4940_v51 = vmul.u32 %v2407_v1, %v2384_v55 }
  0xeb   : > { %6850 = vst [vmem:[#allocation22_spill] sm:$0xff] %v4936_v33  ;;  %v4942_v11 = vmul.u32 %v2408_v4, %v2384_v55  ;;  %v3183_v36 = vshrl.u32 %v3152_v32, 16  ;;  %v4944_v61 = vadd.f32 %v676_v16, %v649_v43  ;;  %1981 = vmatpush.msra.mxu1 %v1980_v53  ;;  %1945 = vmatpush.msra.mxu0 %v4932_v46  ;;  %v2503_v17 = vand.u32 31, %v2501_v20  ;;  %v847_v4 = vpop.f32.mrf.mxu0  ;;  %v1302_v55 = vld [vmem:[#allocation5 + $0x70] sm:$0x1]  ;;  %v1297_v33 = vld [vmem:[#allocation5 + $0x48] sm:$0xff] }
  0xec   : > { %6851 = vst [vmem:[#allocation23_spill] sm:$0xff] %v4940_v51  ;;  %v4947_v38 = vadd.s32 %v2391_v59, %v2387_v28  ;;  %vm4949_vm14 = vc.u32 %v3162_v10, %v3166_v44  ;;  %v1984_v62 = vand.u32 4294901760, %v4836_v9  ;;  %2054 = vmatpush.msra.mxu3 %v4932_v46  ;;  %v4955_v63 = vadd.s32 %v2396_v3, %v2390_v48  ;;  %v811_v28 = vpop.f32.mrf.mxu3 }
  0xed   : > { %6852 = vst [vmem:[#allocation24_spill] sm:$0xff] %v4942_v11  ;;  %v4958_v32 = vmul.u32 %v3160_v25, %v4886_v8  ;;  %v2497_v21 = vor.u32 8388608, %v2496_v57  ;;  %1951 = vmatmul.f32.vlgmr.msra.gmra.mxu0 %v4447_v45  ;;  %v3165_v59 = vmul.u32 %v3161_v37, %v4886_v8  ;;  %v4968_v1 = vmul.u32 %v3182_v7, %v4883_v26 }
  0xee   : > { %6853 = vst [vmem:[#allocation25_spill] sm:$0xff] %v4944_v61  ;;  %v781_v43 = vadd.f32 %v780_v41, %v749_v12  ;;  %2058 = vmatmul.f32.vlgmr.msra.gmra.mxu3 %v4430_v30  ;;  %2084 = vmatpush.msrb.mxu0 %v1978_v50  ;;  %v3171_v16 = vsel %vm4949_vm14, 1, %v6768_v40  ;;  %v4977_v48 = vmul.u32 %v3183_v36, %v4883_v26  ;;  %v3267_v37 = vand.u32 2139095040, %v4944_v61  ;;  %v875_v50 = vpop.f32.mrf.mxu1 }
  0xef   : > { %6854 = vst [vmem:[#allocation26_spill] sm:$0xff] %v4947_v38  ;;  %v4982_v41 = vmul.u32 %v3182_v7, %v4886_v8  ;;  %v4985_v25 = vmul.u32 %v3183_v36, %v4886_v8  ;;  %v2504_v58 = vsub.s32 32, %v2503_v17  ;;  %v1985_v2 = vsub.f32 %v4836_v9, %v1984_v62  ;;  %v785_v8 = vpop.f32.mrf.mxu2 }
  0xf0   : > { %6857 = vst [vmem:[#allocation27_spill] sm:$0xff] %v4955_v63  ;;  %2088 = vmatpush.msrb.mxu0 %v1984_v62  ;;  %v4989_v57 = vadd.s32 %v3166_v44, %v3162_v10  ;;  %v4991_v26 = vshll.u32 %v2497_v21, 8  ;;  %v753_v12 = vadd.f32 %v752_v60, %v4903_v18  ;;  %v4994_v6 = vadd.s32 %v3171_v16, %v3165_v59 }
  0xf1   : > { %6858 = vst [vmem:[#allocation28_spill] sm:$0xff] %v4958_v32  ;;  %v4996_v7 = vshrl.u32 %v2501_v20, 5  ;;  %v812_v53 = vadd.f32 %v811_v28, %v781_v43  ;;  %v1986_v36 = vand.u32 4294901760, %v1985_v2  ;;  %v6866_v40 = vmov 683565275  }
  0xf2   : > { %6859 = vst [vmem:[#allocation29_spill] sm:$0xff] %v4968_v1  ;;  %v2506_v9 = vshll.u32 %v6866_v40, %v2503_v17  ;;  %v6867_v24 = vmov 2475754826   ;;  %v3268_v19 = vshrl.u32 %v3267_v37, 23  ;;  %v6868_v44 = vand.u32 2147483647, %v4944_v61 }
  0xf3   : > { %6860 = vst [vmem:[#allocation30_spill] sm:$0xff] %v4977_v48  ;;  %v2509_v62 = vshll.u32 %v6867_v24, %v2503_v17  ;;  %v2507_v21 = vshrl.u32 %v6867_v24, %v2504_v58  ;;  %v6869_v18 = vmov 2131351028   ;;  %v6870_v59 = vmov 2102212464   ;;  %1987 = vmatpush.msra.mxu1 %v1986_v36  ;;  %v851_v29 = vpop.f32.mrf.mxu0 }
  0xf4   : > { %6861 = vst [vmem:[#allocation31_spill] sm:$0xff] %v4982_v41  ;;  %v5002_v10 = vand.u32 8388607, %v6868_v44  ;;  %v2512_v60 = vshll.u32 %v6869_v18, %v2503_v17  ;;  %v2513_v20 = vshrl.u32 %v6870_v59, %v2504_v58  ;;  %v2515_v43 = vshll.u32 %v6870_v59, %v2503_v17 }
  0xf5   : > { %6862 = vst [vmem:[#allocation32_spill] sm:$0xff] %v4985_v25  ;;  %v6871_v28 = vmov 1326507024   ;;  %v786_v2 = vadd.f32 %v785_v8, %v753_v12  ;;  %v1989_v3 = vsub.f32 %v4914_v0, %v4932_v46  ;;  %v1316_v37 = vsel %vm257_vm0, %v1302_v55, 0  ;;  %1959 = vmatmul.f32.gmra.mxu0 %v4460_v54  ;;  %v817_v8 = vpop.f32.mrf.mxu3 }
  0xf6   : > { %6863 = vst [vmem:[#allocation33_spill] sm:$0xff] %v4989_v57  ;;  %v2519_v16 = vshrl.u32 %v6871_v28, %v2504_v58  ;;  %v2510_v44 = vshrl.u32 %v6869_v18, %v2504_v58  ;;  %v6872_v61 = vmov 920167782   ;;  %vm2521_vm15 = vcmp.lt.s32.totalorder %v4996_v7, 1  ;;  %2064 = vmatmul.f32.gmra.mxu3 %v4443_v42 }
  0xf7   : > { %6864 = vst [vmem:[#allocation34_spill] sm:$0xff] %v4991_v26  ;;  %v2516_v13 = vshrl.u32 %v6872_v61, %v2504_v58  ;;  %v2518_v5 = vshll.u32 %v6872_v61, %v2503_v17  ;;  %v2505_v12 = vshrl.u32 %v6866_v40, %v2504_v58  ;;  %vm2523_vm1 = vcmp.lt.s32.totalorder %v4996_v7, 3  ;;  %2024 = vmatpush.msra.mxu2 %v1989_v3 }
  0xf8   : > { %6865 = vst [vmem:[#allocation35_spill] sm:$0xff] %v4994_v6  ;;  %vm2524_vm2 = vcmp.lt.s32.totalorder %v4996_v7, 4  ;;  %v848_v0 = vadd.f32 %v847_v4, %v812_v53  ;;  %v2508_v55 = vor.u32 %v2507_v21, %v2506_v9  ;;  %v2514_v36 = vor.u32 %v2513_v20, %v2512_v60  ;;  %2027 = vmatmul.f32.vlgmr.msra.gmra.mxu2 %v4416_v22  ;;  %v879_v9 = vpop.f32.mrf.mxu1 }
  0xf9   : > { %v1990_v31 = vand.u32 4294901760, %v1989_v3  ;;  %v5022_v17 = vand.u32 4294901760, %v1316_v37  ;;  %v2520_v56 = vor.u32 %v2519_v16, %v2518_v5  ;;  %v818_v25 = vadd.f32 %v817_v8, %v786_v2 }
  0xfa   : > { %v5024_v1 = vadd.f32 %v875_v50, %v848_v0  ;;  %v5026_v58 = vand.u32 4294901760, %v1297_v33  ;;  %v2511_v41 = vor.u32 %v2510_v44, %v2509_v62  ;;  %v2517_v14 = vor.u32 %v2516_v13, %v2515_v43  ;;  %v1292_v50 = vld [vmem:[#allocation5 + $0x20] sm:$0xff] }
  0xfb   : > { %vm2522_vm0 = vcmp.lt.s32.totalorder %v4996_v7, 2  ;;  %v1991_v53 = vsub.f32 %v1989_v3, %v1990_v31  ;;  %2144 = vmatpush.msrb.mxu2 %v5022_v17  ;;  %v2180_v4 = vsub.f32 %v1316_v37, %v5022_v17  ;;  %v4055_v21 = vadd.s32 4294967169, %v3268_v19  ;;  %2092 = vmatpush.msrb.mxu0 %v1990_v31 }
  0xfc   : > { %6873 = vst [vmem:[#allocation36_spill] sm:$0xff] %v5024_v1  ;;  %v6786_v60 = vand.u32 2147483647, %v5024_v1  ;;  %v2647_v5 = vand.u32 2139095040, %v5024_v1  ;;  %v852_v20 = vadd.f32 %v851_v29, %v818_v25  ;;  %v2526_v62 = vsel %vm2524_vm2, %v2514_v36, 2102212464 }
  0xfd   : > { %v1992_v13 = vand.u32 4294901760, %v1991_v53  ;;  %v2181_v43 = vand.u32 4294901760, %v2180_v4  ;;  %2146 = vmatpush.msrb.mxu2 %v5026_v58  ;;  %v2186_v3 = vsub.f32 %v1297_v33, %v5026_v58  ;;  %2221 = vmatpush.msra.mxu0 %v2180_v4  ;;  %v2525_v19 = vsel %vm2521_vm15, %v2505_v12, %v2508_v55 }
  0xfe   : > { %v2534_v16 = vsel %vm2524_vm2, %v2520_v56, 1326507024  ;;  %v2648_v2 = vshrl.u32 %v2647_v5, 23  ;;  %v5041_v29 = vadd.f32 %v879_v9, %v852_v20  ;;  %2094 = vmatmul.f32.vlgmr.msrb.gmra.mxu0 %v4402_v15  ;;  %v2530_v31 = vsel %vm2524_vm2, %v2517_v14, 920167782 }
  0xff   : > { %1993 = vmatpush.msra.mxu1 %v1992_v13  ;;  %v2182_v25 = vsub.f32 %v2180_v4, %v2181_v43  ;;  %v2187_v37 = vand.u32 4294901760, %v2186_v3  ;;  %v5046_v44 = vand.u32 4294901760, %v1292_v50  ;;  %2224 = vmatpush.msra.mxu0 %v2186_v3  ;;  %v2527_v33 = vsel %vm2523_vm1, %v2511_v41, %v2526_v62 }
 0x100   : > { %6874 = vst [vmem:[#allocation37_spill] sm:$0xff] %v5041_v29  ;;  %v2533_v56 = vsel %vm2521_vm15, %v2511_v41, %v2514_v36  ;;  %v4043_v12 = vadd.s32 4294967169, %v2648_v2  ;;  %v2651_v0 = vand.u32 8388607, %v6786_v60  ;;  %1995 = vmatmul.f32.vlgmr.msra.gmra.mxu1 %v4402_v15  ;;  %v2535_v8 = vsel %vm2523_vm1, %v2517_v14, %v2534_v16  ;;  %2032 = vmatmul.f32.gmra.mxu2 %v4434_v35 }
 0x101   : > { %v2183_v53 = vand.u32 4294901760, %v2182_v25  ;;  %2116 = vmatpush.msrb.mxu1 %v4799_v49  ;;  %v2188_v4 = vsub.f32 %v2186_v3, %v2187_v37  ;;  %v3422_v9 = vand.u32 2139095040, %v5041_v29  ;;  %v2529_v5 = vsel %vm2521_vm15, %v2508_v55, %v2511_v41  ;;  %2148 = vmatpush.msrb.mxu2 %v5046_v44 }
 0x102   : > { %v2531_v20 = vsel %vm2523_vm1, %v2514_v36, %v2530_v31  ;;  %v3272_v62 = vor.u32 8388608, %v5002_v10  ;;  %v2654_v13 = vadd.s32 1, %v4043_v12  ;;  %v5066_v14 = vadd.s32 1, %v4055_v21 }
 0x103   : > { %2184 = vmatpush.msrb.mxu3 %v2183_v53  ;;  %v2189_v49 = vand.u32 4294901760, %v2188_v4  ;;  %v3423_v16 = vshrl.u32 %v3422_v9, 23  ;;  %2118 = vmatpush.msrb.mxu1 %v4803_v52  ;;  %v5070_v3 = vsub.f32 %v1292_v50, %v5046_v44  ;;  %v5074_v41 = vsel %vm2522_vm0, %v2525_v19, %v2527_v33 }
 0x104   : > { %6875 = vst [vmem:[#allocation38_spill] sm:$0xff] %v5074_v41  ;;  %v5078_v10 = vsel %vm2522_vm0, %v2533_v56, %v2535_v8  ;;  %v2652_v55 = vor.u32 8388608, %v2651_v0  ;;  %vm2655_vm3 = vcmp.gt.s32.totalorder %v2654_v13, 0  ;;  %2287 = vmatpush.msra.mxu2 %v2181_v43  ;;  %v5082_v36 = vsel %vm2522_vm0, %v2529_v5, %v2531_v20 }
 0x105   : > { %v2656_v21 = vsel %vm2655_vm3, %v2654_v13, 0  ;;  %2190 = vmatpush.msrb.mxu3 %v2189_v49  ;;  %v6785_v52 = vand.u32 2147483647, %v5041_v29  ;;  %v4058_v50 = vadd.s32 4294967169, %v3423_v16  ;;  %2120 = vmatpush.msrb.mxu1 %v4932_v46  ;;  %v5087_v19 = vand.u32 65535, %v4991_v26 }
 0x106   : > { %v5090_v2 = vshrl.u32 %v4991_v26, 16  ;;  %v2658_v31 = vand.u32 31, %v2656_v21  ;;  %v6788_v43 = vand.u32 4294901760, %v5070_v3  ;;  %2291 = vmatpush.msra.mxu2 %v2187_v37  ;;  %v2540_v7 = vand.u32 65535, %v5078_v10  ;;  %2098 = vmatmul.f32.gmra.mxu0 %v4420_v27 }
 0x107   : > { %2253 = vmatpush.msra.mxu1 %v5022_v17  ;;  %v6787_v25 = vshrl.u32 %v5078_v10, 16  ;;  %v5098_v46 = vshll.u32 %v3272_v62, 8  ;;  %vm3275_vm4 = vcmp.gt.s32.totalorder %v5066_v14, 0  ;;  %v5105_v0 = vshll.u32 %v2652_v55, 8  ;;  %2227 = vmatpush.msra.mxu0 %v5070_v3 }
 0x108   : > { %v5103_v12 = vsub.s32 32, %v2658_v31  ;;  %v3429_v37 = vadd.s32 1, %v4058_v50  ;;  %1999 = vmatmul.f32.gmra.mxu1 %v4420_v27  ;;  %2295 = vmatpush.msra.mxu2 %v6788_v43  ;;  %v5110_v8 = vshrl.u32 %v2656_v21, 5  ;;  %v2661_v53 = vshll.u32 %v6866_v40, %v2658_v31 }
 0x109   : > { %6876 = vst [vmem:[#allocation39_spill] sm:$0xff] %v5098_v46  ;;  %v2664_v4 = vshll.u32 %v6867_v24, %v2658_v31  ;;  %v3426_v9 = vand.u32 8388607, %v6785_v52  ;;  %2154 = vmatmul.f32.vlgmr.msrb.gmra.mxu2 %v4447_v45  ;;  %2255 = vmatpush.msra.mxu1 %v5026_v58  ;;  %v2667_v62 = vshll.u32 %v6869_v18, %v2658_v31 }
 0x10a   : > { %v2662_v5 = vshrl.u32 %v6867_v24, %v5103_v12  ;;  %v2665_v20 = vshrl.u32 %v6869_v18, %v5103_v12  ;;  %v2668_v13 = vshrl.u32 %v6870_v59, %v5103_v12  ;;  %v2670_v49 = vshll.u32 %v6870_v59, %v2658_v31 }
 0x10b   : > { %v2671_v45 = vshrl.u32 %v6872_v61, %v5103_v12  ;;  %v2673_v16 = vshll.u32 %v6872_v61, %v2658_v31  ;;  %v2674_v55 = vshrl.u32 %v6871_v28, %v5103_v12  ;;  %2257 = vmatpush.msra.mxu1 %v5046_v44  ;;  %vm3430_vm5 = vcmp.gt.s32.totalorder %v3429_v37, 0 }
 0x10c   : > { %v5133_v21 = vor.u32 %v2662_v5, %v2661_v53  ;;  %v5135_v50 = vor.u32 %v2665_v20, %v2664_v4  ;;  %v5137_v52 = vor.u32 %v2668_v13, %v2667_v62  ;;  %vm2676_vm6 = vcmp.lt.s32.totalorder %v5110_v8, 1 }
 0x10d   : > { %v2672_v33 = vor.u32 %v2671_v45, %v2670_v49  ;;  %v2675_v60 = vor.u32 %v2674_v55, %v2673_v16  ;;  %v3431_v56 = vsel %vm3430_vm5, %v3429_v37, 0  ;;  %v5143_v31 = vmul.u32 %v6787_v25, %v5087_v19 }
 0x10e   : > { %vm2679_vm7 = vcmp.lt.s32.totalorder %v5110_v8, 4  ;;  %v2684_v53 = vsel %vm2676_vm6, %v5133_v21, %v5135_v50  ;;  %v2688_v4 = vsel %vm2676_vm6, %v5135_v50, %v5137_v52  ;;  %vm2678_vm8 = vcmp.lt.s32.totalorder %v5110_v8, 3  ;;  %2230 = vmatmul.f32.vlgmr.msra.gmra.mxu0 %v4416_v22 }
 0x10f   : > { %6877 = vst [vmem:[#allocation40_spill] sm:$0xff] %v5143_v31  ;;  %v2685_v37 = vsel %vm2679_vm7, %v2672_v33, 920167782  ;;  %v2689_v5 = vsel %vm2679_vm7, %v2675_v60, 1326507024  ;;  %v2693_v20 = vand.u32 65535, %v5105_v0 }
 0x110   : > { %vm2677_vm9 = vcmp.lt.s32.totalorder %v5110_v8, 2  ;;  %v2686_v62 = vsel %vm2678_vm8, %v5137_v52, %v2685_v37  ;;  %v2690_v13 = vsel %vm2678_vm8, %v2672_v33, %v2689_v5  ;;  %v3433_v49 = vand.u32 31, %v3431_v56  ;;  %2122 = vmatmul.f32.vlgmr.msrb.gmra.mxu1 %v4402_v15 }
 0x111   : > { %v2687_v45 = vsel %vm2677_vm9, %v2684_v53, %v2686_v62  ;;  %v2691_v60 = vsel %vm2677_vm9, %v2688_v4, %v2690_v13  ;;  %v2694_v22 = vshrl.u32 %v5105_v0, 16  ;;  %v3427_v16 = vor.u32 8388608, %v3426_v9  ;;  %2162 = vmatmul.f32.gmra.mxu2 %v4460_v54  ;;  %v907_v9 = vpop.f32.mrf.mxu2  ;;  %v951_v62 = vpop.f32.mrf.mxu3 }
 0x112   : > { %v2695_v55 = vand.u32 65535, %v2691_v60  ;;  %v2696_v25 = vshrl.u32 %v2691_v60, 16  ;;  %v2717_v37 = vand.u32 65535, %v2687_v45  ;;  %v2718_v43 = vshrl.u32 %v2687_v45, 16 }
 0x113   : > { %v5178_v5 = vsel %vm3275_vm4, %v5066_v14, 0  ;;  %v5181_v53 = vand.u32 65535, %v5098_v46  ;;  %v5184_v4 = vshrl.u32 %v5098_v46, 16  ;;  %v5189_v54 = vmul.u32 %v2540_v7, %v5087_v19 }
 0x114   : > { %v5191_v13 = vmul.u32 %v2696_v25, %v2693_v20  ;;  %v5193_v45 = vmul.u32 %v2695_v55, %v2694_v22  ;;  %v5195_v60 = vsub.s32 32, %v3433_v49  ;;  %v5200_v14 = vmul.u32 %v2540_v7, %v5090_v2 }
 0x115   : > { %6878 = vst [vmem:[#allocation41_spill] sm:$0xff] %v5181_v53  ;;  %v5203_v41 = vmul.u32 %v2718_v43, %v2693_v20  ;;  %v5205_v26 = vmul.u32 %v2717_v37, %v2694_v22  ;;  %v2697_v29 = vmul.u32 %v2695_v55, %v2693_v20  ;;  %v5208_v6 = vadd.f32 %v951_v62, %v907_v9 }
 0x116   : > { %6879 = vst [vmem:[#allocation42_spill] sm:$0xff] %v5184_v4  ;;  %v2701_v48 = vshll.u32 %v5191_v13, 16  ;;  %v5210_v57 = vshll.u32 %v3427_v16, 8  ;;  %v2703_v32 = vshll.u32 %v5193_v45, 16  ;;  %v2719_v11 = vmul.u32 %v2717_v37, %v2693_v20  ;;  %2235 = vmatmul.f32.gmra.mxu0 %v4434_v35 }
 0x117   : > { %v2723_v51 = vshll.u32 %v5203_v41, 16  ;;  %v5214_v7 = vshrl.u32 %v3431_v56, 5  ;;  %v6799_v47 = vshll.u32 %v5205_v26, 16  ;;  %v3437_v55 = vshrl.u32 %v6867_v24, %v5195_v60 }
 0x118   : > { %vm2705_vm10 = vc.u32 %v2697_v29, %v2701_v48  ;;  %v2707_v33 = vadd.s32 %v2701_v48, %v2697_v29  ;;  %2126 = vmatmul.f32.gmra.mxu1 %v4420_v27  ;;  %v6880_v16 = vmov 0   ;;  %v3440_v56 = vshrl.u32 %v6869_v18, %v5195_v60 }
 0x119   : > { %v2706_v9 = vsel %vm2705_vm10, 1, %v6880_v16  ;;  %vm2727_vm11 = vc.u32 %v2719_v11, %v2723_v51  ;;  %v5222_v62 = vadd.s32 %v2723_v51, %v2719_v11  ;;  %2297 = vmatmul.f32.vlgmr.msra.gmra.mxu2 %v4402_v15  ;;  %v2700_v35 = vmul.u32 %v2696_v25, %v2694_v22  ;;  %v5294_v1 = vpop.f32.mrf.mxu3 }
 0x11a   : > { %vm2709_vm12 = vc.u32 %v2707_v33, %v2703_v32  ;;  %v2728_v48 = vsel %vm2727_vm11, 1, %v6880_v16  ;;  %v3436_v29 = vshll.u32 %v6866_v40, %v3433_v49  ;;  %v2722_v20 = vmul.u32 %v2718_v43, %v2694_v22 }
 0x11b   : > { %vm2731_vm13 = vc.u32 %v5222_v62, %v6799_v47  ;;  %v3439_v37 = vshll.u32 %v6867_v24, %v3433_v49  ;;  %v3442_v51 = vshll.u32 %v6869_v18, %v3433_v49  ;;  %v2708_v11 = vadd.s32 %v2706_v9, %v2700_v35 }
 0x11c   : > { %v2710_v63 = vsel %vm2709_vm12, 1, %v6880_v16  ;;  %v5235_v34 = vor.u32 %v3437_v55, %v3436_v29  ;;  %v3443_v32 = vshrl.u32 %v6870_v59, %v5195_v60  ;;  %v2730_v25 = vadd.s32 %v2728_v48, %v2722_v20 }
 0x11d   : > { %v5239_v33 = vor.u32 %v3440_v56, %v3439_v37  ;;  %v3445_v43 = vshll.u32 %v6870_v59, %v3433_v49  ;;  %v3446_v22 = vshrl.u32 %v6872_v61, %v5195_v60  ;;  %v2732_v47 = vsel %vm2731_vm13, 1, %v6880_v16 }
 0x11e   : > { %v5245_v38 = vor.u32 %v3443_v32, %v3442_v51  ;;  %v3448_v9 = vshll.u32 %v6872_v61, %v3433_v49  ;;  %v3449_v55 = vshrl.u32 %v6871_v28, %v5195_v60  ;;  %v2660_v35 = vshrl.u32 %v6866_v40, %v5103_v12 }
 0x11f   : > { %v3447_v48 = vor.u32 %v3446_v22, %v3445_v43  ;;  %v3468_v56 = vand.u32 65535, %v5210_v57  ;;  %v6881_v29 = vand.u32 4294901760, %v5070_v3  ;;  %v2712_v37 = vadd.s32 %v2710_v63, %v2708_v11 }
 0x120   : > { %v3450_v39 = vor.u32 %v3449_v55, %v3448_v9  ;;  %vm3451_vm14 = vcmp.lt.s32.totalorder %v5214_v7, 1  ;;  %vm3454_vm15 = vcmp.lt.s32.totalorder %v5214_v7, 4  ;;  %2261 = vmatmul.f32.vlgmr.msra.gmra.mxu1 %v4430_v30  ;;  %v2734_v49 = vadd.s32 %v2732_v47, %v2730_v25  ;;  %v5275_v47 = vpop.f32.mrf.mxu2  ;;  %v983_v25 = vpop.f32.mrf.mxu0 }
 0x121   : > { %v2194_v20 = vsub.f32 %v5070_v3, %v6881_v29  ;;  %vm3453_vm1 = vcmp.lt.s32.totalorder %v5214_v7, 3  ;;  %v3459_v12 = vsel %vm3451_vm14, %v5235_v34, %v5239_v33  ;;  %v3460_v51 = vsel %vm3454_vm15, %v3447_v48, 920167782  ;;  %2301 = vmatmul.f32.gmra.mxu2 %v4420_v27 }
 0x122   : > { %v2681_v63 = vsel %vm2679_vm7, %v5137_v52, 2102212464  ;;  %v2702_v3 = vshrl.u32 %v5191_v13, 16  ;;  %vm3452_vm2 = vcmp.lt.s32.totalorder %v5214_v7, 2  ;;  %v3461_v30 = vsel %vm3453_vm1, %v5245_v38, %v3460_v51 }
 0x123   : > { %v2724_v11 = vshrl.u32 %v5203_v41, 16  ;;  %v3462_v32 = vsel %vm3452_vm2, %v3459_v12, %v3461_v30  ;;  %v3463_v52 = vsel %vm3451_vm14, %v5239_v33, %v5245_v38  ;;  %v3464_v13 = vsel %vm3454_vm15, %v3450_v39, 1326507024 }
 0x124   : > { %v2713_v43 = vadd.s32 %v2712_v37, %v2702_v3  ;;  %v3465_v22 = vsel %vm3453_vm1, %v3447_v48, %v3464_v13  ;;  %v3492_v9 = vand.u32 65535, %v3462_v32  ;;  %v3493_v55 = vshrl.u32 %v3462_v32, 16 }
 0x125   : > { %v2735_v29 = vadd.s32 %v2734_v49, %v2724_v11  ;;  %v3466_v41 = vsel %vm3452_vm2, %v3463_v52, %v3465_v22  ;;  %v3469_v12 = vshrl.u32 %v5210_v57, 16  ;;  %v2195_v51 = vand.u32 4294901760, %v2194_v20  ;;  %v1014_v20 = vpop.f32.mrf.mxu1 }
 0x126   : > { %v2680_v30 = vsel %vm2676_vm6, %v2660_v35, %v5133_v21  ;;  %v3470_v23 = vand.u32 65535, %v3466_v41  ;;  %v3471_v39 = vshrl.u32 %v3466_v41, 16  ;;  %v984_v37 = vadd.f32 %v983_v25, %v5208_v6 }
 0x127   : > { %v2704_v48 = vshrl.u32 %v5193_v45, 16  ;;  %v2726_v49 = vshrl.u32 %v5205_v26, 16  ;;  %v5299_v3 = vmul.u32 %v3493_v55, %v3468_v56  ;;  %v5301_v11 = vmul.u32 %v3492_v9, %v3469_v12  ;;  %2196 = vmatpush.msrb.mxu3 %v2195_v51 }
 0x128   : > { %v5304_v32 = vand.u32 31, %v5178_v5  ;;  %v2682_v21 = vsel %vm2678_vm8, %v5135_v50, %v2681_v63  ;;  %v5309_v35 = vmul.u32 %v3471_v39, %v3468_v56  ;;  %v5311_v6 = vmul.u32 %v3470_v23, %v3469_v12  ;;  %2198 = vmatmul.f32.vlgmr.msrb.gmra.mxu3 %v4402_v15  ;;  %2267 = vmatmul.f32.gmra.mxu1 %v4443_v42 }
 0x129   : > { %v5315_v45 = vadd.s32 %v2713_v43, %v2704_v48  ;;  %v2736_v52 = vadd.s32 %v2735_v29, %v2726_v49  ;;  %v3494_v13 = vmul.u32 %v3492_v9, %v3468_v56  ;;  %v3498_v25 = vshll.u32 %v5299_v3, 16  ;;  %2319 = vmatpush.msra.mxu3 %v5022_v17  ;;  %v1050_v17 = vpop.f32.mrf.mxu2 }
 0x12a   : > { %v3472_v22 = vmul.u32 %v3470_v23, %v3468_v56  ;;  %v3476_v41 = vshll.u32 %v5309_v35, 16  ;;  %v3497_v50 = vmul.u32 %v3493_v55, %v3469_v12  ;;  %v1015_v63 = vadd.f32 %v1014_v20, %v984_v37 }
 0x12b   : > { %v3475_v51 = vmul.u32 %v3471_v39, %v3469_v12  ;;  %v3500_v4 = vshll.u32 %v5301_v11, 16  ;;  %vm3502_vm0 = vc.u32 %v3494_v13, %v3498_v25  ;;  %v5321_v53 = vadd.s32 %v3498_v25, %v3494_v13  ;;  %2321 = vmatpush.msra.mxu3 %v5026_v58 }
 0x12c   : > { %v3478_v42 = vshll.u32 %v5311_v6, 16  ;;  %vm3480_vm3 = vc.u32 %v3472_v22, %v3476_v41  ;;  %v3482_v43 = vadd.s32 %v3476_v41, %v3472_v22  ;;  %v3503_v9 = vsel %vm3502_vm0, 1, %v6880_v16  ;;  %v1078_v41 = vpop.f32.mrf.mxu3 }
 0x12d   : > { %v6882_v23 = vshll.u32 %v5205_v26, 16  ;;  %v3481_v55 = vsel %vm3480_vm3, 1, %v6880_v16  ;;  %v3505_v29 = vadd.s32 %v3503_v9, %v3497_v50  ;;  %vm3506_vm4 = vc.u32 %v5321_v53, %v3500_v4  ;;  %2323 = vmatpush.msra.mxu3 %v5046_v44 }
 0x12e   : > { %v2740_v58 = vadd.s32 1, %v2736_v52  ;;  %v3483_v12 = vadd.s32 %v3481_v55, %v3475_v51  ;;  %vm3484_vm5 = vc.u32 %v3482_v43, %v3478_v42  ;;  %v3507_v39 = vsel %vm3506_vm4, 1, %v6880_v16 }
 0x12f   : > { %v5329_v56 = vadd.s32 %v5222_v62, %v6882_v23  ;;  %v6883_v26 = vshrl.u32 %v5078_v10, 16  ;;  %v3485_v62 = vsel %vm3484_vm5, 1, %v6880_v16  ;;  %v1051_v48 = vadd.f32 %v1050_v17, %v1015_v63 }
 0x130   : > { %v6884_v49 = vand.u32 65535, %v5082_v36  ;;  %v6886_v20 = vshrl.u32 %v5082_v36, 16  ;;  %v2683_v22 = vsel %vm2677_vm9, %v2680_v30, %v2682_v21  ;;  %2202 = vmatmul.f32.gmra.mxu3 %v4420_v27  ;;  %v6889_v50 = vshll.u32 %v5143_v31, 16 }
 0x131   : > { %v5340_v37 = vmul.u32 %v6883_v26, %v5090_v2  ;;  %vm2739_vm6 = vc.u32 %v5315_v45, %v5329_v56  ;;  %v3509_v51 = vadd.s32 %v3507_v39, %v3505_v29  ;;  %v5371_v42 = vadd.f32 %v1078_v41, %v1051_v48 }
 0x132   : > { %v5348_v44 = vmul.u32 %v6884_v49, %v5087_v19  ;;  %v5353_v13 = vmul.u32 %v6886_v20, %v5087_v19  ;;  %v6887_v10 = vmov %v6884_v49  ;;  %vm2550_vm7 = vc.u32 %v5189_v54, %v6889_v50 }
 0x133   : > { %v5358_v25 = vmul.u32 %v6887_v10, %v5090_v2  ;;  %v6890_v63 = vmov %v6886_v20  ;;  %6892 = vst [vmem:[#allocation46_spill] sm:$0xff] %v5371_v42  ;;  %v3279_v8 = vsub.s32 32, %v5304_v32  ;;  %v2741_v30 = vsel %vm2739_vm6, %v2740_v58, %v2736_v52 }
 0x134   : > { %6885 = vst [vmem:[#allocation43_spill] sm:$0xff] %v5348_v44  ;;  %v5369_v19 = vmul.u32 %v6890_v63, %v5090_v2  ;;  %v3487_v21 = vadd.s32 %v3485_v62, %v3483_v12  ;;  %v6893_v9 = vmov %v6889_v50  ;;  %v5381_v23 = vshrl.u32 %v5178_v5, 5  ;;  %v988_v63 = vpop.f32.mrf.mxu0 }
 0x135   : > { %6888 = vst [vmem:[#allocation44_spill] sm:$0xff] %v5358_v25  ;;  %v5378_v17 = vadd.s32 %v6893_v9, %v5189_v54  ;;  %v2737_v36 = vmul.u32 %v5105_v0, %v2683_v22  ;;  %v3499_v2 = vshrl.u32 %v5299_v3, 16  ;;  %v5386_v55 = vsel %vm2550_vm7, 1, %v6880_v16 }
 0x136   : > { %6891 = vst [vmem:[#allocation45_spill] sm:$0xff] %v5369_v19  ;;  %v3281_v29 = vshll.u32 %v6866_v40, %v5304_v32  ;;  %v3477_v52 = vshrl.u32 %v5309_v35, 16  ;;  %v2802_v58 = vand.u32 2139095040, %v5371_v42  ;;  %v3284_v54 = vshll.u32 %v6867_v24, %v5304_v32 }
 0x137   : > { %6894 = vst [vmem:[#allocation47_spill] sm:$0xff] %v5378_v17  ;;  %v3287_v5 = vshll.u32 %v6869_v18, %v5304_v32  ;;  %v5396_v12 = vadd.s32 %v2741_v30, %v2737_v36  ;;  %v3510_v0 = vadd.s32 %v3509_v51, %v3499_v2  ;;  %v3280_v3 = vshrl.u32 %v6866_v40, %v3279_v8 }
 0x138   : > { %v3290_v39 = vshll.u32 %v6870_v59, %v5304_v32  ;;  %v3488_v26 = vadd.s32 %v3487_v21, %v3477_v52  ;;  %v2803_v62 = vshrl.u32 %v2802_v58, 23  ;;  %v3282_v35 = vshrl.u32 %v6867_v24, %v3279_v8  ;;  %2325 = vmatmul.f32.vlgmr.msra.gmra.mxu3 %v4402_v15  ;;  %v1020_v52 = vpop.f32.mrf.mxu1 }
 0x139   : > { %v3285_v48 = vshrl.u32 %v6869_v18, %v3279_v8  ;;  %v3288_v49 = vshrl.u32 %v6870_v59, %v3279_v8  ;;  %v3501_v20 = vshrl.u32 %v5301_v11, 16  ;;  %v3291_v10 = vshrl.u32 %v6872_v61, %v3279_v8 }
 0x13a   : > { %v3456_v22 = vsel %vm3454_vm15, %v5245_v38, 2102212464  ;;  %v3479_v41 = vshrl.u32 %v5311_v6, 16  ;;  %v4046_v50 = vadd.s32 4294967169, %v2803_v62  ;;  %v2743_v51 = vadd.s32 536870912, %v5396_v12 }
 0x13b   : > { %v3435_v30 = vshrl.u32 %v6866_v40, %v5195_v60  ;;  %v3511_v21 = vadd.s32 %v3510_v0, %v3501_v20  ;;  %v956_v9 = vadd.f32 %v5294_v1, %v5275_v47  ;;  %v3293_v36 = vshll.u32 %v6872_v61, %v5304_v32 }
 0x13c   : > { %v3294_v38 = vshrl.u32 %v6871_v28, %v3279_v8  ;;  %v5419_v2 = vadd.s32 %v3488_v26, %v3479_v41  ;;  %v2809_v6 = vadd.s32 1, %v4046_v50  ;;  %v3283_v58 = vor.u32 %v3282_v35, %v3281_v29 }
 0x13d   : > { %v3455_v15 = vsel %vm3451_vm14, %v3435_v30, %v5235_v34  ;;  %v3457_v60 = vsel %vm3453_vm1, %v5239_v33, %v3456_v22  ;;  %v989_v0 = vadd.f32 %v988_v63, %v956_v9  ;;  %v5427_v1 = vor.u32 %v3285_v48, %v3284_v54  ;;  %v1054_v54 = vpop.f32.mrf.mxu2 }
 0x13e   : > { %v5432_v47 = vadd.s32 %v5321_v53, %v3500_v4  ;;  %v6808_v32 = vand.u32 2147483647, %v5371_v42  ;;  %vm2810_vm8 = vcmp.gt.s32.totalorder %v2809_v6, 0  ;;  %v5435_v8 = vshrl.u32 %v2743_v51, 30 }
 0x13f   : > { %v3515_v29 = vadd.s32 1, %v3511_v21  ;;  %v2811_v26 = vsel %vm2810_vm8, %v2809_v6, 0  ;;  %v1021_v34 = vadd.f32 %v1020_v52, %v989_v0  ;;  %vm3296_vm9 = vcmp.lt.s32.totalorder %v5381_v23, 1 }
 0x140   : > { %6895 = vst [vmem:[#allocation48_spill] sm:$0xff] %v5435_v8  ;;  %v3458_v33 = vsel %vm3452_vm2, %v3455_v15, %v3457_v60  ;;  %vm3514_vm10 = vc.u32 %v5419_v2, %v5432_v47  ;;  %v2813_v11 = vand.u32 31, %v2811_v26  ;;  %v3289_v53 = vor.u32 %v3288_v49, %v3287_v5  ;;  %2329 = vmatmul.f32.gmra.mxu3 %v4420_v27 }
 0x141   : > { %v3292_v4 = vor.u32 %v3291_v10, %v3290_v39  ;;  %v3295_v62 = vor.u32 %v3294_v38, %v3293_v36  ;;  %vm3299_vm11 = vcmp.lt.s32.totalorder %v5381_v23, 4  ;;  %v5445_v35 = vsel %vm3296_vm9, %v3280_v3, %v3283_v58  ;;  %v1082_v38 = vpop.f32.mrf.mxu3 }
 0x142   : > { %v5450_v48 = vsel %vm3296_vm9, %v3283_v58, %v5427_v1  ;;  %v2806_v7 = vand.u32 8388607, %v6808_v32  ;;  %v5454_v20 = vsub.s32 32, %v2813_v11  ;;  %vm3298_vm12 = vcmp.lt.s32.totalorder %v5381_v23, 3 }
 0x143   : > { %v2745_v5 = vshll.u32 %v5435_v8, 30  ;;  %v3512_v39 = vmul.u32 %v5210_v57, %v3458_v33  ;;  %v3516_v3 = vsel %vm3514_vm10, %v3515_v29, %v3511_v21  ;;  %v1055_v49 = vadd.f32 %v1054_v54, %v1021_v34 }
 0x144   : > { %v5460_v10 = vshrl.u32 %v2811_v26, 5  ;;  %v2816_v22 = vshll.u32 %v6866_v40, %v2813_v11  ;;  %v2817_v41 = vshrl.u32 %v6867_v24, %v5454_v20  ;;  %v2819_v50 = vshll.u32 %v6867_v24, %v2813_v11 }
 0x145   : > { %v2820_v27 = vshrl.u32 %v6869_v18, %v5454_v20  ;;  %v2822_v63 = vshll.u32 %v6869_v18, %v2813_v11  ;;  %v2823_v51 = vshrl.u32 %v6870_v59, %v5454_v20  ;;  %v2826_v57 = vshrl.u32 %v6872_v61, %v5454_v20  ;;  %v1186_v25 = vpop.f32.mrf.mxu2 }
 0x146   : > { %vm3297_vm13 = vcmp.lt.s32.totalorder %v5381_v23, 2  ;;  %v2807_v30 = vor.u32 8388608, %v2806_v7  ;;  %v5474_v21 = vor.u32 %v2817_v41, %v2816_v22  ;;  %v2825_v9 = vshll.u32 %v6870_v59, %v2813_v11 }
 0x147   : > { %v2829_v36 = vshrl.u32 %v6871_v28, %v5454_v20  ;;  %v5479_v6 = vor.u32 %v2820_v27, %v2819_v50  ;;  %v5481_v52 = vor.u32 %v2823_v51, %v2822_v63  ;;  %v2828_v58 = vshll.u32 %v6872_v61, %v2813_v11 }
 0x148   : > { %v5484_v15 = vadd.f32 %v1082_v38, %v1055_v49  ;;  %v3301_v60 = vsel %vm3299_vm11, %v3289_v53, 2102212464  ;;  %v3305_v0 = vsel %vm3299_vm11, %v3292_v4, 920167782  ;;  %v3309_v29 = vsel %vm3299_vm11, %v3295_v62, 1326507024 }
 0x149   : > { %v2827_v26 = vor.u32 %v2826_v57, %v2825_v9  ;;  %v5492_v34 = vadd.s32 %v3516_v3, %v3512_v39  ;;  %v2830_v33 = vor.u32 %v2829_v36, %v2828_v58  ;;  %vm2831_vm14 = vcmp.lt.s32.totalorder %v5460_v10, 1  ;;  %v1217_v31 = vpop.f32.mrf.mxu3 }
 0x14a   : > { %6896 = vst [vmem:[#allocation49_spill] sm:$0xff] %v5484_v15  ;;  %vm2834_vm15 = vcmp.lt.s32.totalorder %v5460_v10, 4  ;;  %vm2833_vm1 = vcmp.lt.s32.totalorder %v5460_v10, 3  ;;  %v2839_v11 = vsel %vm2831_vm14, %v5474_v21, %v5479_v6  ;;  %v5503_v7 = vshll.u32 %v2807_v30, 8 }
 0x14b   : > { %v2840_v54 = vsel %vm2834_vm15, %v2827_v26, 920167782  ;;  %v5506_v62 = vsub.s32 %v5396_v12, %v2745_v5  ;;  %vm2832_vm2 = vcmp.lt.s32.totalorder %v5460_v10, 2  ;;  %v3577_v3 = vand.u32 2139095040, %v5484_v15 }
 0x14c   : > { %v2841_v39 = vsel %vm2833_vm1, %v5481_v52, %v2840_v54  ;;  %v3308_v49 = vsel %vm3296_vm9, %v5427_v1, %v3289_v53  ;;  %v3310_v22 = vsel %vm3298_vm12, %v3292_v4, %v3309_v29  ;;  %v2843_v12 = vsel %vm2831_vm14, %v5479_v6, %v5481_v52 }
 0x14d   : > { %v2842_v41 = vsel %vm2832_vm2, %v2839_v11, %v2841_v39  ;;  %v3302_v5 = vsel %vm3298_vm12, %v5427_v1, %v3301_v60  ;;  %v3306_v50 = vsel %vm3298_vm12, %v3289_v53, %v3305_v0  ;;  %v3518_v27 = vadd.s32 536870912, %v5492_v34 }
 0x14e   : > { %v2844_v4 = vsel %vm2834_vm15, %v2830_v33, 1326507024  ;;  %v2848_v51 = vand.u32 65535, %v5503_v7  ;;  %v2872_v57 = vand.u32 65535, %v2842_v41  ;;  %v2873_v30 = vshrl.u32 %v2842_v41, 16 }
 0x14f   : > { %v2845_v63 = vsel %vm2833_vm1, %v2827_v26, %v2844_v4  ;;  %v5537_v9 = vsel %vm3297_vm13, %v3308_v49, %v3310_v22  ;;  %v2748_v1 = vsub.s32 0, %v5506_v62  ;;  %v3578_v36 = vshrl.u32 %v3577_v3, 23 }
 0x150   : > { %v2846_v53 = vsel %vm2832_vm2, %v2843_v12, %v2845_v63  ;;  %v2849_v38 = vshrl.u32 %v5503_v7, 16  ;;  %v5543_v0 = vmul.u32 %v2873_v30, %v2848_v51  ;;  %v5547_v29 = vadd.s32 %v5386_v55, %v5340_v37 }
 0x151   : > { %v2850_v58 = vand.u32 65535, %v2846_v53  ;;  %v2851_v60 = vshrl.u32 %v2846_v53, 16  ;;  %v5552_v26 = vsel %vm3297_vm13, %v5445_v35, %v3302_v5  ;;  %vm2747_vm0 = vcmp.lt.s32.totalorder %v5506_v62, 0 }
 0x152   : > { %6897 = vst [vmem:[#allocation50_spill] sm:$0xff] %v5547_v29  ;;  %v5555_v33 = vshrl.u32 %v3518_v27, 30  ;;  %v5560_v11 = vsel %vm3297_vm13, %v5450_v48, %v3306_v50  ;;  %v5566_v37 = vmul.u32 %v2872_v57, %v2849_v38  ;;  %v3315_v55 = vand.u32 65535, %v5537_v9 }
 0x153   : > { %6898 = vst [vmem:[#allocation51_spill] sm:$0xff] %v5552_v26  ;;  %v5562_v54 = vmul.u32 %v2851_v60, %v2848_v51  ;;  %v5564_v39 = vmul.u32 %v2850_v58, %v2849_v38  ;;  %v2874_v3 = vmul.u32 %v2872_v57, %v2848_v51  ;;  %v2878_v35 = vshll.u32 %v5543_v0, 16 }
 0x154   : > { %6899 = vst [vmem:[#allocation52_spill] sm:$0xff] %v5555_v33  ;;  %v4061_v49 = vadd.s32 4294967169, %v3578_v36  ;;  %v6813_v22 = vshrl.u32 %v5537_v9, 16  ;;  %v2749_v41 = vsel %vm2747_vm0, %v2748_v1, %v5506_v62  ;;  %v2852_v12 = vmul.u32 %v2850_v58, %v2848_v51 }
 0x155   : > { %v2856_v23 = vshll.u32 %v5562_v54, 16  ;;  %v3520_v48 = vshll.u32 %v5555_v33, 30  ;;  %v2858_v5 = vshll.u32 %v5564_v39, 16  ;;  %vm2882_vm3 = vc.u32 %v2874_v3, %v2878_v35 }
 0x156   : > { %v6809_v50 = vand.u32 2147483647, %v5484_v15  ;;  %v6810_v4 = vshll.u32 %v5566_v37, 16  ;;  %v5577_v63 = vadd.s32 %v2878_v35, %v2874_v3  ;;  %v2855_v57 = vmul.u32 %v2851_v60, %v2849_v38 }
 0x157   : > { %vm2860_vm4 = vc.u32 %v2852_v12, %v2856_v23  ;;  %v2862_v27 = vadd.s32 %v2856_v23, %v2852_v12  ;;  %v2883_v51 = vsel %vm2882_vm3, 1, %v6880_v16  ;;  %v3584_v1 = vadd.s32 1, %v4061_v49  ;;  %v1110_v23 = vpop.f32.mrf.mxu0 }
 0x158   : > { %v2861_v53 = vsel %vm2860_vm4, 1, %v6880_v16  ;;  %v2750_v36 = vclz %v2749_v41  ;;  %v2877_v58 = vmul.u32 %v2873_v30, %v2849_v38  ;;  %vm2886_vm6 = vc.u32 %v5577_v63, %v6810_v4  ;;  %v1154_v30 = vpop.f32.mrf.mxu1 }
 0x159   : > { %vm2864_vm5 = vc.u32 %v2862_v27, %v2858_v5  ;;  %v2863_v12 = vadd.s32 %v2861_v53, %v2855_v57  ;;  %v3581_v3 = vand.u32 8388607, %v6809_v50  ;;  %vm3585_vm7 = vcmp.gt.s32.totalorder %v3584_v1, 0  ;;  %v6900_v53 = vld [vmem:[#allocation41_spill] sm:$0xff] }
 0x15a   : > { %v5588_v60 = vsub.s32 %v5492_v34, %v3520_v48  ;;  %v2865_v35 = vsel %vm2864_vm5, 1, %v6880_v16  ;;  %v2885_v49 = vadd.s32 %v2883_v51, %v2877_v58  ;;  %v3586_v41 = vsel %vm3585_vm7, %v3584_v1, 0  ;;  %v6901_v48 = vld [vmem:[#allocation42_spill] sm:$0xff] }
 0x15b   : > { %v2887_v27 = vsel %vm2886_vm6, 1, %v6880_v16  ;;  %v3588_v57 = vand.u32 31, %v3586_v41  ;;  %v5596_v50 = vmul.u32 %v3315_v55, %v6900_v53  ;;  %v5601_v34 = vmul.u32 %v6813_v22, %v6900_v53 }
 0x15c   : > { %v5604_v51 = vmul.u32 %v3315_v55, %v6901_v48  ;;  %v5606_v1 = vadd.s32 4294967294, %v2750_v36  ;;  %v2867_v58 = vadd.s32 %v2865_v35, %v2863_v12  ;;  %v3582_v43 = vor.u32 8388608, %v3581_v3 }
 0x15d   : > { %v5608_v38 = vsub.s32 32, %v3588_v57  ;;  %v1155_v5 = vadd.f32 %v1154_v30, %v1110_v23  ;;  %vm3522_vm8 = vcmp.lt.s32.totalorder %v5588_v60, 0  ;;  %v2889_v32 = vadd.s32 %v2887_v27, %v2885_v49 }
 0x15e   : > { %v5611_v4 = vshrl.u32 %v3586_v41, 5  ;;  %v3591_v33 = vshll.u32 %v6866_v40, %v3588_v57  ;;  %v3594_v22 = vshll.u32 %v6867_v24, %v3588_v57  ;;  %v3597_v12 = vshll.u32 %v6869_v18, %v3588_v57 }
 0x15f   : > { %v3592_v55 = vshrl.u32 %v6867_v24, %v5608_v38  ;;  %v3595_v36 = vshrl.u32 %v6869_v18, %v5608_v38  ;;  %v3598_v3 = vshrl.u32 %v6870_v59, %v5608_v38  ;;  %v3523_v35 = vsub.s32 0, %v5588_v60 }
 0x160   : > { %v2879_v49 = vshrl.u32 %v5543_v0, 16  ;;  %v3600_v41 = vshll.u32 %v6870_v59, %v3588_v57  ;;  %v3601_v23 = vshrl.u32 %v6872_v61, %v5608_v38  ;;  %v2857_v30 = vshrl.u32 %v5562_v54, 16 }
 0x161   : > { %v5628_v27 = vor.u32 %v3592_v55, %v3591_v33  ;;  %v5630_v8 = vor.u32 %v3595_v36, %v3594_v22  ;;  %v5632_v15 = vor.u32 %v3598_v3, %v3597_v12  ;;  %v2815_v26 = vshrl.u32 %v6866_v40, %v5454_v20  ;;  %v5649_v55 = vpop.f32.mrf.mxu0  ;;  %v1158_v12 = vpop.f32.mrf.mxu1 }
 0x162   : > { %v3602_v46 = vor.u32 %v3601_v23, %v3600_v41  ;;  %v3603_v42 = vshll.u32 %v6872_v61, %v3588_v57  ;;  %v3604_v0 = vshrl.u32 %v6871_v28, %v5608_v38  ;;  %vm4045_vm9 = vcmp.lt.s32.totalorder %v5606_v1, 0 }
 0x163   : > { %v2859_v19 = vshrl.u32 %v5564_v39, 16  ;;  %v2868_v54 = vadd.s32 %v2867_v58, %v2857_v30  ;;  %v2890_v33 = vadd.s32 %v2889_v32, %v2879_v49  ;;  %vm3606_vm10 = vcmp.lt.s32.totalorder %v5611_v4, 1 }
 0x164   : > { %v3605_v22 = vor.u32 %v3604_v0, %v3603_v42  ;;  %vm3609_vm11 = vcmp.lt.s32.totalorder %v5611_v4, 4  ;;  %v3614_v20 = vsel %vm3606_vm10, %v5628_v27, %v5630_v8  ;;  %v5647_v57 = vshll.u32 %v3582_v43, 8 }
 0x165   : > { %v2881_v36 = vshrl.u32 %v5566_v37, 16  ;;  %vm3608_vm12 = vcmp.lt.s32.totalorder %v5611_v4, 3  ;;  %v3615_v32 = vsel %vm3609_vm11, %v3602_v46, 920167782  ;;  %v3618_v42 = vsel %vm3606_vm10, %v5630_v8, %v5632_v15 }
 0x166   : > { %v2836_v39 = vsel %vm2834_vm15, %v5481_v52, 2102212464  ;;  %vm3607_vm13 = vcmp.lt.s32.totalorder %v5611_v4, 2  ;;  %v3616_v43 = vsel %vm3608_vm12, %v5632_v15, %v3615_v32  ;;  %v3619_v58 = vsel %vm3609_vm11, %v3605_v22, 1326507024 }
 0x167   : > { %v5668_v3 = vadd.s32 %v2868_v54, %v2859_v19  ;;  %v2891_v49 = vadd.s32 %v2890_v33, %v2881_v36  ;;  %v3617_v41 = vsel %vm3607_vm13, %v3614_v20, %v3616_v43  ;;  %v3620_v23 = vsel %vm3608_vm12, %v3602_v46, %v3619_v58 }
 0x168   : > { %v3621_v52 = vsel %vm3607_vm13, %v3618_v42, %v3620_v23  ;;  %v3623_v30 = vand.u32 65535, %v5647_v57  ;;  %v3647_v0 = vand.u32 65535, %v3617_v41  ;;  %v3648_v32 = vshrl.u32 %v3617_v41, 16 }
 0x169   : > { %v3524_v19 = vsel %vm3522_vm8, %v3523_v35, %v5588_v60  ;;  %v6902_v54 = vshll.u32 %v5566_v37, 16  ;;  %v3625_v22 = vand.u32 65535, %v3621_v52  ;;  %v3626_v20 = vshrl.u32 %v3621_v52, 16  ;;  %v1253_v29 = vpop.f32.mrf.mxu0  ;;  %v1281_v10 = vpop.f32.mrf.mxu1 }
 0x16a   : > { %v2835_v46 = vsel %vm2831_vm14, %v2815_v26, %v5474_v21  ;;  %v2837_v36 = vsel %vm2833_vm1, %v5479_v6, %v2836_v39  ;;  %v3624_v42 = vshrl.u32 %v5647_v57, 16  ;;  %v5692_v43 = vmul.u32 %v3648_v32, %v3623_v30 }
 0x16b   : > { %v5683_v33 = vadd.s32 %v5577_v63, %v6902_v54  ;;  %v2895_v37 = vadd.s32 1, %v2891_v49  ;;  %v5696_v63 = vmul.u32 %v3626_v20, %v3623_v30  ;;  %v1187_v35 = vadd.f32 %v1186_v25, %v1155_v5 }
 0x16c   : > { %v5698_v58 = vmul.u32 %v3625_v22, %v3624_v42  ;;  %v3649_v41 = vmul.u32 %v3647_v0, %v3623_v30  ;;  %v5700_v23 = vmul.u32 %v3647_v0, %v3624_v42  ;;  %v3653_v21 = vshll.u32 %v5692_v43, 16 }
 0x16d   : > { %vm2894_vm15 = vc.u32 %v5668_v3, %v5683_v33  ;;  %v6903_v6 = vshrl.u32 %v5537_v9, 16  ;;  %v3627_v52 = vmul.u32 %v3625_v22, %v3623_v30  ;;  %v3631_v54 = vshll.u32 %v5696_v63, 16 }
 0x16e   : > { %v5713_v25 = vsel %vm4045_vm9, 0, %v5606_v1  ;;  %v3525_v5 = vclz %v3524_v19  ;;  %v2838_v0 = vsel %vm2832_vm2, %v2835_v46, %v2837_v36  ;;  %vm3657_vm14 = vc.u32 %v3649_v41, %v3653_v21 }
 0x16f   : > { %v5706_v26 = vmul.u32 %v6903_v6, %v6901_v48  ;;  %v2896_v9 = vsel %vm2894_vm15, %v2895_v37, %v2891_v49  ;;  %vm3635_vm1 = vc.u32 %v3627_v52, %v3631_v54  ;;  %v3637_v30 = vadd.s32 %v3631_v54, %v3627_v52 }
 0x170   : > { %v1218_v22 = vadd.f32 %v1217_v31, %v1187_v35  ;;  %v3633_v6 = vshll.u32 %v5698_v58, 16  ;;  %v3655_v39 = vshll.u32 %v5700_v23, 16  ;;  %v3658_v1 = vsel %vm3657_vm14, 1, %v6880_v16 }
 0x171   : > { %v5723_v19 = vadd.s32 %v3653_v21, %v3649_v41  ;;  %v2892_v46 = vmul.u32 %v5503_v7, %v2838_v0  ;;  %v3636_v36 = vsel %vm3635_vm1, 1, %v6880_v16  ;;  %v3652_v44 = vmul.u32 %v3648_v32, %v3624_v42 }
 0x172   : > { %v1254_v17 = vadd.f32 %v1253_v29, %v1218_v22  ;;  %v2758_v49 = vsub.s32 4294967266, %v5713_v25  ;;  %v3630_v37 = vmul.u32 %v3626_v20, %v3624_v42  ;;  %vm3639_vm2 = vc.u32 %v3637_v30, %v3633_v6 }
 0x173   : > { %vm3661_vm0 = vc.u32 %v5723_v19, %v3655_v39  ;;  %v4059_v31 = vadd.s32 4294967294, %v3525_v5  ;;  %v5731_v35 = vadd.s32 %v2896_v9, %v2892_v46  ;;  %v3660_v41 = vadd.s32 %v3658_v1, %v3652_v44  ;;  %v1191_v9 = vpop.f32.mrf.mxu2 }
 0x174   : > { %v5733_v21 = vadd.f32 %v1281_v10, %v1254_v17  ;;  %v2754_v7 = vsub.s32 32, %v5713_v25  ;;  %v3638_v52 = vadd.s32 %v3636_v36, %v3630_v37  ;;  %v3662_v32 = vsel %vm3661_vm0, 1, %v6880_v16 }
 0x175   : > { %v1159_v29 = vadd.f32 %v1158_v12, %v5649_v55  ;;  %v6904_v20 = vand.u32 65535, %v5560_v11  ;;  %v6905_v54 = vshrl.u32 %v5560_v11, 16  ;;  %v3640_v0 = vsel %vm3639_vm2, 1, %v6880_v16 }
 0x176   : > { %v2738_v22 = vadd.s32 %v5329_v56, %v5315_v45  ;;  %vm4060_vm3 = vcmp.lt.s32.totalorder %v4059_v31, 0  ;;  %v2898_v6 = vadd.s32 536870912, %v5731_v35  ;;  %v3664_v1 = vadd.s32 %v3662_v32, %v3660_v41 }
 0x177   : > { %v5741_v42 = vmul.u32 %v6904_v20, %v6900_v53  ;;  %v5746_v5 = vmul.u32 %v6905_v54, %v6900_v53  ;;  %v6906_v44 = vmov %v6904_v20  ;;  %v6907_v12 = vmov %v6905_v54 }
 0x178   : > { %v5751_v17 = vmul.u32 %v6906_v44, %v6901_v48  ;;  %v5758_v30 = vmul.u32 %v6907_v12, %v6901_v48  ;;  %v2759_v53 = vadd.s32 127, %v2758_v49  ;;  %v2957_v10 = vand.u32 2139095040, %v5733_v21  ;;  %v1223_v44 = vpop.f32.mrf.mxu3 }
 0x179   : > { %v6908_v46 = vshll.u32 %v5601_v34, 16  ;;  %v2756_v11 = vshrl.u32 %v2738_v22, %v2754_v7  ;;  %v3642_v48 = vadd.s32 %v3640_v0, %v3638_v52  ;;  %v1192_v37 = vadd.f32 %v1191_v9, %v1159_v29  ;;  %v1257_v0 = vpop.f32.mrf.mxu0 }
 0x17a   : > { %v3590_v45 = vshrl.u32 %v6866_v40, %v5608_v38  ;;  %v3611_v56 = vsel %vm3609_vm11, %v5632_v15, 2102212464  ;;  %v3654_v49 = vshrl.u32 %v5692_v43, 16  ;;  %v2958_v41 = vshrl.u32 %v2957_v10, 23 }
 0x17b   : > { %vm5767_vm4 = vc.u32 %v5596_v50, %v6908_v46  ;;  %v2755_v32 = vshll.u32 %v5506_v62, %v5713_v25  ;;  %v2760_v20 = vshll.u32 %v2759_v53, 23  ;;  %v5779_v54 = vsel %vm4060_vm3, 0, %v4059_v31  ;;  %v1285_v53 = vpop.f32.mrf.mxu1 }
 0x17c   : > { %v3632_v7 = vshrl.u32 %v5696_v63, 16  ;;  %v5782_v52 = vshrl.u32 %v2898_v6, 30  ;;  %v3610_v38 = vsel %vm3606_vm10, %v3590_v45, %v5628_v27  ;;  %v3665_v29 = vadd.s32 %v3664_v1, %v3654_v49 }
 0x17d   : > { %v4049_v15 = vadd.s32 4294967169, %v2958_v41  ;;  %v3612_v43 = vsel %vm3608_vm12, %v5630_v8, %v3611_v56  ;;  %v1224_v25 = vadd.f32 %v1223_v44, %v1192_v37  ;;  %v6825_v31 = vand.u32 2147483647, %v5733_v21 }
 0x17e   : > { %6911 = vst [vmem:[#allocation41_spill] sm:$0xff] %v5782_v52  ;;  %v3643_v62 = vadd.s32 %v3642_v48, %v3632_v7  ;;  %v6912_v63 = vmov %v6908_v46  ;;  %v5796_v12 = vor.u32 %v2756_v11, %v2755_v32  ;;  %v3656_v27 = vshrl.u32 %v5700_v23, 16 }
 0x17f   : > { %v5794_v9 = vadd.s32 %v6912_v63, %v5596_v50  ;;  %v2964_v22 = vadd.s32 1, %v4049_v15  ;;  %v2761_v6 = vor.u32 4788187, %v2760_v20  ;;  %v3533_v1 = vsub.s32 4294967266, %v5779_v54 }
 0x180   : > { %v3634_v8 = vshrl.u32 %v5698_v58, 16  ;;  %v1258_v10 = vadd.f32 %v1257_v0, %v1224_v25  ;;  %v2900_v46 = vshll.u32 %v5782_v52, 30  ;;  %v3613_v48 = vsel %vm3607_vm13, %v3610_v38, %v3612_v43 }
 0x181   : > { %v3666_v37 = vadd.s32 %v3665_v29, %v3656_v27  ;;  %vm2965_vm5 = vcmp.gt.s32.totalorder %v2964_v22, 0  ;;  %v2961_v11 = vand.u32 8388607, %v6825_v31  ;;  %v5813_v58 = vsel %vm5767_vm4, 1, %v6880_v16 }
 0x182   : > { %v5804_v50 = vadd.s32 %v3643_v62, %v3634_v8  ;;  %v2966_v45 = vsel %vm2965_vm5, %v2964_v22, 0  ;;  %v5808_v56 = vadd.f32 %v1285_v53, %v1258_v10  ;;  %v2764_v49 = vcvt.s32.f32 %v5796_v12 }
 0x183   : > { %v3513_v4 = vadd.s32 %v5432_v47, %v5419_v2  ;;  %v2968_v41 = vand.u32 31, %v2966_v45  ;;  %v2762_v32 = vand.u32 2147483647, %v2761_v6  ;;  %v3529_v20 = vsub.s32 32, %v5779_v54 }
 0x184   : > { %v3534_v7 = vadd.s32 127, %v3533_v1  ;;  %v5822_v38 = vadd.s32 %v5723_v19, %v3655_v39  ;;  %v5825_v29 = vsub.s32 %v5731_v35, %v2900_v46  ;;  %v3667_v36 = vmul.u32 %v5647_v57, %v3613_v48 }
 0x185   : > { %v3670_v44 = vadd.s32 1, %v3666_v37  ;;  %v5828_v15 = vsub.s32 32, %v2968_v41  ;;  %v2962_v2 = vor.u32 8388608, %v2961_v11  ;;  %v5832_v47 = vshrl.u32 %v2966_v45, 5 }
 0x186   : > { %vm3669_vm6 = vc.u32 %v5804_v50, %v5822_v38  ;;  %v3732_v0 = vand.u32 2139095040, %v5808_v56  ;;  %v2971_v23 = vshll.u32 %v6866_v40, %v2968_v41  ;;  %v2974_v19 = vshll.u32 %v6867_v24, %v2968_v41 }
 0x187   : > { %v2972_v39 = vshrl.u32 %v6867_v24, %v5828_v15  ;;  %v2977_v57 = vshll.u32 %v6869_v18, %v2968_v41  ;;  %v2975_v35 = vshrl.u32 %v6869_v18, %v5828_v15  ;;  %v2978_v43 = vshrl.u32 %v6870_v59, %v5828_v15 }
 0x188   : > { %v2980_v62 = vshll.u32 %v6870_v59, %v2968_v41  ;;  %v2981_v25 = vshrl.u32 %v6872_v61, %v5828_v15  ;;  %v3671_v63 = vsel %vm3669_vm6, %v3670_v44, %v3666_v37  ;;  %v2983_v27 = vshll.u32 %v6872_v61, %v2968_v41 }
 0x189   : > { %v5847_v12 = vor.u32 %v2972_v39, %v2971_v23  ;;  %v2984_v22 = vshrl.u32 %v6871_v28, %v5828_v15  ;;  %v5852_v53 = vor.u32 %v2975_v35, %v2974_v19  ;;  %v5854_v6 = vor.u32 %v2978_v43, %v2977_v57 }
 0x18a   : > { %v2982_v1 = vor.u32 %v2981_v25, %v2980_v62  ;;  %v3733_v8 = vshrl.u32 %v3732_v0, 23  ;;  %v3535_v10 = vshll.u32 %v3534_v7, 23  ;;  %v2903_v46 = vsub.s32 0, %v5825_v29 }
 0x18b   : > { %v2985_v48 = vor.u32 %v2984_v22, %v2983_v27  ;;  %vm2986_vm7 = vcmp.lt.s32.totalorder %v5832_v47, 1  ;;  %v5858_v37 = vadd.s32 %v3671_v63, %v3667_v36  ;;  %vm2989_vm8 = vcmp.lt.s32.totalorder %v5832_v47, 4 }
 0x18c   : > { %v2994_v11 = vsel %vm2986_vm7, %v5847_v12, %v5852_v53  ;;  %v5865_v45 = vshll.u32 %v2962_v2, 8  ;;  %vm2988_vm9 = vcmp.lt.s32.totalorder %v5832_v47, 3  ;;  %v2995_v41 = vsel %vm2989_vm8, %v2982_v1, 920167782 }
 0x18d   : > { %v2998_v7 = vsel %vm2986_vm7, %v5852_v53, %v5854_v6  ;;  %v2999_v36 = vsel %vm2989_vm8, %v2985_v48, 1326507024  ;;  %vm2987_vm10 = vcmp.lt.s32.totalorder %v5832_v47, 2  ;;  %v2996_v44 = vsel %vm2988_vm9, %v5854_v6, %v2995_v41 }
 0x18e   : > { %v3000_v2 = vsel %vm2988_vm9, %v2982_v1, %v2999_v36  ;;  %v4064_v0 = vadd.s32 4294967169, %v3733_v8  ;;  %v2765_v23 = vmul.f32 %v2764_v49, %v2762_v32  ;;  %vm2902_vm11 = vcmp.lt.s32.totalorder %v5825_v29, 0 }
 0x18f   : > { %v2997_v39 = vsel %vm2987_vm10, %v2994_v11, %v2996_v44  ;;  %v3001_v19 = vsel %vm2987_vm10, %v2998_v7, %v3000_v2  ;;  %v3531_v57 = vshrl.u32 %v3513_v4, %v3529_v20  ;;  %v3536_v25 = vor.u32 4788187, %v3535_v10  ;;  %v6913_v20 = vld [vmem:[#allocation36_spill] sm:$0xff] }
 0x190   : > { %v3005_v35 = vand.u32 65535, %v3001_v19  ;;  %v3006_v43 = vshrl.u32 %v3001_v19, 16  ;;  %v3027_v62 = vand.u32 65535, %v2997_v39  ;;  %v3003_v63 = vand.u32 65535, %v5865_v45 }
 0x191   : > { %v3004_v27 = vshrl.u32 %v5865_v45, 16  ;;  %v3028_v22 = vshrl.u32 %v2997_v39, 16  ;;  %v3530_v49 = vshll.u32 %v5588_v60, %v5779_v54  ;;  %v2904_v32 = vsel %vm2902_vm11, %v2903_v46, %v5825_v29 }
 0x192   : > { %v3673_v1 = vadd.s32 536870912, %v5858_v37  ;;  %v3739_v8 = vadd.s32 1, %v4064_v0  ;;  %v5895_v4 = vadd.s32 %v5813_v58, %v5706_v26  ;;  %vm2646_vm12 = vcmp.lt.s32.totalorder %v6913_v20, 0 }
 0x193   : > { %v2766_v10 = vxor.u32 2147483648, %v2765_v23  ;;  %v3008_v48 = vmul.u32 %v3006_v43, %v3003_v63  ;;  %v5898_v11 = vmul.u32 %v3005_v35, %v3004_v27  ;;  %v3532_v41 = vor.u32 %v3531_v57, %v3530_v49 }
 0x194   : > { %v3030_v7 = vmul.u32 %v3028_v22, %v3003_v63  ;;  %v5900_v36 = vmul.u32 %v3027_v62, %v3004_v27  ;;  %v6828_v60 = vand.u32 2147483647, %v5808_v56  ;;  %v3537_v54 = vand.u32 2147483647, %v3536_v25 }
 0x195   : > { %v2905_v46 = vclz %v2904_v32  ;;  %v3007_v44 = vmul.u32 %v3005_v35, %v3003_v63  ;;  %v3011_v2 = vshll.u32 %v3008_v48, 16  ;;  %v5903_v0 = vshrl.u32 %v3673_v1, 30 }
 0x196   : > { %v3010_v26 = vmul.u32 %v3006_v43, %v3004_v27  ;;  %v3033_v58 = vshll.u32 %v3030_v7, 16  ;;  %vm3740_vm13 = vcmp.gt.s32.totalorder %v3739_v8, 0  ;;  %v3013_v39 = vshll.u32 %v5898_v11, 16 }
 0x197   : > { %6914 = vst [vmem:[#allocation42_spill] sm:$0xff] %v5903_v0  ;;  %vm3015_vm15 = vc.u32 %v3007_v44, %v3011_v2  ;;  %v3017_v19 = vadd.s32 %v3011_v2, %v3007_v44  ;;  %v3029_v31 = vmul.u32 %v3027_v62, %v3003_v63  ;;  %v3032_v49 = vmul.u32 %v3028_v22, %v3004_v27  ;;  %v6915_v27 = vld [vmem:[#allocation15_spill] sm:$0xff] }
 0x198   : > { %v3016_v57 = vsel %vm3015_vm15, 1, %v6880_v16  ;;  %v3035_v55 = vshll.u32 %v5900_v36, 16  ;;  %v3736_v25 = vand.u32 8388607, %v6828_v60  ;;  %v3675_v43 = vshll.u32 %v5903_v0, 30 }
 0x199   : > { %v3018_v35 = vadd.s32 %v3016_v57, %v3010_v26  ;;  %vm3019_vm14 = vc.u32 %v3017_v19, %v3013_v39  ;;  %vm3037_vm1 = vc.u32 %v3029_v31, %v3033_v58  ;;  %v3039_v32 = vadd.s32 %v3033_v58, %v3029_v31  ;;  %v6916_v58 = vld [vmem:[#allocation19_spill] sm:$0xff] }
 0x19a   : > { %v3020_v1 = vsel %vm3019_vm14, 1, %v6880_v16  ;;  %v3038_v52 = vsel %vm3037_vm1, 1, %v6880_v16  ;;  %v3741_v62 = vsel %vm3740_vm13, %v3739_v8, 0  ;;  %v3539_v63 = vcvt.s32.f32 %v3532_v41 }
 0x19b   : > { %v3040_v44 = vadd.s32 %v3038_v52, %v3032_v49  ;;  %vm3041_vm2 = vc.u32 %v3039_v32, %v3035_v55  ;;  %v5917_v2 = vsel %vm2646_vm12, %v2766_v10, %v2765_v23  ;;  %v3743_v31 = vand.u32 31, %v3741_v62 }
 0x19c   : > { %v3042_v26 = vsel %vm3041_vm2, 1, %v6880_v16  ;;  %v2394_v39 = vshrl.u32 %v6916_v58, 16  ;;  %v5921_v19 = vmul.f32 %v3539_v63, %v3537_v54  ;;  %v5923_v57 = vadd.s32 4294967294, %v2905_v46 }
 0x19d   : > { %v3022_v60 = vadd.s32 %v3020_v1, %v3018_v35  ;;  %v3044_v8 = vadd.s32 %v3042_v26, %v3040_v44  ;;  %v5926_v52 = vsub.s32 %v5858_v37, %v3675_v43  ;;  %v3034_v41 = vshrl.u32 %v3030_v7, 16 }
 0x19e   : > { %v3737_v49 = vor.u32 8388608, %v3736_v25  ;;  %v5928_v22 = vsub.s32 32, %v3743_v31  ;;  %v2970_v23 = vshrl.u32 %v6866_v40, %v5828_v15  ;;  %v2991_v10 = vsel %vm2989_vm8, %v5854_v6, 2102212464 }
 0x19f   : > { %v3012_v54 = vshrl.u32 %v3008_v48, 16  ;;  %v3746_v46 = vshll.u32 %v6866_v40, %v3743_v31  ;;  %v3045_v63 = vadd.s32 %v3044_v8, %v3034_v41  ;;  %v3749_v37 = vshll.u32 %v6867_v24, %v3743_v31 }
 0x1a0   : > { %v3747_v35 = vshrl.u32 %v6867_v24, %v5928_v22  ;;  %v3750_v7 = vshrl.u32 %v6869_v18, %v5928_v22  ;;  %v3014_v25 = vshrl.u32 %v5898_v11, 16  ;;  %v3036_v15 = vshrl.u32 %v5900_v36, 16 }
 0x1a1   : > { %v3023_v43 = vadd.s32 %v3022_v60, %v3012_v54  ;;  %v5943_v1 = vshrl.u32 %v3741_v62, 5  ;;  %v6917_v6 = vand.u32 2147483647, %v6913_v20  ;;  %vm4048_vm3 = vcmp.lt.s32.totalorder %v5923_v57, 0 }
 0x1a2   : > { %v5952_v44 = vor.u32 %v3747_v35, %v3746_v46  ;;  %v5954_v24 = vor.u32 %v3750_v7, %v3749_v37  ;;  %v3752_v26 = vshll.u32 %v6869_v18, %v3743_v31  ;;  %v3753_v11 = vshrl.u32 %v6870_v59, %v5928_v22 }
 0x1a3   : > { %vm5947_vm0 = vcmp.le.f32.partialorder %v6917_v6, 0.7853982  ;;  %v3755_v36 = vshll.u32 %v6870_v59, %v3743_v31  ;;  %v3756_v60 = vshrl.u32 %v6872_v61, %v5928_v22  ;;  %v3758_v62 = vshll.u32 %v6872_v61, %v3743_v31 }
 0x1a4   : > { %v3759_v8 = vshrl.u32 %v6871_v28, %v5928_v22  ;;  %v2990_v41 = vsel %vm2986_vm7, %v2970_v23, %v5847_v12  ;;  %v2992_v18 = vsel %vm2988_vm9, %v5852_v53, %v2991_v10  ;;  %v3046_v54 = vadd.s32 %v3045_v63, %v3036_v15 }
 0x1a5   : > { %v5971_v46 = vor.u32 %v3753_v11, %v3752_v26  ;;  %v5973_v59 = vadd.s32 %v3023_v43, %v3014_v25  ;;  %v3757_v35 = vor.u32 %v3756_v60, %v3755_v36  ;;  %vm3761_vm4 = vcmp.lt.s32.totalorder %v5943_v1, 1 }
 0x1a6   : > { %v3760_v37 = vor.u32 %v3759_v8, %v3758_v62  ;;  %v5976_v61 = vadd.s32 %v3039_v32, %v3035_v55  ;;  %vm3764_vm5 = vcmp.lt.s32.totalorder %v5943_v1, 4  ;;  %v3769_v28 = vsel %vm3761_vm4, %v5952_v44, %v5954_v24 }
 0x1a7   : > { %v5983_v12 = vshll.u32 %v3737_v49, 8  ;;  %vm3763_vm6 = vcmp.lt.s32.totalorder %v5943_v1, 3  ;;  %v3770_v53 = vsel %vm3764_vm5, %v3757_v35, 920167782  ;;  %v3773_v55 = vsel %vm3761_vm4, %v5954_v24, %v5971_v46 }
 0x1a8   : > { %v3774_v32 = vsel %vm3764_vm5, %v3760_v37, 1326507024  ;;  %v3050_v31 = vadd.s32 1, %v3046_v54  ;;  %vm3762_vm7 = vcmp.lt.s32.totalorder %v5943_v1, 2  ;;  %v3771_v49 = vsel %vm3763_vm6, %v5971_v46, %v3770_v53 }
 0x1a9   : > { %v3775_v23 = vsel %vm3763_vm6, %v3757_v35, %v3774_v32  ;;  %v2993_v10 = vsel %vm2987_vm10, %v2990_v41, %v2992_v18  ;;  %vm3049_vm8 = vc.u32 %v5973_v59, %v5976_v61  ;;  %v3772_v63 = vsel %vm3762_vm7, %v3769_v28, %v3771_v49  ;;  %v6921_v28 = vld [vmem:[#allocation26_spill] sm:$0xff] }
 0x1aa   : > { %v3776_v7 = vsel %vm3762_vm7, %v3773_v55, %v3775_v23  ;;  %v3778_v25 = vand.u32 65535, %v5983_v12  ;;  %v3779_v43 = vshrl.u32 %v5983_v12, 16  ;;  %v6014_v47 = vsel %vm5947_vm0, %v6913_v20, %v5917_v2 }
 0x1ab   : > { %v3780_v15 = vand.u32 65535, %v3776_v7  ;;  %v3781_v6 = vshrl.u32 %v3776_v7, 16  ;;  %v3802_v11 = vand.u32 65535, %v3772_v63  ;;  %v3803_v36 = vshrl.u32 %v3772_v63, 16 }
 0x1ac   : > { %v6019_v60 = vadd.s32 %v5683_v33, %v5668_v3  ;;  %v3051_v62 = vsel %vm3049_vm8, %v3050_v31, %v3046_v54  ;;  %v6024_v18 = vsel %vm4048_vm3, 0, %v5923_v57  ;;  %v3047_v35 = vmul.u32 %v5865_v45, %v2993_v10 }
 0x1ad   : > { %v3783_v8 = vmul.u32 %v3781_v6, %v3778_v25  ;;  %v3784_v41 = vmul.u32 %v3780_v15, %v3779_v43  ;;  %v3805_v2 = vmul.u32 %v3803_v36, %v3778_v25  ;;  %v6920_v37 = vshll.u32 %v6916_v58, 16  ;;  %v6934_v58 = vld [vmem:[#allocation35_spill] sm:$0xff] }
 0x1ae   : > { %vm3677_vm10 = vcmp.lt.s32.totalorder %v5926_v52, 0  ;;  %v3678_v3 = vsub.s32 0, %v5926_v52  ;;  %v3782_v33 = vmul.u32 %v3780_v15, %v3778_v25  ;;  %v6036_v55 = vadd.s32 %v3051_v62, %v3047_v35 }
 0x1af   : > { %vm6030_vm9 = vc.u32 %v6921_v28, %v6920_v37  ;;  %v3786_v54 = vshll.u32 %v3783_v8, 16  ;;  %v3804_v57 = vmul.u32 %v3802_v11, %v3778_v25  ;;  %v3806_v32 = vmul.u32 %v3802_v11, %v3779_v43 }
 0x1b0   : > { %v3808_v31 = vshll.u32 %v3805_v2, 16  ;;  %v3785_v45 = vmul.u32 %v3781_v6, %v3779_v43  ;;  %v3788_v49 = vshll.u32 %v3784_v41, 16  ;;  %v3807_v63 = vmul.u32 %v3803_v36, %v3779_v43 }
 0x1b1   : > { %vm3790_vm11 = vc.u32 %v3782_v33, %v3786_v54  ;;  %v3792_v23 = vadd.s32 %v3786_v54, %v3782_v33  ;;  %v2400_v7 = vsel %vm6030_vm9, 1, %v6880_v16  ;;  %v3679_v15 = vsel %vm3677_vm10, %v3678_v3, %v5926_v52  ;;  %v6924_v33 = vld [vmem:[#allocation21_spill] sm:$0xff]  ;;  %v6925_v3 = vld [vmem:[#allocation27_spill] sm:$0xff] }
 0x1b2   : > { %v3791_v10 = vsel %vm3790_vm11, 1, %v6880_v16  ;;  %vm3812_vm13 = vc.u32 %v3804_v57, %v3808_v31  ;;  %v3810_v11 = vshll.u32 %v3806_v32, 16  ;;  %v3814_v35 = vadd.s32 %v3808_v31, %v3804_v57 }
 0x1b3   : > { %v3793_v62 = vadd.s32 %v3791_v10, %v3785_v45  ;;  %vm3794_vm15 = vc.u32 %v3792_v23, %v3788_v49  ;;  %v3813_v25 = vsel %vm3812_vm13, 1, %v6880_v16  ;;  %v3053_v43 = vadd.s32 536870912, %v6036_v55 }
 0x1b4   : > { %v3795_v6 = vsel %vm3794_vm15, 1, %v6880_v16  ;;  %v3815_v37 = vadd.s32 %v3813_v25, %v3807_v63  ;;  %v3787_v36 = vshrl.u32 %v3783_v8, 16  ;;  %v2413_v53 = vshll.u32 %v6924_v33, 16  ;;  %v6926_v25 = vld [vmem:[#allocation20_spill] sm:$0xff] }
 0x1b5   : > { %v3797_v28 = vadd.s32 %v3795_v6, %v3793_v62  ;;  %v2913_v54 = vsub.s32 4294967266, %v6024_v18  ;;  %v3680_v26 = vclz %v3679_v15  ;;  %vm3816_vm14 = vc.u32 %v3814_v35, %v3810_v11 }
 0x1b6   : > { %v2402_v45 = vadd.s32 %v2400_v7, %v6925_v3  ;;  %v3745_v49 = vshrl.u32 %v6866_v40, %v5928_v22  ;;  %v3789_v23 = vshrl.u32 %v3784_v41, 16  ;;  %v3817_v57 = vsel %vm3816_vm14, 1, %v6880_v16  ;;  %v6928_v7 = vld [vmem:[#allocation23_spill] sm:$0xff] }
 0x1b7   : > { %v3798_v10 = vadd.s32 %v3797_v28, %v3787_v36  ;;  %v3809_v31 = vshrl.u32 %v3805_v2, 16  ;;  %v3819_v63 = vadd.s32 %v3817_v57, %v3815_v37  ;;  %vm2417_vm1 = vc.u32 %v6926_v25, %v2413_v53 }
 0x1b8   : > { %v2419_v8 = vadd.s32 %v2413_v53, %v6926_v25  ;;  %v6056_v62 = vshrl.u32 %v3053_v43, 30  ;;  %v3766_v15 = vsel %vm3764_vm5, %v5971_v46, 2102212464  ;;  %v2415_v6 = vshll.u32 %v6928_v7, 16  ;;  %v6930_v53 = vld [vmem:[#allocation24_spill] sm:$0xff] }
 0x1b9   : > { %v2418_v40 = vsel %vm2417_vm1, 1, %v6880_v16  ;;  %v6063_v22 = vadd.s32 %v3798_v10, %v3789_v23  ;;  %v3811_v41 = vshrl.u32 %v3806_v32, 16  ;;  %v3820_v36 = vadd.s32 %v3819_v63, %v3809_v31 }
 0x1ba   : > { %6927 = vst [vmem:[#allocation36_spill] sm:$0xff] %v6056_v62  ;;  %v6929_v2 = vshrl.u32 %v6915_v27, 16  ;;  %v2914_v28 = vadd.s32 127, %v2913_v54  ;;  %v3765_v43 = vsel %vm3761_vm4, %v3745_v49, %v5952_v44  ;;  %v2420_v3 = vadd.s32 %v2418_v40, %v6930_v53  ;;  %v6936_v53 = vld [vmem:[#allocation37_spill] sm:$0xff] }
 0x1bb   : > { %vm2421_vm2 = vc.u32 %v2419_v8, %v2415_v6  ;;  %v3767_v46 = vsel %vm3763_vm6, %v5954_v24, %v3766_v15  ;;  %v6074_v57 = vadd.s32 %v3814_v35, %v3810_v11  ;;  %v3821_v23 = vadd.s32 %v3820_v36, %v3811_v41  ;;  %v6931_v24 = vld [vmem:[#allocation28_spill] sm:$0xff]  ;;  %v6933_v35 = vld [vmem:[#allocation33_spill] sm:$0xff] }
 0x1bc   : > { %v2403_v37 = vadd.s32 %v2402_v45, %v6929_v2  ;;  %v2422_v32 = vsel %vm2421_vm2, 1, %v6880_v16  ;;  %v4062_v10 = vadd.s32 4294967294, %v3680_v26  ;;  %v3055_v27 = vshll.u32 %v6056_v62, 30  ;;  %v6935_v2 = vld [vmem:[#allocation30_spill] sm:$0xff] }
 0x1bd   : > { %v2414_v54 = vshrl.u32 %v6924_v33, 16  ;;  %v2424_v45 = vadd.s32 %v2422_v32, %v2420_v3  ;;  %vm3824_vm3 = vc.u32 %v6063_v22, %v6074_v57  ;;  %v3825_v44 = vadd.s32 1, %v3821_v23  ;;  %v6939_v32 = vld [vmem:[#allocation29_spill] sm:$0xff] }
 0x1be   : > { %v6083_v49 = vadd.s32 %v2403_v37, %v2394_v39  ;;  %v6932_v11 = vshll.u32 %v6931_v24, 16  ;;  %v3768_v26 = vsel %vm3762_vm7, %v3765_v43, %v3767_v46  ;;  %v2416_v31 = vshrl.u32 %v6928_v7, 16  ;;  %v1343_v7 = vpop.f32.mrf.mxu2  ;;  %v1387_v43 = vpop.f32.mrf.mxu3  ;;  %v6938_v46 = vld [vmem:[#allocation31_spill] sm:$0xff] }
 0x1bf   : > { %v2425_v63 = vadd.s32 %v2424_v45, %v2414_v54  ;;  %v2909_v25 = vsub.s32 32, %v6024_v18  ;;  %v2915_v15 = vshll.u32 %v2914_v28, 23  ;;  %v6093_v40 = vadd.s32 %v2419_v8, %v2415_v6  ;;  %v6937_v8 = vld [vmem:[#allocation18_spill] sm:$0xff] }
 0x1c0   : > { %vm3174_vm4 = vc.u32 %v6933_v35, %v6932_v11  ;;  %vm4063_vm5 = vcmp.lt.s32.totalorder %v4062_v10, 0  ;;  %v3826_v41 = vsel %vm3824_vm3, %v3825_v44, %v3821_v23  ;;  %v3188_v37 = vshll.u32 %v6935_v2, 16  ;;  %v6940_v35 = vld [vmem:[#allocation32_spill] sm:$0xff] }
 0x1c1   : > { %v3175_v33 = vsel %vm3174_vm4, 1, %v6880_v16  ;;  %v2426_v36 = vadd.s32 %v2425_v63, %v2416_v31  ;;  %vm3421_vm6 = vcmp.lt.s32.totalorder %v6936_v53, 0  ;;  %v6099_v1 = vsub.s32 %v6036_v55, %v3055_v27  ;;  %v6941_v63 = vld [vmem:[#allocation14_spill] sm:$0xff] }
 0x1c2   : > { %v3177_v39 = vadd.s32 %v3175_v33, %v6934_v58  ;;  %v3822_v3 = vmul.u32 %v5983_v12, %v3768_v26  ;;  %vm2429_vm7 = vc.u32 %v6083_v49, %v6093_v40  ;;  %v3167_v6 = vshrl.u32 %v6937_v8, 16  ;;  %v6942_v33 = vld [vmem:[#allocation17_spill] sm:$0xff] }
 0x1c3   : > { %v2430_v28 = vadd.s32 1, %v2426_v36  ;;  %v3190_v23 = vshll.u32 %v6938_v46, 16  ;;  %vm3192_vm8 = vc.u32 %v6939_v32, %v3188_v37  ;;  %v3194_v54 = vadd.s32 %v3188_v37, %v6939_v32 }
 0x1c4   : > { %v2910_v55 = vshll.u32 %v5825_v29, %v6024_v18  ;;  %v6110_v27 = vadd.s32 %v3826_v41, %v3822_v3  ;;  %v3178_v45 = vadd.s32 %v3177_v39, %v3167_v6  ;;  %v3193_v12 = vsel %vm3192_vm8, 1, %v6880_v16 }
 0x1c5   : > { %v2911_v44 = vshrl.u32 %v6019_v60, %v2909_v25  ;;  %v2431_v11 = vsel %vm2429_vm7, %v2430_v28, %v2426_v36  ;;  %v3195_v26 = vadd.s32 %v3193_v12, %v6940_v35  ;;  %vm3196_vm9 = vc.u32 %v3194_v54, %v3190_v23 }
 0x1c6   : > { %v6116_v31 = vsel %vm4063_vm5, 0, %v4062_v10  ;;  %v6943_v58 = vmul.u32 %v6941_v63, %v6942_v33  ;;  %v3169_v29 = vshrl.u32 %v6931_v24, 16  ;;  %v3197_v18 = vsel %vm3196_vm9, 1, %v6880_v16 }
 0x1c7   : > { %v2916_v39 = vor.u32 4788187, %v2915_v15  ;;  %v3058_v41 = vsub.s32 0, %v6099_v1  ;;  %v3189_v60 = vshrl.u32 %v6935_v2, 16  ;;  %v3199_v25 = vadd.s32 %v3197_v18, %v3195_v26  ;;  %v6947_v18 = vld [vmem:[#allocation47_spill] sm:$0xff] }
 0x1c8   : > { %v2432_v37 = vadd.s32 %v2431_v11, %v6943_v58  ;;  %vm3057_vm10 = vcmp.lt.s32.totalorder %v6099_v1, 0  ;;  %v3828_v36 = vadd.s32 536870912, %v6110_v27  ;;  %v6127_v3 = vadd.s32 %v3178_v45, %v3169_v29 }
 0x1c9   : > { %v6131_v8 = vmul.f32 %v6014_v47, %v6014_v47  ;;  %v3688_v24 = vsub.s32 4294967266, %v6116_v31  ;;  %v3191_v15 = vshrl.u32 %v6938_v46, 16  ;;  %v3200_v6 = vadd.s32 %v3199_v25, %v3189_v60  ;;  %v6948_v60 = vld [vmem:[#allocation43_spill] sm:$0xff] }
 0x1ca   : > { %v2433_v10 = vadd.s32 536870912, %v2432_v37  ;;  %v2912_v28 = vor.u32 %v2911_v44, %v2910_v55  ;;  %v6137_v2 = vadd.s32 %v3194_v54, %v3190_v23  ;;  %v2568_v12 = vshll.u32 %v5353_v13, 16  ;;  %v1351_v55 = vpop.f32.mrf.mxu2  ;;  %v1391_v44 = vpop.f32.mrf.mxu3 }
 0x1cb   : > { %v6944_v45 = vxor.u32 2147483648, %v5921_v19  ;;  %v3059_v35 = vsel %vm3057_vm10, %v3058_v41, %v6099_v1  ;;  %v1388_v26 = vadd.f32 %v1387_v43, %v1343_v7  ;;  %v3201_v63 = vadd.s32 %v3200_v6, %v3191_v15 }
 0x1cc   : > { %v6135_v32 = vshrl.u32 %v2433_v10, 30  ;;  %v2917_v46 = vand.u32 2147483647, %v2916_v39  ;;  %v6148_v33 = vshrl.u32 %v3828_v36, 30  ;;  %vm3204_vm11 = vc.u32 %v6127_v3, %v6137_v2  ;;  %v1419_v39 = vpop.f32.mrf.mxu0 }
 0x1cd   : > { %v6145_v11 = vsel %vm3421_vm6, %v6944_v45, %v5921_v19  ;;  %v3668_v54 = vadd.s32 %v5822_v38, %v5804_v50  ;;  %v3689_v58 = vadd.s32 127, %v3688_v24  ;;  %v3205_v19 = vadd.s32 1, %v3201_v63  ;;  %v6950_v45 = vld [vmem:[#allocation22_spill] sm:$0xff] }
 0x1ce   : > { %6945 = vst [vmem:[#allocation15_spill] sm:$0xff] %v6148_v33  ;;  %v2435_v23 = vshll.u32 %v6135_v32, 30  ;;  %v6946_v29 = vshll.u32 %v5200_v14, 16  ;;  %v2919_v7 = vcvt.s32.f32 %v2912_v28  ;;  %v3060_v43 = vclz %v3059_v35  ;;  %v6949_v28 = vld [vmem:[#allocation16_spill] sm:$0xff] }
 0x1cf   : > { %vm2572_vm15 = vc.u32 %v6948_v60, %v2568_v12  ;;  %v3684_v25 = vsub.s32 32, %v6116_v31  ;;  %v6162_v36 = vadd.f32 %v1391_v44, %v1351_v55  ;;  %v3206_v10 = vsel %vm3204_vm11, %v3205_v19, %v3201_v63  ;;  %v1450_v63 = vpop.f32.mrf.mxu1 }
 0x1d0   : > { %vm2554_vm13 = vc.u32 %v6947_v18, %v6946_v29  ;;  %v6158_v41 = vsub.s32 %v2432_v37, %v2435_v23  ;;  %v6165_v38 = vmul.f32 %v2919_v7, %v2917_v46  ;;  %v3830_v24 = vshll.u32 %v6148_v33, 30  ;;  %v6952_v46 = vld [vmem:[#allocation50_spill] sm:$0xff] }
 0x1d1   : > { %v2555_v50 = vsel %vm2554_vm13, 1, %v6880_v16  ;;  %v3690_v6 = vshll.u32 %v3689_v58, 23  ;;  %v1420_v37 = vadd.f32 %v1419_v39, %v1388_v26  ;;  %v6951_v35 = vmul.u32 %v6949_v28, %v6950_v45  ;;  %v6954_v45 = vld [vmem:[#allocation44_spill] sm:$0xff] }
 0x1d2   : > { %vm2437_vm14 = vcmp.lt.s32.totalorder %v6158_v41, 0  ;;  %v2438_v15 = vsub.s32 0, %v6158_v41  ;;  %v2573_v55 = vsel %vm2572_vm15, 1, %v6880_v16  ;;  %v4050_v44 = vadd.s32 4294967294, %v3060_v43 }
 0x1d3   : > { %v3207_v23 = vadd.s32 %v3206_v10, %v6951_v35  ;;  %v2557_v29 = vadd.s32 %v2555_v50, %v6952_v46  ;;  %v2574_v18 = vadd.s32 %v2568_v12, %v6948_v60  ;;  %v3685_v7 = vshll.u32 %v5926_v52, %v6116_v31  ;;  %v6953_v10 = vld [vmem:[#allocation40_spill] sm:$0xff]  ;;  %v6955_v35 = vld [vmem:[#allocation45_spill] sm:$0xff]  ;;  %v6956_v12 = vld [vmem:[#allocation11_spill] sm:$0xff] }
 0x1d4   : > { %v2439_v19 = vsel %vm2437_vm14, %v2438_v15, %v6158_v41  ;;  %v3686_v33 = vshrl.u32 %v3668_v54, %v3684_v25  ;;  %v6180_v39 = vsub.s32 %v6110_v27, %v3830_v24  ;;  %v2547_v28 = vshrl.u32 %v6953_v10, 16  ;;  %v6957_v27 = vld [vmem:[#allocation46_spill] sm:$0xff] }
 0x1d5   : > { %v2440_v58 = vclz %v2439_v19  ;;  %v3208_v26 = vadd.s32 536870912, %v3207_v23  ;;  %v2570_v43 = vshll.u32 %v6954_v45, 16  ;;  %v2575_v62 = vadd.s32 %v2573_v55, %v6955_v35 }
 0x1d6   : > { %v3691_v15 = vor.u32 4788187, %v3690_v6  ;;  %v1451_v0 = vadd.f32 %v1450_v63, %v1420_v37  ;;  %vm4051_vm1 = vcmp.lt.s32.totalorder %v4050_v44, 0  ;;  %v2428_v52 = vadd.s32 %v6093_v40, %v6083_v49 }
 0x1d7   : > { %v4038_v50 = vadd.s32 4294967294, %v2440_v58  ;;  %v6185_v46 = vshrl.u32 %v3208_v26, 30  ;;  %v2558_v31 = vadd.s32 %v2557_v29, %v2547_v28  ;;  %vm2576_vm2 = vc.u32 %v2574_v18, %v2570_v43 }
 0x1d8   : > { %vm2336_vm3 = vcmp.lt.s32.totalorder %v6956_v12, 0  ;;  %vm2801_vm4 = vcmp.lt.s32.totalorder %v6957_v27, 0  ;;  %v2549_v60 = vshrl.u32 %v5200_v14, 16  ;;  %v2577_v25 = vsel %vm2576_vm2, 1, %v6880_v16 }
 0x1d9   : > { %vm4039_vm5 = vcmp.lt.s32.totalorder %v4038_v50, 0  ;;  %v3210_v54 = vshll.u32 %v6185_v46, 30  ;;  %vm3832_vm7 = vcmp.lt.s32.totalorder %v6180_v39, 0  ;;  %v2569_v6 = vshrl.u32 %v5353_v13, 16 }
 0x1da   : > { %v2443_v24 = vsel %vm4039_vm5, 0, %v4038_v50  ;;  %v2579_v37 = vadd.s32 %v2577_v25, %v2575_v62  ;;  %v3833_v49 = vsub.s32 0, %v6180_v39  ;;  %v6958_v19 = vand.u32 2147483647, %v6956_v12  ;;  %v1486_v50 = vpop.f32.mrf.mxu2 }
 0x1db   : > { %v2444_v40 = vsub.s32 32, %v2443_v24  ;;  %v2448_v55 = vsub.s32 4294967266, %v2443_v24  ;;  %v6197_v63 = vsub.s32 %v3207_v23, %v3210_v54  ;;  %v2445_v14 = vshll.u32 %v6158_v41, %v2443_v24 }
 0x1dc   : > { %vm6201_vm8 = vcmp.le.f32.partialorder %v6958_v19, 0.7853982  ;;  %v6206_v58 = vadd.s32 %v2558_v31, %v2549_v60  ;;  %v2571_v26 = vshrl.u32 %v6954_v45, 16  ;;  %v2580_v13 = vadd.s32 %v2579_v37, %v2569_v6 }
 0x1dd   : > { %v2446_v62 = vshrl.u32 %v2428_v52, %v2444_v40  ;;  %v2449_v10 = vadd.s32 127, %v2448_v55  ;;  %vm3212_vm9 = vcmp.lt.s32.totalorder %v6197_v63, 0  ;;  %v3213_v23 = vsub.s32 0, %v6197_v63 }
 0x1de   : > { %v2921_v28 = vxor.u32 2147483648, %v6165_v38  ;;  %v3687_v35 = vor.u32 %v3686_v33, %v3685_v7  ;;  %v2458_v54 = vsub.s32 4, %v6135_v32  ;;  %v2581_v25 = vadd.s32 %v2580_v13, %v2571_v26  ;;  %v1514_v13 = vpop.f32.mrf.mxu3 }
 0x1df   : > { %v2447_v19 = vor.u32 %v2446_v62, %v2445_v14  ;;  %v2450_v41 = vshll.u32 %v2449_v10, 23  ;;  %v3214_v31 = vsel %vm3212_vm9, %v3213_v23, %v6197_v63  ;;  %v6214_v60 = vadd.s32 %v2574_v18, %v2570_v43  ;;  %v6961_v62 = vld [vmem:[#allocation12_spill] sm:$0xff] }
 0x1e0   : > { %v3692_v45 = vand.u32 2147483647, %v3691_v15  ;;  %v6217_v52 = vsel %vm4051_vm1, 0, %v4050_v44  ;;  %v3834_v24 = vsel %vm3832_vm7, %v3833_v49, %v6180_v39  ;;  %v3215_v6 = vclz %v3214_v31  ;;  %v6963_v31 = vld [vmem:[#allocation38_spill] sm:$0xff] }
 0x1e1   : > { %v1487_v33 = vadd.f32 %v1486_v50, %v1451_v0  ;;  %v2451_v7 = vor.u32 4788187, %v2450_v41  ;;  %vm2584_vm10 = vc.u32 %v6206_v58, %v6214_v60  ;;  %v2585_v37 = vadd.s32 1, %v2581_v25  ;;  %v6962_v41 = vld [vmem:[#allocation34_spill] sm:$0xff] }
 0x1e2   : > { %v6227_v18 = vsel %vm2801_vm4, %v2921_v28, %v6165_v38  ;;  %v3694_v43 = vcvt.s32.f32 %v3687_v35  ;;  %v2459_v44 = vsel %vm2336_vm3, %v2458_v54, %v6135_v32  ;;  %v4053_v15 = vadd.s32 4294967294, %v3215_v6 }
 0x1e3   : > { %v3068_v49 = vsub.s32 4294967266, %v6217_v52  ;;  %v3835_v40 = vclz %v3834_v24  ;;  %v2452_v0 = vand.u32 2147483647, %v2451_v7  ;;  %v2454_v55 = vcvt.s32.f32 %v2447_v19 }
 0x1e4   : > { %v6233_v14 = vmul.f32 %v3694_v43, %v3692_v45  ;;  %v6237_v26 = vadd.s32 %v5976_v61, %v5973_v59  ;;  %vm4054_vm11 = vcmp.lt.s32.totalorder %v4053_v15, 0  ;;  %v2586_v38 = vsel %vm2584_vm10, %v2585_v37, %v2581_v25 }
 0x1e5   : > { %vm3111_vm13 = vcmp.lt.s32.totalorder %v6961_v62, 0  ;;  %v6240_v10 = vadd.f32 %v1514_v13, %v1487_v33  ;;  %v2455_v32 = vmul.f32 %v2454_v55, %v2452_v0  ;;  %v2461_v23 = vsel %vm6201_vm8, 0, %v2459_v44 }
 0x1e6   : > { %v3218_v28 = vsel %vm4054_vm11, 0, %v4053_v15  ;;  %v3064_v35 = vsub.s32 32, %v6217_v52  ;;  %v3203_v50 = vadd.s32 %v6137_v2, %v6127_v3  ;;  %v6247_v61 = vadd.s32 127, %v3068_v49 }
 0x1e7   : > { %v3219_v54 = vsub.s32 32, %v3218_v28  ;;  %v3223_v59 = vsub.s32 4294967266, %v3218_v28  ;;  %v4065_v19 = vadd.s32 4294967294, %v3835_v40  ;;  %v2456_v25 = vxor.u32 2147483648, %v2455_v32 }
 0x1e8   : > { %v6964_v45 = vmul.u32 %v6962_v41, %v6963_v31  ;;  %v2478_v6 = vadd.s32 3, %v2461_v23  ;;  %v3220_v33 = vshll.u32 %v6197_v63, %v3218_v28  ;;  %v6965_v2 = vand.u32 2147483647, %v6961_v62 }
 0x1e9   : > { %v3221_v7 = vshrl.u32 %v3203_v50, %v3219_v54  ;;  %v3224_v37 = vadd.s32 127, %v3223_v59  ;;  %v2457_v3 = vsel %vm2336_vm3, %v2456_v25, %v2455_v32  ;;  %v3343_v49 = vshll.u32 %v5746_v5, 16 }
 0x1ea   : > { %v2587_v24 = vadd.s32 %v2586_v38, %v6964_v45  ;;  %vm6259_vm15 = vcmp.le.f32.partialorder %v6965_v2, 0.7853982  ;;  %v6267_v63 = vsel %vm6201_vm8, %v6956_v12, %v2457_v3  ;;  %v3233_v55 = vsub.s32 4, %v6185_v46  ;;  %v6300_v3 = vpop.f32.mrf.mxu1 }
 0x1eb   : > { %v3222_v40 = vor.u32 %v3221_v7, %v3220_v33  ;;  %v3225_v0 = vshll.u32 %v3224_v37, 23  ;;  %v6273_v38 = vadd.s32 %v6074_v57, %v6063_v22  ;;  %v2462_v32 = vmul.f32 %v6267_v63, %v6267_v63  ;;  %v6298_v37 = vpop.f32.mrf.mxu0 }
 0x1ec   : > { %v2588_v15 = vadd.s32 536870912, %v2587_v24  ;;  %vm4066_vm14 = vcmp.lt.s32.totalorder %v4065_v19, 0  ;;  %v6279_v28 = vand.u32 3, %v2478_v6  ;;  %v6968_v50 = vshll.u32 %v5604_v51, 16 }
 0x1ed   : > { %v3226_v29 = vor.u32 4788187, %v3225_v0  ;;  %v2463_v54 = vmul.f32 -0.001358992, %v2462_v32  ;;  %v2470_v59 = vmul.f32 -0.00019511016, %v2462_v32  ;;  %vm3347_vm2 = vc.u32 %v5741_v42, %v3343_v49 }
 0x1ee   : > { %v6277_v23 = vshrl.u32 %v2588_v15, 30  ;;  %vm3329_vm1 = vc.u32 %v5794_v9, %v6968_v50  ;;  %v3229_v57 = vcvt.s32.f32 %v3222_v40  ;;  %v3234_v41 = vsel %vm3111_vm13, %v3233_v55, %v6185_v46  ;;  %v6315_v55 = vld [vmem:[%s6750_s2] sm:$0x1f] }
 0x1ef   : > { %v3227_v22 = vand.u32 2147483647, %v3226_v29  ;;  %v6290_v31 = vadd.s32 %v3343_v49, %v5741_v42  ;;  %v2464_v45 = vadd.f32 0.041655596, %v2463_v54  ;;  %v2471_v6 = vadd.f32 0.008332121, %v2470_v59 }
 0x1f0   : > { %v2590_v25 = vshll.u32 %v6277_v23, 30  ;;  %v3330_v9 = vsel %vm3329_vm1, 1, %v6880_v16  ;;  %v6296_v7 = vsel %vm4066_vm14, 0, %v4065_v19  ;;  %v3345_v15 = vshll.u32 %v5751_v17, 16 }
 0x1f1   : > { %v3230_v2 = vmul.f32 %v3229_v57, %v3227_v22  ;;  %v3348_v46 = vsel %vm3347_vm2, 1, %v6880_v16  ;;  %v2465_v42 = vmul.f32 %v2464_v45, %v2462_v32  ;;  %v2472_v49 = vmul.f32 %v2471_v6, %v2462_v32 }
 0x1f2   : > { %v6292_v33 = vsub.s32 %v2587_v24, %v2590_v25  ;;  %v3236_v19 = vsel %vm6259_vm15, 0, %v3234_v41  ;;  %v3332_v0 = vadd.s32 %v3330_v9, %v5895_v4  ;;  %vm3351_vm5 = vc.u32 %v6290_v31, %v3345_v15 }
 0x1f3   : > { %v3231_v40 = vxor.u32 2147483648, %v3230_v2  ;;  %v2466_v29 = vadd.f32 -0.4999988, %v2465_v42  ;;  %v2473_v50 = vadd.f32 -0.16666654, %v2472_v49  ;;  %vm2484_vm7 = vcmp.eq.s32.totalorder %v6279_v28, 2 }
 0x1f4   : > { %vm2592_vm3 = vcmp.lt.s32.totalorder %v6292_v33, 0  ;;  %v2593_v24 = vsub.s32 0, %v6292_v33  ;;  %v3350_v59 = vadd.s32 %v3348_v46, %v5758_v30  ;;  %vm2481_vm8 = vcmp.eq.s32.totalorder %v6279_v28, 0 }
 0x1f5   : > { %v3232_v4 = vsel %vm3111_vm13, %v3231_v40, %v3230_v2  ;;  %v2583_v25 = vadd.s32 %v6214_v60, %v6206_v58  ;;  %v3352_v57 = vsel %vm3351_vm5, 1, %v6880_v16  ;;  %v2467_v41 = vmul.f32 %v2466_v29, %v2462_v32  ;;  %v1490_v29 = vpop.f32.mrf.mxu2 }
 0x1f6   : > { %v2594_v54 = vsel %vm2592_vm3, %v2593_v24, %v6292_v33  ;;  %v2474_v45 = vmul.f32 %v2473_v50, %v2462_v32  ;;  %vm2480_vm9 = vcmp.lt.s32.totalorder %v6279_v28, 2  ;;  %v6330_v30 = vsel %vm6259_vm15, %v6961_v62, %v3232_v4  ;;  %v6341_v50 = vpop.f32.mrf.mxu3 }
 0x1f7   : > { %v2595_v22 = vclz %v2594_v54  ;;  %v3322_v6 = vshrl.u32 %v5601_v34, 16  ;;  %vm2477_vm10 = vweird.f32 %v6956_v12  ;;  %v3885_v9 = vperm.slane %v6315_v55, 0 }
 0x1f8   : > { %v3237_v58 = vmul.f32 %v6330_v30, %v6330_v30  ;;  %v3344_v60 = vshrl.u32 %v5746_v5, 16  ;;  %v2468_v32 = vadd.f32 1.0, %v2467_v41  ;;  %v2475_v2 = vadd.f32 1.0, %v2474_v45 }
 0x1f9   : > { %v4041_v16 = vadd.s32 4294967294, %v2595_v22  ;;  %v3333_v46 = vadd.s32 %v3332_v0, %v3322_v6  ;;  %v3354_v42 = vadd.s32 %v3352_v57, %v3350_v59  ;;  %v3324_v24 = vshrl.u32 %v5604_v51, 16  ;;  %v6343_v0 = vpop.f32.mrf.mxu0  ;;  %v6345_v59 = vpop.f32.mrf.mxu1 }
 0x1fa   : > { %v3238_v44 = vmul.f32 -0.001358992, %v3237_v58  ;;  %v3245_v49 = vmul.f32 -0.00019511016, %v3237_v58  ;;  %v2476_v34 = vmul.f32 %v2475_v2, %v6267_v63  ;;  %v2485_v40 = vxor.u32 2147483648, %v2468_v32 }
 0x1fb   : > { %vm4042_vm11 = vcmp.lt.s32.totalorder %v4041_v16, 0  ;;  %v3355_v4 = vadd.s32 %v3354_v42, %v3344_v60  ;;  %v3253_v41 = vadd.s32 3, %v3236_v19  ;;  %v6347_v6 = vadd.s32 %v3333_v46, %v3324_v24 }
 0x1fc   : > { %v2598_v54 = vsel %vm4042_vm11, 0, %v4041_v16  ;;  %v3239_v5 = vadd.f32 0.041655596, %v3238_v44  ;;  %v3246_v22 = vadd.f32 0.008332121, %v3245_v49  ;;  %v2482_v45 = vxor.u32 2147483648, %v2476_v34 }
 0x1fd   : > { %v2599_v57 = vsub.s32 32, %v2598_v54  ;;  %v2603_v51 = vsub.s32 4294967266, %v2598_v54  ;;  %v3346_v63 = vshrl.u32 %v5751_v17, 16  ;;  %v2486_v2 = vsel %vm2484_vm7, %v2485_v40, %v2476_v34 }
 0x1fe   : > { %v3240_v16 = vmul.f32 %v3239_v5, %v3237_v58  ;;  %v3247_v43 = vmul.f32 %v3246_v22, %v3237_v58  ;;  %v2483_v19 = vsel %vm2481_vm8, %v2468_v32, %v2482_v45  ;;  %v2600_v42 = vshll.u32 %v6292_v33, %v2598_v54  ;;  %v6969_v54 = vld [vmem:[#allocation13_spill] sm:$0xff] }
 0x1ff   : > { %v2601_v60 = vshrl.u32 %v2583_v25, %v2599_v57  ;;  %v2604_v44 = vadd.s32 127, %v2603_v51  ;;  %v3356_v49 = vadd.s32 %v3355_v4, %v3346_v63  ;;  %v2487_v46 = vsel %vm2480_vm9, %v2483_v19, %v2486_v2 }
 0x200   : > { %v3241_v24 = vadd.f32 -0.4999988, %v3240_v16  ;;  %v3248_v13 = vadd.f32 -0.16666654, %v3247_v43  ;;  %v6364_v34 = vadd.s32 %v6290_v31, %v3345_v15  ;;  %v2488_v25 = vsel %vm2477_vm10, nan, %v2487_v46  ;;  %v6971_v16 = vld [vmem:[#allocation39_spill] sm:$0xff] }
 0x201   : > { %v1425_v32 = vadd.f32 %v6298_v37, %v6162_v36  ;;  %v2602_v40 = vor.u32 %v2601_v60, %v2600_v42  ;;  %v2605_v33 = vshll.u32 %v2604_v44, 23  ;;  %vm2491_vm13 = vcmp.lt.s32.totalorder %v6969_v54, 0  ;;  %v6972_v60 = vld [vmem:[#allocation51_spill] sm:$0xff] }
 0x202   : > { %v3895_v28 = vmul.f32 %v3885_v9, %v2488_v25  ;;  %v3242_v4 = vmul.f32 %v3241_v24, %v3237_v58  ;;  %v3249_v43 = vmul.f32 %v3248_v13, %v3237_v58  ;;  %vm3359_vm15 = vc.u32 %v6347_v6, %v6364_v34  ;;  %v6381_v13 = vpop.f32.mrf.mxu2  ;;  %v6383_v58 = vpop.f32.mrf.mxu3 }
 0x203   : > { %v3843_v17 = vsub.s32 4294967266, %v6296_v7  ;;  %v1457_v12 = vadd.f32 %v6300_v3, %v1425_v32  ;;  %v2606_v31 = vor.u32 4788187, %v2605_v33  ;;  %v3360_v15 = vadd.s32 1, %v3356_v49 }
 0x204   : > { %v3066_v36 = vshrl.u32 %v6237_v26, %v3064_v35  ;;  %v3905_v37 = vadd.f32 %v3895_v28, %v6240_v10  ;;  %v3243_v5 = vadd.f32 1.0, %v3242_v4  ;;  %v3250_v22 = vadd.f32 1.0, %v3249_v43  ;;  %v6394_v35 = vpop.f32.mrf.mxu0  ;;  %v7001_v4 = vld [vmem:[#allocation42_spill] sm:$0xff] }
 0x205   : > { %v3254_v57 = vand.u32 3, %v3253_v41  ;;  %v2607_v45 = vand.u32 2147483647, %v2606_v31  ;;  %v2609_v51 = vcvt.s32.f32 %v2602_v40  ;;  %v3361_v63 = vsel %vm3359_vm15, %v3360_v15, %v3356_v49  ;;  %v6396_v41 = vpop.f32.mrf.mxu1 }
 0x206   : > { %v6970_v3 = vshll.u32 %v6247_v61, 23  ;;  %3915 = vst [vmem:[%s6390_s6] sm:$0xff] %v3905_v37  ;;  %v3251_v26 = vmul.f32 %v3250_v22, %v6330_v30  ;;  %v3260_v10 = vxor.u32 2147483648, %v3243_v5  ;;  %v6973_v19 = vmul.u32 %v6971_v16, %v6972_v60 }
 0x207   : > { %v6974_v44 = vand.u32 2147483647, %v6936_v53  ;;  %v3844_v49 = vadd.s32 127, %v3843_v17  ;;  %v1491_v46 = vadd.f32 %v1490_v29, %v1457_v12  ;;  %vm3252_vm1 = vweird.f32 %v6961_v62  ;;  %v6983_v29 = vld [vmem:[#allocation49_spill] sm:$0xff] }
 0x208   : > { %v6387_v2 = vor.u32 4788187, %v6970_v3  ;;  %v3362_v42 = vadd.s32 %v3361_v63, %v6973_v19  ;;  %v2610_v30 = vmul.f32 %v2609_v51, %v2607_v45  ;;  %v3839_v24 = vsub.s32 32, %v6296_v7 }
 0x209   : > { %vm6403_vm14 = vcmp.le.f32.partialorder %v6974_v44, 0.7853982  ;;  %v3257_v25 = vxor.u32 2147483648, %v3251_v26  ;;  %v6977_v32 = vand.u32 2147483647, %v6969_v54  ;;  %vm3576_vm5 = vcmp.lt.s32.totalorder %v6983_v29, 0 }
 0x20a   : > { %v3363_v33 = vadd.s32 536870912, %v3362_v42  ;;  %v6980_v28 = vand.u32 2147483647, %v6957_v27  ;;  %vm3255_vm7 = vcmp.lt.s32.totalorder %v3254_v57, 2  ;;  %vm3256_vm8 = vcmp.eq.s32.totalorder %v3254_v57, 0 }
 0x20b   : > { %vm6411_vm2 = vcmp.le.f32.partialorder %v6977_v32, 0.7853982  ;;  %vm3259_vm9 = vcmp.eq.s32.totalorder %v3254_v57, 2  ;;  %v2611_v43 = vxor.u32 2147483648, %v2610_v30  ;;  %v3258_v17 = vsel %vm3256_vm8, %v3243_v5, %v3257_v25 }
 0x20c   : > { %vm6417_vm3 = vcmp.le.f32.partialorder %v6980_v28, 0.7853982  ;;  %v3261_v12 = vsel %vm3259_vm9, %v3260_v10, %v3251_v26  ;;  %v2613_v31 = vsub.s32 4, %v6277_v23  ;;  %v6423_v15 = vshrl.u32 %v3363_v33, 30 }
 0x20d   : > { %v3845_v37 = vshll.u32 %v3844_v49, 23  ;;  %v1519_v22 = vadd.f32 %v6341_v50, %v1491_v46  ;;  %v3262_v45 = vsel %vm3255_vm7, %v3258_v17, %v3261_v12  ;;  %v2612_v51 = vsel %vm2491_vm13, %v2611_v43, %v2610_v30  ;;  %v6459_v46 = vpop.f32.mrf.mxu2 }
 0x20e   : > { %v6984_v63 = vshll.u32 %v6099_v1, %v6217_v52  ;;  %v3263_v57 = vsel %vm3252_vm1, nan, %v3262_v45  ;;  %v6436_v5 = vsel %vm6411_vm2, %v6969_v54, %v2612_v51  ;;  %v3365_v26 = vshll.u32 %v6423_v15, 30 }
 0x20f   : > { %v6985_v50 = vand.u32 2147483647, %v6983_v29  ;;  %v3696_v16 = vxor.u32 2147483648, %v6233_v14  ;;  %v3841_v1 = vshrl.u32 %v6273_v38, %v3839_v24  ;;  %v3900_v52 = vmul.f32 %v3885_v9, %v3263_v57  ;;  %v6461_v9 = vpop.f32.mrf.mxu3 }
 0x210   : > { %v3067_v3 = vor.u32 %v3066_v36, %v6984_v63  ;;  %v2617_v62 = vmul.f32 %v6436_v5, %v6436_v5  ;;  %v3072_v36 = vand.u32 2147483647, %v6387_v2  ;;  %v3840_v60 = vshll.u32 %v6180_v39, %v6296_v7  ;;  %v6469_v2 = vpop.f32.mrf.mxu0 }
 0x211   : > { %vm6441_vm10 = vcmp.le.f32.partialorder %v6985_v50, 0.7853982  ;;  %v2614_v19 = vsel %vm2491_vm13, %v2613_v31, %v6277_v23  ;;  %v6457_v44 = vsub.s32 %v3362_v42, %v3365_v26  ;;  %v3846_v49 = vor.u32 4788187, %v3845_v37  ;;  %v6471_v23 = vpop.f32.mrf.mxu1 }
 0x212   : > { %v3910_v38 = vadd.f32 %v3900_v52, %v1519_v22  ;;  %v2618_v30 = vmul.f32 -0.001358992, %v2617_v62  ;;  %v2625_v24 = vmul.f32 -0.00019511016, %v2617_v62  ;;  %v6467_v39 = vsel %vm6403_vm14, %v6936_v53, %v6145_v11 }
 0x213   : > { %v3074_v7 = vcvt.s32.f32 %v3067_v3  ;;  %vm3367_vm11 = vcmp.lt.s32.totalorder %v6457_v44, 0  ;;  %v3368_v42 = vsub.s32 0, %v6457_v44  ;;  %v3842_v25 = vor.u32 %v3841_v1, %v3840_v60  ;;  %v6991_v60 = vld [vmem:[#allocation25_spill] sm:$0xff] }
 0x214   : > { %3921 = vst [vmem:[%s6390_s6 + $0x28] sm:$0xff] %v3910_v38  ;;  %v2616_v32 = vsel %vm6411_vm2, 0, %v2614_v19  ;;  %v2619_v33 = vadd.f32 0.041655596, %v2618_v30  ;;  %v2626_v28 = vadd.f32 0.008332121, %v2625_v24  ;;  %v6482_v11 = vsel %vm6417_vm3, %v6957_v27, %v6227_v18 }
 0x215   : > { %v3697_v43 = vsel %vm3576_vm5, %v3696_v16, %v6233_v14  ;;  %v3075_v17 = vmul.f32 %v3074_v7, %v3072_v36  ;;  %v3369_v12 = vsel %vm3367_vm11, %v3368_v42, %v6457_v44  ;;  %v3847_v31 = vand.u32 2147483647, %v3846_v49  ;;  %v1749_v42 = vpop.f32.mrf.mxu2 }
 0x216   : > { %v2620_v37 = vmul.f32 %v2619_v33, %v2617_v62  ;;  %v2627_v22 = vmul.f32 %v2626_v28, %v2617_v62  ;;  %v3370_v40 = vclz %v3369_v12  ;;  %v6490_v45 = vmul.f32 %v6467_v39, %v6467_v39 }
 0x217   : > { %vm6835_vm13 = vcmp.lt.s32.totalorder %v5733_v21, 0  ;;  %v1591_v18 = vadd.f32 %v6345_v59, %v6343_v0  ;;  %v2633_v51 = vadd.s32 3, %v2616_v32  ;;  %v3849_v63 = vcvt.s32.f32 %v3842_v25  ;;  %v1793_v25 = vpop.f32.mrf.mxu3 }
 0x218   : > { %v2621_v3 = vadd.f32 -0.4999988, %v2620_v37  ;;  %v2628_v14 = vadd.f32 -0.16666654, %v2627_v22  ;;  %v4056_v57 = vadd.s32 4294967294, %v3370_v40  ;;  %v6497_v26 = vmul.f32 %v6482_v11, %v6482_v11 }
 0x219   : > { %v6502_v50 = vsel %vm6441_vm10, %v6983_v29, %v3697_v43  ;;  %v6988_v16 = vand.u32 2147483647, %v5733_v21  ;;  %v3076_v0 = vxor.u32 2147483648, %v3075_v17  ;;  %v3850_v59 = vmul.f32 %v3849_v63, %v3847_v31 }
 0x21a   : > { %v2622_v52 = vmul.f32 %v2621_v3, %v2617_v62  ;;  %v2629_v36 = vmul.f32 %v2628_v14, %v2617_v62  ;;  %vm4057_vm1 = vcmp.lt.s32.totalorder %v4056_v57, 0  ;;  %vm3266_vm2 = vcmp.lt.s32.totalorder %v6991_v60, 0 }
 0x21b   : > { %vm6506_vm15 = vcmp.le.f32.partialorder %v6988_v16, 0.7853982  ;;  %vm3731_vm7 = vcmp.lt.s32.totalorder %v5808_v56, 0  ;;  %v1623_v19 = vadd.f32 %v6381_v13, %v1591_v18  ;;  %v1595_v49 = vadd.f32 %v6396_v41, %v6394_v35  ;;  %v1693_v35 = vpop.f32.mrf.mxu0  ;;  %v1721_v41 = vpop.f32.mrf.mxu1 }
 0x21c   : > { %v2634_v38 = vand.u32 3, %v2633_v51  ;;  %v3373_v30 = vsel %vm4057_vm1, 0, %v4056_v57  ;;  %v2623_v24 = vadd.f32 1.0, %v2622_v52  ;;  %v2630_v7 = vadd.f32 1.0, %v2629_v36 }
 0x21d   : > { %v3358_v32 = vadd.s32 %v6364_v34, %v6347_v6  ;;  %v3374_v62 = vsub.s32 32, %v3373_v30  ;;  %v6519_v33 = vmul.f32 %v6502_v50, %v6502_v50  ;;  %v3077_v13 = vsel %vm6835_vm13, %v3076_v0, %v3075_v17 }
 0x21e   : > { %vm2632_vm8 = vweird.f32 %v6969_v54  ;;  %v3378_v28 = vsub.s32 4294967266, %v3373_v30  ;;  %v3851_v43 = vxor.u32 2147483648, %v3850_v59  ;;  %v2631_v12 = vmul.f32 %v2630_v7, %v6436_v5 }
 0x21f   : > { %v2640_v31 = vxor.u32 2147483648, %v2623_v24  ;;  %v3376_v37 = vshrl.u32 %v3358_v32, %v3374_v62  ;;  %v1654_v6 = vadd.f32 %v6383_v58, %v1623_v19  ;;  %vm2636_vm9 = vcmp.eq.s32.totalorder %v2634_v38, 0  ;;  %v1757_v32 = vpop.f32.mrf.mxu2  ;;  %v6995_v62 = vld [vmem:[#allocation48_spill] sm:$0xff] }
 0x220   : > { %v3375_v34 = vshll.u32 %v6457_v44, %v3373_v30  ;;  %v3379_v22 = vadd.s32 127, %v3378_v28  ;;  %v1628_v40 = vadd.f32 %v6459_v46, %v1595_v49  ;;  %v2637_v18 = vxor.u32 2147483648, %v2631_v12 }
 0x221   : > { %vm2639_vm11 = vcmp.eq.s32.totalorder %v2634_v38, 2  ;;  %v3388_v17 = vsub.s32 4, %v6423_v15  ;;  %v1690_v51 = vadd.f32 %v6469_v2, %v1654_v6  ;;  %v3886_v63 = vperm.slane %v6315_v55, 1 }
 0x222   : > { %v3377_v3 = vor.u32 %v3376_v37, %v3375_v34  ;;  %v3380_v5 = vshll.u32 %v3379_v22, 23  ;;  %v6534_v58 = vsel %vm6506_vm15, %v5733_v21, %v3077_v13  ;;  %vm2635_vm1 = vcmp.lt.s32.totalorder %v2634_v38, 2 }
 0x223   : > { %v2638_v44 = vsel %vm2636_vm9, %v2623_v24, %v2637_v18  ;;  %v2641_v14 = vsel %vm2639_vm11, %v2640_v31, %v2631_v12  ;;  %v1718_v46 = vadd.f32 %v6471_v23, %v1690_v51  ;;  %v6992_v16 = vand.u32 2147483647, %v6991_v60  ;;  %v1825_v12 = vpop.f32.mrf.mxu0  ;;  %v1856_v31 = vpop.f32.mrf.mxu1 }
 0x224   : > { %v2642_v57 = vsel %vm2635_vm1, %v2638_v44, %v2641_v14  ;;  %v3381_v2 = vor.u32 4788187, %v3380_v5  ;;  %v6545_v52 = vsel %vm3731_vm7, %v3851_v43, %v3850_v59  ;;  %v1660_v36 = vadd.f32 %v6461_v9, %v1628_v40  ;;  %v1797_v59 = vpop.f32.mrf.mxu3 }
 0x225   : > { %vm6539_vm13 = vcmp.le.f32.partialorder %v6992_v16, 0.7853982  ;;  %v2643_v19 = vsel %vm2632_vm8, nan, %v2642_v57  ;;  %v3389_v23 = vsel %vm3266_vm2, %v3388_v17, %v6423_v15  ;;  %v1794_v38 = vadd.f32 %v1793_v25, %v1749_v42  ;;  %v6996_v42 = vld [vmem:[#allocation52_spill] sm:$0xff] }
 0x226   : > { %v3896_v49 = vmul.f32 %v3886_v63, %v2643_v19  ;;  %v3382_v30 = vand.u32 2147483647, %v3381_v2  ;;  %v3384_v24 = vcvt.s32.f32 %v3377_v3  ;;  %v1694_v7 = vadd.f32 %v1693_v35, %v1660_v36 }
 0x227   : > { %v2768_v13 = vsub.s32 4, %v6995_v62  ;;  %v2773_v9 = vmul.f32 -0.001358992, %v6131_v8  ;;  %v2780_v54 = vmul.f32 -0.00019511016, %v6131_v8  ;;  %v3391_v15 = vsel %vm6539_vm13, 0, %v3389_v23 }
 0x228   : > { %v3906_v28 = vadd.f32 %v3896_v49, %v1718_v46  ;;  %v3385_v43 = vmul.f32 %v3384_v24, %v3382_v30  ;;  %v3543_v25 = vsub.s32 4, %v6996_v42  ;;  %v6561_v37 = vadd.f32 %v1721_v41, %v1694_v7  ;;  %v1892_v7 = vpop.f32.mrf.mxu2 }
 0x229   : > { %v2769_v35 = vsel %vm2646_vm12, %v2768_v13, %v6995_v62  ;;  %v2774_v6 = vadd.f32 0.041655596, %v2773_v9  ;;  %v2781_v34 = vadd.f32 0.008332121, %v2780_v54  ;;  %v3548_v17 = vmul.f32 -0.001358992, %v6490_v45 }
 0x22a   : > { %3916 = vst [vmem:[%s6390_s6 + $0x8] sm:$0xff] %v3906_v28  ;;  %v3386_v22 = vxor.u32 2147483648, %v3385_v43  ;;  %v2771_v40 = vsel %vm5947_vm0, 0, %v2769_v35  ;;  %v3544_v18 = vsel %vm3421_vm6, %v3543_v25, %v6996_v42  ;;  %v3408_v51 = vadd.s32 3, %v3391_v15 }
 0x22b   : > { %v2775_v41 = vmul.f32 %v2774_v6, %v6131_v8  ;;  %v2782_v3 = vmul.f32 %v2781_v34, %v6131_v8  ;;  %v2788_v5 = vadd.s32 3, %v2771_v40  ;;  %v1826_v14 = vadd.f32 %v1825_v12, %v1794_v38  ;;  %v1862_v15 = vpop.f32.mrf.mxu1 }
 0x22c   : > { %v3387_v44 = vsel %vm3266_vm2, %v3386_v22, %v3385_v43  ;;  %v3549_v46 = vadd.f32 0.041655596, %v3548_v17  ;;  %v3555_v48 = vmul.f32 -0.00019511016, %v6490_v45  ;;  %v3546_v36 = vsel %vm6403_vm14, 0, %v3544_v18  ;;  %v1920_v62 = vpop.f32.mrf.mxu3  ;;  %v1830_v43 = vpop.f32.mrf.mxu0 }
 0x22d   : > { %v6581_v57 = vsel %vm6539_vm13, %v6991_v60, %v3387_v44  ;;  %v2776_v16 = vadd.f32 -0.4999988, %v2775_v41  ;;  %v2783_v2 = vadd.f32 -0.16666654, %v2782_v3  ;;  %v2789_v23 = vand.u32 3, %v2788_v5 }
 0x22e   : > { %v3392_v19 = vmul.f32 %v6581_v57, %v6581_v57  ;;  %v3550_v49 = vmul.f32 %v3549_v46, %v6490_v45  ;;  %v3556_v38 = vadd.f32 0.008332121, %v3555_v48  ;;  %v6588_v30 = vand.u32 3, %v3408_v51 }
 0x22f   : > { %v1857_v24 = vadd.f32 %v1856_v31, %v1826_v14  ;;  %v2777_v0 = vmul.f32 %v2776_v16, %v6131_v8  ;;  %v2784_v13 = vmul.f32 %v2783_v2, %v6131_v8  ;;  %v1798_v61 = vadd.f32 %v1797_v59, %v1757_v32 }
 0x230   : > { %v3393_v9 = vmul.f32 -0.001358992, %v3392_v19  ;;  %v3400_v54 = vmul.f32 -0.00019511016, %v3392_v19  ;;  %vm2787_vm12 = vweird.f32 %v6913_v20  ;;  %v3887_v28 = vperm.slane %v6315_v55, 2  ;;  %v1896_v2 = vpop.f32.mrf.mxu2 }
 0x231   : > { %v2778_v12 = vadd.f32 1.0, %v2777_v0  ;;  %v2785_v42 = vadd.f32 1.0, %v2784_v13  ;;  %v3551_v25 = vadd.f32 -0.4999988, %v3550_v49  ;;  %v3563_v35 = vadd.s32 3, %v3546_v36  ;;  %v6997_v49 = vld [vmem:[#allocation41_spill] sm:$0xff] }
 0x232   : > { %v3394_v31 = vadd.f32 0.041655596, %v3393_v9  ;;  %v3401_v6 = vadd.f32 0.008332121, %v3400_v54  ;;  %vm2791_vm0 = vcmp.eq.s32.totalorder %v2789_v23, 0  ;;  %v3557_v34 = vmul.f32 %v3556_v38, %v6490_v45 }
 0x233   : > { %v1893_v22 = vadd.f32 %v1892_v7, %v1857_v24  ;;  %v2786_v8 = vmul.f32 %v2785_v42, %v6014_v47  ;;  %v2795_v40 = vxor.u32 2147483648, %v2778_v12  ;;  %v3552_v32 = vmul.f32 %v3551_v25, %v6490_v45  ;;  %v1996_v9 = vpop.f32.mrf.mxu1 }
 0x234   : > { %v3395_v59 = vmul.f32 %v3394_v31, %v3392_v19  ;;  %v3402_v18 = vmul.f32 %v3401_v6, %v3392_v19  ;;  %v1831_v17 = vadd.f32 %v1830_v43, %v1798_v61  ;;  %v3558_v51 = vadd.f32 -0.16666654, %v3557_v34  ;;  %v1924_v36 = vpop.f32.mrf.mxu3 }
 0x235   : > { %v2792_v41 = vxor.u32 2147483648, %v2786_v8  ;;  %vm2794_vm6 = vcmp.eq.s32.totalorder %v2789_v23, 2  ;;  %v3553_v3 = vadd.f32 1.0, %v3552_v32  ;;  %v3564_v5 = vand.u32 3, %v3563_v35 }
 0x236   : > { %v3396_v44 = vadd.f32 -0.4999988, %v3395_v59  ;;  %v3403_v14 = vadd.f32 -0.16666654, %v3402_v18  ;;  %v1863_v46 = vadd.f32 %v1862_v15, %v1831_v17  ;;  %v3559_v48 = vmul.f32 %v3558_v51, %v6490_v45  ;;  %v1952_v45 = vpop.f32.mrf.mxu0 }
 0x237   : > { %vm3411_vm14 = vcmp.eq.s32.totalorder %v6588_v30, 0  ;;  %vm3414_vm13 = vcmp.eq.s32.totalorder %v6588_v30, 2  ;;  %vm2790_vm2 = vcmp.lt.s32.totalorder %v2789_v23, 2  ;;  %v2793_v47 = vsel %vm2791_vm0, %v2778_v12, %v2792_v41 }
 0x238   : > { %v2796_v16 = vsel %vm2794_vm6, %v2795_v40, %v2786_v8  ;;  %v2923_v38 = vsub.s32 4, %v6997_v49  ;;  %v3397_v24 = vmul.f32 %v3396_v44, %v3392_v19  ;;  %v3404_v7 = vmul.f32 %v3403_v14, %v3392_v19  ;;  %v2028_v44 = vpop.f32.mrf.mxu2 }
 0x239   : > { %vm3410_vm8 = vcmp.lt.s32.totalorder %v6588_v30, 2  ;;  %v1921_v0 = vadd.f32 %v1920_v62, %v1893_v22  ;;  %v2797_v13 = vsel %vm2790_vm2, %v2793_v47, %v2796_v16  ;;  %vm3562_vm9 = vweird.f32 %v6936_v53 }
 0x23a   : > { %vm3407_vm11 = vweird.f32 %v6991_v60  ;;  %v2798_v23 = vsel %vm2787_vm12, nan, %v2797_v13  ;;  %v3560_v54 = vadd.f32 1.0, %v3559_v48  ;;  %vm3565_vm1 = vcmp.lt.s32.totalorder %v3564_v5, 2 }
 0x23b   : > { %v3570_v61 = vxor.u32 2147483648, %v3553_v3  ;;  %v6998_v43 = vand.u32 2147483647, %v5808_v56  ;;  %v3398_v62 = vadd.f32 1.0, %v3397_v24  ;;  %v3405_v15 = vadd.f32 1.0, %v3404_v7 }
 0x23c   : > { %v3897_v12 = vmul.f32 %v3887_v28, %v2798_v23  ;;  %v1897_v42 = vadd.f32 %v1896_v2, %v1863_v46  ;;  %v3561_v25 = vmul.f32 %v3560_v54, %v6467_v39  ;;  %v2924_v20 = vsel %vm2801_vm4, %v2923_v38, %v6997_v49  ;;  %v2059_v14 = vpop.f32.mrf.mxu3 }
 0x23d   : > { %vm6609_vm0 = vcmp.le.f32.partialorder %v6998_v43, 0.7853982  ;;  %v2928_v35 = vmul.f32 -0.001358992, %v6497_v26  ;;  %v2935_v31 = vmul.f32 -0.00019511016, %v6497_v26  ;;  %v3406_v6 = vmul.f32 %v3405_v15, %v6581_v57 }
 0x23e   : > { %v3415_v34 = vxor.u32 2147483648, %v3398_v62  ;;  %v3907_v22 = vadd.f32 %v3897_v12, %v1921_v0  ;;  %vm3566_vm12 = vcmp.eq.s32.totalorder %v3564_v5, 0  ;;  %v3567_v8 = vxor.u32 2147483648, %v3561_v25  ;;  %v1960_v2 = vpop.f32.mrf.mxu0 }
 0x23f   : > { %vm3569_vm6 = vcmp.eq.s32.totalorder %v3564_v5, 2  ;;  %v2929_v40 = vadd.f32 0.041655596, %v2928_v35  ;;  %v2936_v32 = vadd.f32 0.008332121, %v2935_v31  ;;  %v3412_v59 = vxor.u32 2147483648, %v3406_v6 }
 0x240   : > { %3917 = vst [vmem:[%s6390_s6 + $0x10] sm:$0xff] %v3907_v22  ;;  %v1925_v39 = vadd.f32 %v1924_v36, %v1897_v42  ;;  %v1997_v18 = vadd.f32 %v1996_v9, %v1952_v45  ;;  %v2926_v17 = vsel %vm6417_vm3, 0, %v2924_v20  ;;  %v3568_v51 = vsel %vm3566_vm12, %v3553_v3, %v3567_v8  ;;  %v2000_v36 = vpop.f32.mrf.mxu1  ;;  %v2033_v20 = vpop.f32.mrf.mxu2 }
 0x241   : > { %v3571_v41 = vsel %vm3569_vm6, %v3570_v61, %v3561_v25  ;;  %v2930_v57 = vmul.f32 %v2929_v40, %v6497_v26  ;;  %v2937_v46 = vmul.f32 %v2936_v32, %v6497_v26  ;;  %v3413_v48 = vsel %vm3411_vm14, %v3398_v62, %v3412_v59 }
 0x242   : > { %v3416_v47 = vsel %vm3414_vm13, %v3415_v34, %v3406_v6  ;;  %v3572_v16 = vsel %vm3565_vm1, %v3568_v51, %v3571_v41  ;;  %v3698_v49 = vsub.s32 4, %v7001_v4  ;;  %v2943_v7 = vadd.s32 3, %v2926_v17 }
 0x243   : > { %v3417_v3 = vsel %vm3410_vm8, %v3413_v48, %v3416_v47  ;;  %v3573_v38 = vsel %vm3562_vm9, nan, %v3572_v16  ;;  %v2931_v24 = vadd.f32 -0.4999988, %v2930_v57  ;;  %v6639_v0 = vmul.f32 %v6534_v58, %v6534_v58 }
 0x244   : > { %v3418_v5 = vsel %vm3407_vm11, nan, %v3417_v3  ;;  %v3902_v13 = vmul.f32 %v3887_v28, %v3573_v38  ;;  %v2938_v45 = vadd.f32 -0.16666654, %v2937_v46  ;;  %v6649_v53 = vsel %vm6609_vm0, %v5808_v56, %v6545_v52  ;;  %v2065_v35 = vpop.f32.mrf.mxu3 }
 0x245   : > { %v3901_v30 = vmul.f32 %v3886_v63, %v3418_v5  ;;  %v2029_v9 = vadd.f32 %v2028_v44, %v1997_v18  ;;  %v2932_v23 = vmul.f32 %v2931_v24, %v6497_v26  ;;  %v3699_v28 = vsel %vm3576_vm5, %v3698_v49, %v7001_v4 }
 0x246   : > { %v3912_v60 = vadd.f32 %v3902_v13, %v1925_v39  ;;  %v2939_v54 = vmul.f32 %v2938_v45, %v6497_v26  ;;  %v3703_v61 = vmul.f32 -0.001358992, %v6519_v33  ;;  %vm2942_vm4 = vweird.f32 %v6957_v27  ;;  %v2095_v8 = vpop.f32.mrf.mxu0 }
 0x247   : > { %v3911_v43 = vadd.f32 %v3901_v30, %v6561_v37  ;;  %v2933_v52 = vadd.f32 1.0, %v2932_v23  ;;  %v2944_v62 = vand.u32 3, %v2943_v7  ;;  %v3710_v63 = vmul.f32 -0.00019511016, %v6519_v33  ;;  %v7002_v37 = vld [vmem:[#allocation36_spill] sm:$0xff] }
 0x248   : > { %3923 = vst [vmem:[%s6390_s6 + $0x38] sm:$0xff] %v3912_v60  ;;  %v2940_v15 = vadd.f32 1.0, %v2939_v54  ;;  %v3888_v12 = vperm.slane %v6315_v55, 3  ;;  %v3701_v26 = vsel %vm6441_vm10, 0, %v3699_v28  ;;  %v3704_v42 = vadd.f32 0.041655596, %v3703_v61  ;;  %v2123_v40 = vpop.f32.mrf.mxu1  ;;  %v2155_v5 = vpop.f32.mrf.mxu2 }
 0x249   : > { %3922 = vst [vmem:[%s6390_s6 + $0x30] sm:$0xff] %v3911_v43  ;;  %v2001_v25 = vadd.f32 %v2000_v36, %v1960_v2  ;;  %v3711_v31 = vadd.f32 0.008332121, %v3710_v63  ;;  %v3078_v6 = vsub.s32 4, %v7002_v37  ;;  %v3083_v34 = vmul.f32 -0.001358992, %v6639_v0 }
 0x24a   : > { %v2060_v22 = vadd.f32 %v2059_v14, %v2029_v9  ;;  %v2941_v32 = vmul.f32 %v2940_v15, %v6482_v11  ;;  %v2950_v59 = vxor.u32 2147483648, %v2933_v52  ;;  %v3705_v39 = vmul.f32 %v3704_v42, %v6519_v33 }
 0x24b   : > { %vm2945_vm3 = vcmp.lt.s32.totalorder %v2944_v62, 2  ;;  %vm2946_vm5 = vcmp.eq.s32.totalorder %v2944_v62, 0  ;;  %v3712_v10 = vmul.f32 %v3711_v31, %v6519_v33  ;;  %v3084_v18 = vadd.f32 0.041655596, %v3083_v34 }
 0x24c   : > { %v2096_v17 = vadd.f32 %v2095_v8, %v2060_v22  ;;  %v2947_v51 = vxor.u32 2147483648, %v2941_v32  ;;  %v3706_v41 = vadd.f32 -0.4999988, %v3705_v39  ;;  %v3718_v44 = vadd.s32 3, %v3701_v26  ;;  %v2199_v13 = vpop.f32.mrf.mxu3 }
 0x24d   : > { %v2034_v57 = vadd.f32 %v2033_v20, %v2001_v25  ;;  %vm2949_vm10 = vcmp.eq.s32.totalorder %v2944_v62, 2  ;;  %v3713_v46 = vadd.f32 -0.16666654, %v3712_v10  ;;  %vm7003_vm14 = vcmp.lt.s32.totalorder %v5733_v21, 0  ;;  %v7004_v25 = vld [vmem:[#allocation15_spill] sm:$0xff] }
 0x24e   : > { %v3079_v14 = vsel %vm7003_vm14, %v3078_v6, %v7002_v37  ;;  %v2124_v11 = vadd.f32 %v2123_v40, %v2096_v17  ;;  %v2948_v48 = vsel %vm2946_vm5, %v2933_v52, %v2947_v51  ;;  %v2951_v47 = vsel %vm2949_vm10, %v2950_v59, %v2941_v32  ;;  %v2099_v60 = vpop.f32.mrf.mxu0 }
 0x24f   : > { %v3707_v16 = vmul.f32 %v3706_v41, %v6519_v33  ;;  %v2952_v2 = vsel %vm2945_vm3, %v2948_v48, %v2951_v47  ;;  %v3714_v36 = vmul.f32 %v3713_v46, %v6519_v33  ;;  %v3085_v4 = vmul.f32 %v3084_v18, %v6639_v0 }
 0x250   : > { %v3090_v49 = vmul.f32 -0.00019511016, %v6639_v0  ;;  %v2953_v3 = vsel %vm2942_vm4, nan, %v2952_v2  ;;  %v3719_v24 = vand.u32 3, %v3718_v44  ;;  %v3857_v33 = vmul.f32 %v6649_v53, %v6649_v53  ;;  %v2127_v54 = vpop.f32.mrf.mxu1  ;;  %v2163_v59 = vpop.f32.mrf.mxu2 }
 0x251   : > { %v3708_v38 = vadd.f32 1.0, %v3707_v16  ;;  %v3898_v7 = vmul.f32 %v3888_v12, %v2953_v3  ;;  %v3715_v45 = vadd.f32 1.0, %v3714_v36  ;;  %v3086_v30 = vadd.f32 -0.4999988, %v3085_v4 }
 0x252   : > { %v3091_v9 = vadd.f32 0.008332121, %v3090_v49  ;;  %v2066_v23 = vadd.f32 %v2065_v35, %v2034_v57  ;;  %v3081_v27 = vsel %vm6506_vm15, 0, %v3079_v14  ;;  %vm3717_vm13 = vweird.f32 %v6983_v29 }
 0x253   : > { %v3908_v28 = vadd.f32 %v3898_v7, %v2124_v11  ;;  %v3716_v61 = vmul.f32 %v3715_v45, %v6502_v50  ;;  %v3725_v43 = vxor.u32 2147483648, %v3708_v38  ;;  %v3087_v52 = vmul.f32 %v3086_v30, %v6639_v0 }
 0x254   : > { %v2100_v62 = vadd.f32 %v2099_v60, %v2066_v23  ;;  %vm3720_vm2 = vcmp.lt.s32.totalorder %v3719_v24, 2  ;;  %v3092_v63 = vmul.f32 %v3091_v9, %v6639_v0  ;;  %vm3721_vm8 = vcmp.eq.s32.totalorder %v3719_v24, 0  ;;  %v2203_v39 = vpop.f32.mrf.mxu3 }
 0x255   : > { %3918 = vst [vmem:[%s6390_s6 + $0x18] sm:$0xff] %v3908_v28  ;;  %v3722_v15 = vxor.u32 2147483648, %v3716_v61  ;;  %vm3724_vm9 = vcmp.eq.s32.totalorder %v3719_v24, 2  ;;  %v3098_v26 = vadd.s32 3, %v3081_v27  ;;  %v3853_v20 = vsub.s32 4, %v7004_v25 }
 0x256   : > { %v2128_v42 = vadd.f32 %v2127_v54, %v2100_v62  ;;  %v3093_v1 = vadd.f32 -0.16666654, %v3092_v63  ;;  %v3858_v35 = vmul.f32 -0.001358992, %v3857_v33  ;;  %v3726_v31 = vsel %vm3724_vm9, %v3725_v43, %v3716_v61  ;;  %v2231_v51 = vpop.f32.mrf.mxu0 }
 0x257   : > { %v3723_v50 = vsel %vm3721_vm8, %v3708_v38, %v3722_v15  ;;  %v3088_v37 = vadd.f32 1.0, %v3087_v52  ;;  %v3865_v6 = vmul.f32 -0.00019511016, %v3857_v33  ;;  %v3854_v8 = vsel %vm3731_vm7, %v3853_v20, %v7004_v25 }
 0x258   : > { %v3727_v34 = vsel %vm3720_vm2, %v3723_v50, %v3726_v31  ;;  %v3094_v22 = vmul.f32 %v3093_v1, %v6639_v0  ;;  %v3859_v40 = vadd.f32 0.041655596, %v3858_v35  ;;  %v2200_v18 = vadd.f32 %v2199_v13, %v2155_v5  ;;  %v2262_v41 = vpop.f32.mrf.mxu1  ;;  %v2298_v5 = vpop.f32.mrf.mxu2 }
 0x259   : > { %v3728_v32 = vsel %vm3717_vm13, nan, %v3727_v34  ;;  %v3866_v10 = vadd.f32 0.008332121, %v3865_v6  ;;  %v3099_v57 = vand.u32 3, %v3098_v26  ;;  %v3105_v46 = vxor.u32 2147483648, %v3088_v37 }
 0x25a   : > { %v3903_v17 = vmul.f32 %v3888_v12, %v3728_v32  ;;  %v3095_v44 = vadd.f32 1.0, %v3094_v22  ;;  %v3860_v0 = vmul.f32 %v3859_v40, %v3857_v33  ;;  %v3856_v14 = vsel %vm6609_vm0, 0, %v3854_v8 }
 0x25b   : > { %v3867_v11 = vmul.f32 %v3866_v10, %v3857_v33  ;;  %v2232_v48 = vadd.f32 %v2231_v51, %v2200_v18  ;;  %v3873_v49 = vadd.s32 3, %v3856_v14  ;;  %vm3101_vm15 = vcmp.eq.s32.totalorder %v3099_v57, 0 }
 0x25c   : > { %v3913_v29 = vadd.f32 %v3903_v17, %v2128_v42  ;;  %v3096_v47 = vmul.f32 %v3095_v44, %v6534_v58  ;;  %v3861_v16 = vadd.f32 -0.4999988, %v3860_v0  ;;  %vm3104_vm7 = vcmp.eq.s32.totalorder %v3099_v57, 2  ;;  %v2326_v13 = vpop.f32.mrf.mxu3 }
 0x25d   : > { %v3868_v2 = vadd.f32 -0.16666654, %v3867_v11  ;;  %v2263_v36 = vadd.f32 %v2262_v41, %v2232_v48  ;;  %v3889_v3 = vperm.slane %v6315_v55, 4  ;;  %vm3100_vm11 = vcmp.lt.s32.totalorder %v3099_v57, 2 }
 0x25e   : > { %3924 = vst [vmem:[%s6390_s6 + $0x40] sm:$0xff] %v3913_v29  ;;  %v3102_v4 = vxor.u32 2147483648, %v3096_v47  ;;  %v3862_v12 = vmul.f32 %v3861_v16, %v3857_v33  ;;  %v3106_v24 = vsel %vm3104_vm7, %v3105_v46, %v3096_v47  ;;  %vm3097_vm1 = vweird.f32 %v5733_v21  ;;  %v2236_v23 = vpop.f32.mrf.mxu0 }
 0x25f   : > { %v3869_v38 = vmul.f32 %v3868_v2, %v3857_v33  ;;  %v2204_v30 = vadd.f32 %v2203_v39, %v2163_v59  ;;  %v2299_v9 = vadd.f32 %v2298_v5, %v2263_v36  ;;  %v3874_v54 = vand.u32 3, %v3873_v49 }
 0x260   : > { %v3103_v19 = vsel %vm3101_vm15, %v3088_v37, %v3102_v4  ;;  %v3863_v7 = vadd.f32 1.0, %v3862_v12  ;;  %v2268_v27 = vpop.f32.mrf.mxu1  ;;  %vm3919_vm0 = vcmask 130048   ;;  %vm3872_vm3 = vweird.f32 %v5808_v56  ;;  %v2302_v26 = vpop.f32.mrf.mxu2 }
 0x261   : > { %v3107_v58 = vsel %vm3100_vm11, %v3103_v19, %v3106_v24  ;;  %v3870_v45 = vadd.f32 1.0, %v3869_v38  ;;  %v2237_v28 = vadd.f32 %v2236_v23, %v2204_v30  ;;  %v2327_v61 = vadd.f32 %v2326_v13, %v2299_v9 }
 0x262   : > { %v3108_v60 = vsel %vm3097_vm1, nan, %v3107_v58  ;;  %v3880_v33 = vxor.u32 2147483648, %v3863_v7  ;;  %vm3876_vm12 = vcmp.eq.s32.totalorder %v3874_v54, 0  ;;  %vm3879_vm6 = vcmp.eq.s32.totalorder %v3874_v54, 2 }
 0x263   : > { %v3871_v55 = vmul.f32 %v3870_v45, %v6649_v53  ;;  %v3899_v43 = vmul.f32 %v3889_v3, %v3108_v60  ;;  %v2269_v62 = vadd.f32 %v2268_v27, %v2237_v28  ;;  %vm3875_vm4 = vcmp.lt.s32.totalorder %v3874_v54, 2 }
 0x264   : > { %v2330_v42 = vpop.f32.mrf.mxu3 }
 0x265   : > { %v3877_v52 = vxor.u32 2147483648, %v3871_v55  ;;  %v3909_v21 = vadd.f32 %v3899_v43, %v2327_v61  ;;  %v3881_v15 = vsel %vm3879_vm6, %v3880_v33, %v3871_v55  ;;  %v2303_v25 = vadd.f32 %v2302_v26, %v2269_v62 }
 0x267   : > { %v3878_v63 = vsel %vm3876_vm12, %v3863_v7, %v3877_v52  ;;  %3920 = vst.msk [vmem:[%s6390_s6 + $0x20] sm:$0xff] %vm3919_vm0, %v3909_v21  ;;  %v2331_v20 = vadd.f32 %v2330_v42, %v2303_v25 }
 0x268   : > { %v3882_v53 = vsel %vm3875_vm4, %v3878_v63, %v3881_v15 }
 0x269   : > { %v3883_v1 = vsel %vm3872_vm3, nan, %v3882_v53 }
 0x26a   : > { %v3904_v35 = vmul.f32 %v3889_v3, %v3883_v1 }
 0x26c   : > { %v3914_v50 = vadd.f32 %v3904_v35, %v2331_v20 }
 0x26e   : > { %3925 = vst.msk [vmem:[%s6390_s6 + $0x48] sm:$0xff] %vm3919_vm0, %v3914_v50 }
 0x26f   : > { %4232 = shalt.err (!%p4229_p8)
}
 0x270   : > { %s4288_s29 = smov 640   ;;  %s4289_s30 = smov 40  }
 0x271   : > { %4082 = dma.vmem_to_hbm [thread:$0]  (%p4353_p5), %s3941_s10, 1280, %s3943_s11, %s3927_s12, %s4288_s29, %s4288_s29, %s4289_s30  }
 0x272 PF: > { %p4099_p9 = scmp.ge.s32.totalorder %s4275_s18, 2  ;;  %s3957_s5 = sand.u32 1, %s4263_s15  }
 0x273   : > { %s3958_s6 = scalar_lea.sflag [#allocation4], %s3957_s5 }
 0x274   : > { %p4092_p10 = pnand %p4099_p9, %p4357_p6 }
 0x276   : > { %p4093_p11 = pneg %p4092_p10 }
 0x278   : > { %4258 = dma.done.wait (%p4093_p11), %s3958_s6, 1280  }
 0x279   : > { %4260 = vsyncadd (%p4093_p11), %s3958_s6, 4294966016  ;;  %p16_p12 = scmp.ge.s32.totalorder %s4340_s21, 6   ;;  %s7005_s15 = smov %s4267_s16 }
 0x27a   : > { %s7006_s16 = smov %s4271_s17  ;;  %s7007_s17 = smov %s4351_s24 }
 0x27b   : > { %s7008_s18 = smov %s4340_s21  ;;  %18 = sbr.rel (!%p16_p12) target bundleno = 5 (0x5), region = 80 }
 0x280   :  { %3964 = vsyncpa [#allocation3], 1 }
 0x281   :  { %3966 = vsyncpa [#allocation3 + $0x1], 1 }
 0x282   :  { %3967 = vsyncpa [#allocation6], 1 }
 0x283   :  { %3968 = vsyncpa [#allocation4], 1 }
 0x284   :  { %3970 = vsyncpa [#allocation4 + $0x1], 1 }

// kernel: tpu_custom_call.1
= control target key start
LH: loop header
LB: loop body
LE: loop exit
PB: predicated region body
PF: predicated region fallthrough
CT: control target
= control target key end

     0   :  { %9 = vsyncpa [#allocation3], 0  ;;  %s4144_s0 = inlined_call_operand.hbm [shape: f32[17,528], index: 0, kind: input, shape index: {}]   ;;  %s4145_s1 = inlined_call_operand.hbm [shape: f32[17,528], index: 1, kind: input, shape index: {}]   ;;  %s4146_s2 = inlined_call_operand.vmem [shape: f32[1,528], index: 2, kind: input, shape index: {}]   ;;  %s4147_s3 = inlined_call_operand.vmem [shape: f32[64,17], index: 3, kind: input, shape index: {}]   ;;  %s4148_s4 = inlined_call_operand.hbm [shape: f32[64,528], index: 4, kind: output, shape index: {}]  }
   0x1   :  { %10 = vsyncpa [#allocation6], 0 }
   0x2   :  { %11 = vsyncpa [#allocation4], 0 }
   0x3   :  { %13 = vsyncpa [#allocation4 + $0x1], 0  ;;  %s2551_s15 = smov 0   ;;  %s2553_s16 = smov 0  }
   0x4   :  { %s2555_s17 = smov 0   ;;  %s2557_s18 = smov 0  }
   0x5 LB: > { %s2572_s19 = sadd.s32 4294967295, %s2511_s18   ;;  %s2227_s20 = sadd.s32 4294967294, %s2511_s18   ;;  %s2511_s18 = sphi %s2557_s18, %s4280_s18   ;;  %s2507_s17 = sphi %s2555_s17, %s4279_s17   ;;  %s2503_s16 = sphi %s2553_s16, %s4278_s16   ;;  %s2499_s15 = sphi %s2551_s15, %s4277_s15  }
   0x6   : > { %s2576_s21 = sadd.s32 1, %s2511_s18   ;;  %s115_s22 = sadd.s32 1, %s2507_s17 }
   0x7   : > { %s112_s23 = ssub.s32 %s2511_s18, %s2576_s21  ;;  %p125_p0 = scmp.ne.s32.totalorder %s2507_s17, %s2503_s16 }
   0x8   : > { %p113_p1 = scmp.eq.s32.totalorder %s112_s23, 0  ;;  %p126_p2 = scmp.eq.s32.totalorder %s2572_s19, 3 }
   0x9   : > { %p131_p3 = scmp.ne.s32.totalorder %s2503_s16, %s2499_s15  ;;  %p132_p4 = scmp.eq.s32.totalorder %s2227_s20, 3 }
   0xa   : > { %s2587_s24 = scalar_select %p113_p1, %s2507_s17, %s115_s22  }
   0xb   : > { %p2589_p5 = por %p126_p2, %p125_p0  ;;  %p2593_p6 = por %p132_p4, %p131_p3 }
   0xc   : > { %p2228_p7 = scmp.ge.s32.totalorder %s2511_s18, 1  ;;  %p139_p8 = scmp.lt.s32.totalorder %s2511_s18, 5 }
   0xd   : > { %p2331_p9 = scmp.eq.s32.totalorder %s2572_s19, 0  ;;  %s150_s30 = sshll.u32 %s4144_s0, 4  ;;  %s151_s30 = int_to_ptr.hbm [resolvable:$true] %s150_s30 }
   0xe   : > { %p2600_p10 = pnand %p2228_p7, %p139_p8  ;;  %s2513_s5 = smov [#allocation2]  }
   0xf   : > { %s152_s6 = sshll.u32 %s2513_s5, 4  ;;  %s164_s9 = sshll.u32 %s4145_s1, 4  ;;  %s153_s6 = int_to_ptr.vmem [resolvable:$true] %s152_s6  ;;  %s165_s9 = int_to_ptr.hbm [resolvable:$true] %s164_s9 }
  0x10   : > { %p2320_p11 = pneg %p2600_p10  ;;  %s2514_s10 = smov 640  }
  0x11   : > { %s2515_s11 = smov 40   ;;  %s2516_s12 = smov [#allocation5]  }
  0x12   : > { %p2321_p12 = pnand %p2331_p9, %p2320_p11  ;;  %s166_s13 = sshll.u32 %s2516_s12, 4  ;;  %s167_s13 = int_to_ptr.vmem [resolvable:$true] %s166_s13 }
  0x13   : > { %194 = sbr.rel (%p2600_p10) target bundleno = 562 (0x232), region = 36 }
  0x14   : > { %2323 = dma.hbm_to_vmem [thread:$0]  (!%p2321_p12), %s151_s30, 1920, %s153_s6, [#allocation3], %s2514_s10, %s2514_s10, %s2515_s11  }
  0x15   : > { %2326 = dma.hbm_to_vmem [thread:$0]  (!%p2321_p12), %s165_s9, 1920, %s167_s13, [#allocation6], %s2514_s10, %s2514_s10, %s2515_s11  }
  0x18   : > { %2486 = dma.done.wait (%p2331_p9), [#allocation3], 1920  }
  0x19   : > { %2488 = vsyncadd (%p2331_p9), [#allocation3], 4294965376 }
  0x1a   : > { %2490 = dma.done.wait (%p2331_p9), [#allocation6], 1920  }
  0x1b   : > { %2492 = vsyncadd (%p2331_p9), [#allocation6], 4294965376  ;;  %s2235_s14 = sshll.u32 %s2572_s19, 1  ;;  %vm257_vm0 = vcmask 1040384   ;;  %v245_v0 = vld [vmem:[#allocation2 + $0x50] sm:$0x1] }
  0x1c   : > { %p227_p13 = scmp.lt.s32.totalorder %s2235_s14, 7  ;;  %v246_v1 = vld [vmem:[#allocation2 + $0x58] sm:$0x1]  ;;  %v240_v2 = vld [vmem:[#allocation2 + $0x28] sm:$0xff]  ;;  %2237 = vmatpush.msk.msra.mxu0 %vm257_vm0, %v245_v0  ;;  %2302 = vmatpush.msk.msra.mxu2 %vm257_vm0, %v245_v0  ;;  %v241_v3 = vld [vmem:[#allocation2 + $0x30] sm:$0xff]  ;;  %vm250_vm1 = vcmask 138240  }
  0x1d   : > { %2240 = vmatpush.msk.msra.mxu1 %vm257_vm0, %v246_v1  ;;  %2305 = vmatpush.msk.msra.mxu3 %vm257_vm0, %v246_v1  ;;  %v235_v4 = vld [vmem:[#allocation2] sm:$0xff]  ;;  %v236_v5 = vld [vmem:[#allocation2 + $0x8] sm:$0xff]  ;;  %v249_v10 = vld [vmem:[#allocation2 + $0x70] sm:$0x1]  ;;  %v4163_v57 = vmov 683565275  }
  0x1e   : > { %s4282_s14 = smov (!%p227_p13, %s2235_s14), 7  ;;  %287 = vmatpush.msra.mxu0 %v240_v2  ;;  %2303 = vmatpush.msra.mxu2 %v240_v2  ;;  %v247_v8 = vld [vmem:[#allocation2 + $0x60] sm:$0x1]  ;;  %v248_v9 = vld [vmem:[#allocation2 + $0x68] sm:$0x1]  ;;  %v242_v12 = vld [vmem:[#allocation2 + $0x38] sm:$0xff] }
  0x1f   : > { %s2236_s20 = sshll.u32 %s4282_s14, 3  ;;  %310 = vmatpush.msra.mxu1 %v241_v3  ;;  %2306 = vmatpush.msra.mxu3 %v241_v3  ;;  %v398_v11 = vld [vmem:[#allocation5 + $0x50] sm:$0x1]  ;;  %v243_v13 = vld [vmem:[#allocation2 + $0x40] sm:$0xff]  ;;  %v237_v16 = vld [vmem:[#allocation2 + $0x10] sm:$0xff]  ;;  %s223_s28 = sand.u32 1, %s2503_s16  }
  0x20   : > { %s230_s27 = scalar_lea.vmem %s4147_s3, %s2236_s20  ;;  %288 = vmatpush.msra.mxu0 %v235_v4  ;;  %2304 = vmatpush.msra.mxu2 %v235_v4  ;;  %v244_v14 = vld [vmem:[#allocation2 + $0x48] sm:$0xff]  ;;  %v393_v15 = vld [vmem:[#allocation5 + $0x28] sm:$0xff]  ;;  %v238_v17 = vld [vmem:[#allocation2 + $0x18] sm:$0xff]  ;;  %v4161_v59 = vmov 2475754826   ;;  %s3935_s5 = smul.u32 80, %s223_s28 }
  0x21   : > { %v2632_v6 = vld [vmem:[%s230_s27] sm:$0xff]  ;;  %v2634_v7 = vld [vmem:[%s230_s27 + $0x8] sm:$0xff]  ;;  %311 = vmatpush.msra.mxu1 %v236_v5  ;;  %2307 = vmatpush.msra.mxu3 %v236_v5  ;;  %v399_v19 = vld [vmem:[#allocation5 + $0x58] sm:$0x1]  ;;  %v4159_v61 = vmov 2131351028  }
  0x22   : > { %2238 = vmatmul.msk.f32.vlgmr.msra.gmra.mxu0 %vm250_vm1, %v2632_v6  ;;  %2239 = vmatmul.msk.f32.vlgmr.msra.gmra.mxu2 %vm250_vm1, %v2634_v7  ;;  %v239_v18 = vld [vmem:[#allocation2 + $0x20] sm:$0xff]  ;;  %v394_v20 = vld [vmem:[#allocation5 + $0x30] sm:$0xff]  ;;  %v388_v21 = vld [vmem:[#allocation5] sm:$0xff]  ;;  %v4157_v63 = vmov 2102212464   ;;  %s3975_s6 = scalar_lea.vmem [#allocation7], %s3935_s5 }
  0x23   : > { %2241 = vmatmul.msk.f32.vlgmr.msra.gmra.mxu1 %vm250_vm1, %v2632_v6  ;;  %2242 = vmatmul.msk.f32.vlgmr.msra.gmra.mxu3 %vm250_vm1, %v2634_v7  ;;  %v400_v22 = vld [vmem:[#allocation5 + $0x60] sm:$0x1]  ;;  %v389_v23 = vld [vmem:[#allocation5 + $0x8] sm:$0xff]  ;;  %v395_v24 = vld [vmem:[#allocation5 + $0x38] sm:$0xff]  ;;  %v4155_v1 = vmov 920167782  }
  0x24   : > { %2243 = vmatpush.msk.msrb.mxu2 %vm257_vm0, %v247_v8  ;;  %2246 = vmatpush.msk.msrb.mxu3 %vm257_vm0, %v248_v9  ;;  %v401_v25 = vld [vmem:[#allocation5 + $0x68] sm:$0x1]  ;;  %v402_v26 = vld [vmem:[#allocation5 + $0x70] sm:$0x1]  ;;  %v396_v28 = vld [vmem:[#allocation5 + $0x40] sm:$0xff]  ;;  %s2309_s7 = smul.u32 80, %s2572_s19 }
  0x25   : > { %2249 = vmatpush.msk.msrb.mxu0 %vm257_vm0, %v249_v10  ;;  %2252 = vmatpush.msk.msrb.mxu1 %vm257_vm0, %v398_v11  ;;  %v390_v27 = vld [vmem:[#allocation5 + $0x10] sm:$0xff]  ;;  %v397_v29 = vld [vmem:[#allocation5 + $0x48] sm:$0xff]  ;;  %v392_v30 = vld [vmem:[#allocation5 + $0x20] sm:$0xff]  ;;  %v4151_v10 = vmov 1326507024   ;;  %s2140_s11 = sshll.u32 %s3975_s6, 4  ;;  %s2141_s11 = int_to_ptr.vmem [resolvable:$true] %s2140_s11 }
  0x26   : > { %333 = vmatpush.msrb.mxu2 %v242_v12  ;;  %356 = vmatpush.msrb.mxu3 %v243_v13  ;;  %v391_v31 = vld [vmem:[#allocation5 + $0x18] sm:$0xff]  ;;  %s2139_s10 = scalar_lea.hbm %s4148_s4, %s2309_s7  ;;  %s2127_s12 = scalar_lea.sflag [#allocation4], %s223_s28 }
  0x27   : > { %379 = vmatpush.msrb.mxu0 %v244_v14  ;;  %432 = vmatpush.msrb.mxu1 %v393_v15  ;;  %s2142_s19 = sshll.u32 %s2139_s10, 4  ;;  %s2461_s23 = scalar_lea.hbm %s4148_s4, 320  ;;  %s2143_s19 = int_to_ptr.hbm [resolvable:$true] %s2142_s19 }
  0x28   : > { %334 = vmatpush.msrb.mxu2 %v237_v16  ;;  %357 = vmatpush.msrb.mxu3 %v238_v17  ;;  %s2455_s13 = sshra.s32 %s2143_s19, 4  ;;  %s2456_s13 = int_to_ptr.hbm [resolvable:$true] %s2455_s13 }
  0x29   : > { %380 = vmatpush.msrb.mxu0 %v239_v18  ;;  %433 = vmatpush.msrb.mxu1 %v388_v21  ;;  %s2457_s14 = scalar_lea.hbm %s2456_s13, 80  ;;  %p2462_p3 = scmp.lt.s32.totalorder %s2456_s13, %s4148_s4 }
  0x2a   : > { %2255 = vmatpush.msk.msra.mxu2 %vm257_vm0, %v399_v19  ;;  %2250 = vmatmul.msk.f32.vlgmr.msrb.gmra.mxu0 %vm250_vm1, %v2632_v6  ;;  %p2458_p0 = scmp.ne.s32.totalorder %s2456_s13, %s2457_s14  ;;  %p2463_p4 = scmp.lt.s32.totalorder %s2461_s23, %s2457_s14 }
  0x2b   : > { %2244 = vmatmul.msk.f32.vlgmr.msrb.gmra.mxu2 %vm250_vm1, %v2632_v6  ;;  %2247 = vmatmul.msk.f32.vlgmr.msrb.gmra.mxu3 %vm250_vm1, %v2632_v6 }
  0x2c   : > { %455 = vmatpush.msra.mxu2 %v394_v20  ;;  %2258 = vmatpush.msk.msra.mxu3 %vm257_vm0, %v400_v22  ;;  %p2459_p1 = pnand %p2458_p0, %p2589_p5  ;;  %p2464_p7 = por %p2463_p4, %p2462_p3 }
  0x2d   : > { %2253 = vmatmul.msk.f32.vlgmr.msrb.gmra.mxu1 %vm250_vm1, %v2632_v6  ;;  %2261 = vmatpush.msk.msra.mxu0 %vm257_vm0, %v401_v25 }
  0x2e   : > { %456 = vmatpush.msra.mxu2 %v389_v23  ;;  %478 = vmatpush.msra.mxu3 %v395_v24  ;;  %p2460_p2 = pneg %p2459_p1 }
  0x2f   : > { %2264 = vmatpush.msk.msra.mxu1 %vm257_vm0, %v402_v26  ;;  %501 = vmatpush.msra.mxu0 %v396_v28 }
  0x30   : > { %479 = vmatpush.msra.mxu3 %v390_v27  ;;  %p2465_p8 = pnand %p2464_p7, %p2460_p2 }
  0x31   : > { %524 = vmatpush.msra.mxu1 %v397_v29  ;;  %502 = vmatpush.msra.mxu0 %v391_v31 }
  0x32   : > { %2251 = vmatmul.msk.f32.gmra.mxu0 %vm250_vm1, %v2634_v7 }
  0x33   : > { %2245 = vmatmul.msk.f32.gmra.mxu2 %vm250_vm1, %v2634_v7  ;;  %2248 = vmatmul.msk.f32.gmra.mxu3 %vm250_vm1, %v2634_v7 }
  0x34   : > { %525 = vmatpush.msra.mxu1 %v392_v30 }
  0x35   : > { %2254 = vmatmul.msk.f32.gmra.mxu1 %vm250_vm1, %v2634_v7 }
  0x3a   : > { %2262 = vmatmul.msk.f32.vlgmr.msra.gmra.mxu0 %vm250_vm1, %v2632_v6 }
  0x3b   : > { %2256 = vmatmul.msk.f32.vlgmr.msra.gmra.mxu2 %vm250_vm1, %v2632_v6  ;;  %2259 = vmatmul.msk.f32.vlgmr.msra.gmra.mxu3 %vm250_vm1, %v2632_v6 }
  0x3d   : > { %2265 = vmatmul.msk.f32.vlgmr.msra.gmra.mxu1 %vm250_vm1, %v2632_v6 }
  0x42   : > { %2263 = vmatmul.msk.f32.gmra.mxu0 %vm250_vm1, %v2634_v7 }
  0x43   : > { %2257 = vmatmul.msk.f32.gmra.mxu2 %vm250_vm1, %v2634_v7  ;;  %2260 = vmatmul.msk.f32.gmra.mxu3 %vm250_vm1, %v2634_v7 }
  0x45   : > { %2266 = vmatmul.msk.f32.gmra.mxu1 %vm250_vm1, %v2634_v7 }
  0x9f   : > { %v2684_v32 = vpop.f32.mrf.mxu0 }
  0xa0   : > { %4197 = vst [vmem:[#allocation11_spill] sm:$0xff] %v2684_v32  ;;  %v534_v33 = vand.u32 2147483647, %v2684_v32  ;;  %v537_v34 = vand.u32 2139095040, %v2684_v32  ;;  %v2688_v35 = vpop.f32.mrf.mxu1 }
  0xa1   : > { %4198 = vst [vmem:[#allocation12_spill] sm:$0xff] %v2688_v35  ;;  %v689_v36 = vand.u32 2147483647, %v2688_v35  ;;  %v692_v37 = vand.u32 2139095040, %v2688_v35 }
  0xa2   : > { %v538_v38 = vshrl.u32 %v537_v34, 23  ;;  %v541_v39 = vand.u32 8388607, %v534_v33 }
  0xa3   : > { %v693_v40 = vshrl.u32 %v692_v37, 23  ;;  %v696_v41 = vand.u32 8388607, %v689_v36 }
  0xa4   : > { %v2267_v42 = vadd.s32 4294967169, %v538_v38  ;;  %v542_v43 = vor.u32 8388608, %v541_v39 }
  0xa5   : > { %v2270_v44 = vadd.s32 4294967169, %v693_v40  ;;  %v697_v46 = vor.u32 8388608, %v696_v41  ;;  %v2698_v52 = vpop.f32.mrf.mxu2 }
  0xa6   : > { %v544_v45 = vadd.s32 1, %v2267_v42  ;;  %v2696_v49 = vshll.u32 %v542_v43, 8  ;;  %4199 = vst [vmem:[#allocation13_spill] sm:$0xff] %v2698_v52  ;;  %v1312_v4 = vand.u32 2139095040, %v2698_v52 }
  0xa7   : > { %v699_v47 = vadd.s32 1, %v2270_v44  ;;  %v2704_v55 = vshll.u32 %v697_v46, 8 }
  0xa8   : > { %vm545_vm2 = vcmp.gt.s32.totalorder %v544_v45, 0  ;;  %v583_v3 = vand.u32 65535, %v2696_v49  ;;  %v584_v8 = vshrl.u32 %v2696_v49, 16 }
  0xa9   : > { %v546_v48 = vsel %vm545_vm2, %v544_v45, 0  ;;  %vm700_vm3 = vcmp.gt.s32.totalorder %v699_v47, 0  ;;  %v2726_v18 = vand.u32 65535, %v2704_v55  ;;  %v2757_v37 = vshrl.u32 %v2704_v55, 16 }
  0xaa   : > { %v548_v50 = vand.u32 31, %v546_v48  ;;  %v701_v51 = vsel %vm700_vm3, %v699_v47, 0  ;;  %v2700_v53 = vshrl.u32 %v546_v48, 5 }
  0xab   : > { %v2702_v54 = vand.u32 31, %v701_v51  ;;  %v2763_v44 = vshrl.u32 %v701_v51, 5 }
  0xac   : > { %v549_v56 = vsub.s32 32, %v548_v50  ;;  %v551_v58 = vshll.u32 %v4163_v57, %v548_v50  ;;  %v554_v60 = vshll.u32 %v4161_v59, %v548_v50  ;;  %v557_v62 = vshll.u32 %v4159_v61, %v548_v50 }
  0xad   : > { %v560_v0 = vshll.u32 %v4157_v63, %v548_v50  ;;  %v563_v2 = vshll.u32 %v4155_v1, %v548_v50  ;;  %vm566_vm4 = vcmp.lt.s32.totalorder %v2700_v53, 1  ;;  %vm569_vm5 = vcmp.lt.s32.totalorder %v2700_v53, 4 }
  0xae   : > { %v552_v5 = vshrl.u32 %v4161_v59, %v549_v56  ;;  %v555_v6 = vshrl.u32 %v4159_v61, %v549_v56  ;;  %v558_v7 = vshrl.u32 %v4157_v63, %v549_v56  ;;  %v561_v9 = vshrl.u32 %v4155_v1, %v549_v56 }
  0xaf   : > { %v564_v11 = vshrl.u32 %v4151_v10, %v549_v56  ;;  %v2722_v15 = vsub.s32 32, %v2702_v54  ;;  %vm568_vm6 = vcmp.lt.s32.totalorder %v2700_v53, 3  ;;  %v550_v19 = vshrl.u32 %v4163_v57, %v549_v56 }
  0xb0   : > { %v553_v12 = vor.u32 %v552_v5, %v551_v58  ;;  %v556_v13 = vor.u32 %v555_v6, %v554_v60  ;;  %v559_v14 = vor.u32 %v558_v7, %v557_v62  ;;  %v562_v16 = vor.u32 %v561_v9, %v560_v0 }
  0xb1   : > { %v565_v17 = vor.u32 %v564_v11, %v563_v2  ;;  %vm567_vm7 = vcmp.lt.s32.totalorder %v2700_v53, 2  ;;  %v706_v24 = vshll.u32 %v4163_v57, %v2702_v54  ;;  %v709_v25 = vshll.u32 %v4161_v59, %v2702_v54 }
  0xb2   : > { %v574_v20 = vsel %vm566_vm4, %v553_v12, %v556_v13  ;;  %v578_v21 = vsel %vm566_vm4, %v556_v13, %v559_v14  ;;  %v575_v22 = vsel %vm569_vm5, %v562_v16, 920167782  ;;  %v571_v26 = vsel %vm569_vm5, %v559_v14, 2102212464 }
  0xb3   : > { %v579_v23 = vsel %vm569_vm5, %v565_v17, 1326507024  ;;  %v576_v27 = vsel %vm568_vm6, %v559_v14, %v575_v22  ;;  %v707_v29 = vshrl.u32 %v4161_v59, %v2722_v15  ;;  %v710_v34 = vshrl.u32 %v4159_v61, %v2722_v15 }
  0xb4   : > { %v580_v28 = vsel %vm568_vm6, %v562_v16, %v579_v23  ;;  %v577_v30 = vsel %vm567_vm7, %v574_v20, %v576_v27  ;;  %v570_v42 = vsel %vm566_vm4, %v550_v19, %v553_v12  ;;  %v572_v43 = vsel %vm568_vm6, %v556_v13, %v571_v26 }
  0xb5   : > { %v581_v31 = vsel %vm567_vm7, %v578_v21, %v580_v28  ;;  %v607_v40 = vand.u32 65535, %v577_v30  ;;  %v608_v41 = vshrl.u32 %v577_v30, 16  ;;  %v2765_v45 = vor.u32 %v707_v29, %v706_v24 }
  0xb6   : > { %v585_v38 = vand.u32 65535, %v581_v31  ;;  %v586_v39 = vshrl.u32 %v581_v31, 16  ;;  %v2767_v48 = vor.u32 %v710_v34, %v709_v25  ;;  %v712_v50 = vshll.u32 %v4159_v61, %v2702_v54 }
  0xb7   : > { %v610_v58 = vmul.u32 %v608_v41, %v583_v3  ;;  %v611_v60 = vmul.u32 %v607_v40, %v584_v8  ;;  %v713_v62 = vshrl.u32 %v4157_v63, %v2722_v15  ;;  %v609_v5 = vmul.u32 %v607_v40, %v583_v3 }
  0xb8   : > { %v588_v46 = vmul.u32 %v586_v39, %v583_v3  ;;  %v589_v47 = vmul.u32 %v585_v38, %v584_v8  ;;  %v587_v56 = vmul.u32 %v585_v38, %v583_v3  ;;  %v590_v0 = vmul.u32 %v586_v39, %v584_v8 }
  0xb9   : > { %v612_v51 = vmul.u32 %v608_v41, %v584_v8  ;;  %v613_v11 = vshll.u32 %v610_v58, 16  ;;  %v615_v13 = vshll.u32 %v611_v60, 16  ;;  %v715_v14 = vshll.u32 %v4157_v63, %v2702_v54 }
  0xba   : > { %v591_v2 = vshll.u32 %v588_v46, 16  ;;  %v592_v6 = vshrl.u32 %v588_v46, 16  ;;  %v593_v7 = vshll.u32 %v589_v47, 16  ;;  %v594_v9 = vshrl.u32 %v589_v47, 16 }
  0xbb   : > { %v4167_v16 = vmov 0   ;;  %vm617_vm9 = vc.u32 %v609_v5, %v613_v11  ;;  %v619_v19 = vadd.s32 %v613_v11, %v609_v5  ;;  %v716_v20 = vshrl.u32 %v4155_v1, %v2722_v15 }
  0xbc   : > { %vm595_vm8 = vc.u32 %v587_v56, %v591_v2  ;;  %v597_v12 = vadd.s32 %v591_v2, %v587_v56  ;;  %v618_v8 = vsel %vm617_vm9, 1, %v4167_v16  ;;  %v718_v21 = vshll.u32 %v4155_v1, %v2702_v54 }
  0xbd   : > { %v596_v17 = vsel %vm595_vm8, 1, %v4167_v16  ;;  %v620_v23 = vadd.s32 %v618_v8, %v612_v51  ;;  %vm621_vm11 = vc.u32 %v619_v19, %v615_v13  ;;  %v714_v24 = vor.u32 %v713_v62, %v712_v50 }
  0xbe   : > { %v598_v3 = vadd.s32 %v596_v17, %v590_v0  ;;  %vm599_vm10 = vc.u32 %v597_v12, %v593_v7  ;;  %v622_v26 = vsel %vm621_vm11, 1, %v4167_v16  ;;  %v717_v27 = vor.u32 %v716_v20, %v715_v14 }
  0xbf   : > { %v600_v22 = vsel %vm599_vm10, 1, %v4167_v16  ;;  %v719_v28 = vshrl.u32 %v4151_v10, %v2722_v15  ;;  %v614_v29 = vshrl.u32 %v610_v58, 16  ;;  %v624_v30 = vadd.s32 %v622_v26, %v620_v23 }
  0xc0   : > { %v602_v25 = vadd.s32 %v600_v22, %v598_v3  ;;  %vm721_vm12 = vcmp.lt.s32.totalorder %v2763_v44, 1  ;;  %vm723_vm13 = vcmp.lt.s32.totalorder %v2763_v44, 3  ;;  %vm722_vm14 = vcmp.lt.s32.totalorder %v2763_v44, 2 }
  0xc1   : > { %v720_v54 = vor.u32 %v719_v28, %v718_v21  ;;  %vm724_vm15 = vcmp.lt.s32.totalorder %v2763_v44, 4  ;;  %v616_v34 = vshrl.u32 %v611_v60, 16  ;;  %v625_v38 = vadd.s32 %v624_v30, %v614_v29 }
  0xc2   : > { %v603_v31 = vadd.s32 %v602_v25, %v592_v6  ;;  %v729_v39 = vsel %vm721_vm12, %v2765_v45, %v2767_v48  ;;  %v730_v40 = vsel %vm724_vm15, %v717_v27, 920167782  ;;  %v2797_v46 = vadd.s32 %v619_v19, %v615_v13 }
  0xc3   : > { %v731_v47 = vsel %vm723_vm13, %v714_v24, %v730_v40  ;;  %v733_v50 = vsel %vm721_vm12, %v2767_v48, %v714_v24  ;;  %v573_v56 = vsel %vm567_vm7, %v570_v42, %v572_v43  ;;  %v626_v58 = vadd.s32 %v625_v38, %v616_v34 }
  0xc4   : > { %v2795_v41 = vadd.s32 %v603_v31, %v594_v9  ;;  %v732_v60 = vsel %vm722_vm14, %v729_v39, %v731_v47  ;;  %v734_v62 = vsel %vm724_vm15, %v720_v54, 1326507024  ;;  %v627_v42 = vmul.u32 %v2696_v49, %v573_v56 }
  0xc5   : > { %v735_v0 = vsel %vm723_vm13, %v717_v27, %v734_v62  ;;  %v762_v2 = vand.u32 65535, %v732_v60  ;;  %v630_v5 = vadd.s32 1, %v626_v58  ;;  %v763_v53 = vshrl.u32 %v732_v60, 16 }
  0xc6   : > { %vm629_vm0 = vc.u32 %v2795_v41, %v2797_v46  ;;  %v736_v51 = vsel %vm722_vm14, %v733_v50, %v735_v0  ;;  %v1313_v13 = vshrl.u32 %v1312_v4, 23  ;;  %v705_v49 = vshrl.u32 %v4163_v57, %v2722_v15 }
  0xc7   : > { %v740_v43 = vand.u32 65535, %v736_v51  ;;  %v741_v6 = vshrl.u32 %v736_v51, 16  ;;  %v766_v7 = vmul.u32 %v762_v2, %v2757_v37  ;;  %v631_v9 = vsel %vm629_vm0, %v630_v5, %v626_v58 }
  0xc8   : > { %v764_v11 = vmul.u32 %v762_v2, %v2726_v18  ;;  %v765_v12 = vmul.u32 %v763_v53, %v2726_v18  ;;  %v632_v14 = vadd.s32 %v631_v9, %v627_v42  ;;  %v767_v3 = vmul.u32 %v763_v53, %v2757_v37 }
  0xc9   : > { %v742_v17 = vmul.u32 %v740_v43, %v2726_v18  ;;  %v743_v19 = vmul.u32 %v741_v6, %v2726_v18  ;;  %v744_v20 = vmul.u32 %v740_v43, %v2757_v37  ;;  %v770_v21 = vshll.u32 %v766_v7, 16 }
  0xca   : > { %v768_v8 = vshll.u32 %v765_v12, 16  ;;  %v633_v22 = vadd.s32 536870912, %v632_v14  ;;  %v745_v23 = vmul.u32 %v741_v6, %v2757_v37  ;;  %v726_v4 = vsel %vm724_vm15, %v714_v24, 2102212464 }
  0xcb   : > { %v746_v25 = vshll.u32 %v743_v19, 16  ;;  %v748_v26 = vshll.u32 %v744_v20, 16  ;;  %v2282_v18 = vadd.s32 4294967169, %v1313_v13  ;;  %v769_v31 = vshrl.u32 %v765_v12, 16 }
  0xcc   : > { %vm772_vm1 = vc.u32 %v764_v11, %v768_v8  ;;  %v774_v27 = vadd.s32 %v768_v8, %v764_v11  ;;  %v2831_v28 = vshrl.u32 %v633_v22, 30  ;;  %v747_v34 = vshrl.u32 %v743_v19, 16 }
  0xcd   : > { %vm750_vm2 = vc.u32 %v742_v17, %v746_v25  ;;  %v752_v29 = vadd.s32 %v746_v25, %v742_v17  ;;  %v773_v15 = vsel %vm772_vm1, 1, %v4167_v16  ;;  %v749_v24 = vshrl.u32 %v744_v20, 16 }
  0xce   : > { %v751_v30 = vsel %vm750_vm2, 1, %v4167_v16  ;;  %v775_v54 = vadd.s32 %v773_v15, %v767_v3  ;;  %vm776_vm3 = vc.u32 %v774_v27, %v770_v21  ;;  %v635_v37 = vshll.u32 %v2831_v28, 30 }
  0xcf   : > { %v753_v38 = vadd.s32 %v751_v30, %v745_v23  ;;  %vm754_vm4 = vc.u32 %v752_v29, %v748_v26  ;;  %v777_v40 = vsel %vm776_vm3, 1, %v4167_v16  ;;  %v1319_v47 = vadd.s32 1, %v2282_v18 }
  0xd0   : > { %v755_v39 = vsel %vm754_vm4, 1, %v4167_v16  ;;  %v2838_v50 = vsub.s32 %v632_v14, %v635_v37  ;;  %v771_v58 = vshrl.u32 %v766_v7, 16  ;;  %v779_v60 = vadd.s32 %v777_v40, %v775_v54 }
  0xd1   : > { %v757_v56 = vadd.s32 %v755_v39, %v753_v38  ;;  %v725_v62 = vsel %vm721_vm12, %v705_v49, %v2765_v45  ;;  %v727_v0 = vsel %vm723_vm13, %v2767_v48, %v726_v4  ;;  %v2846_v2 = vadd.s32 %v774_v27, %v770_v21 }
  0xd2   : > { %vm1320_vm5 = vcmp.gt.s32.totalorder %v1319_v47, 0  ;;  %vm637_vm6 = vcmp.lt.s32.totalorder %v2838_v50, 0  ;;  %v638_v5 = vsub.s32 0, %v2838_v50  ;;  %v780_v53 = vadd.s32 %v779_v60, %v769_v31 }
  0xd3   : > { %v758_v51 = vadd.s32 %v757_v56, %v747_v34  ;;  %v1309_v42 = vand.u32 2147483647, %v2698_v52  ;;  %v1321_v43 = vsel %vm1320_vm5, %v1319_v47, 0  ;;  %v728_v45 = vsel %vm722_vm14, %v725_v62, %v727_v0 }
  0xd4   : > { %v639_v6 = vsel %vm637_vm6, %v638_v5, %v2838_v50  ;;  %v781_v48 = vadd.s32 %v780_v53, %v771_v58  ;;  %v1323_v11 = vand.u32 31, %v1321_v43  ;;  %v782_v14 = vmul.u32 %v2704_v55, %v728_v45 }
  0xd5   : > { %v2854_v7 = vadd.s32 %v758_v51, %v749_v24  ;;  %v640_v9 = vclz %v639_v6  ;;  %v1316_v20 = vand.u32 8388607, %v1309_v42  ;;  %v2863_v49 = vshrl.u32 %v1321_v43, 5  ;;  %v2904_v51 = vpop.f32.mrf.mxu3 }
  0xd6   : > { %v785_v12 = vadd.s32 1, %v781_v48  ;;  %v2859_v17 = vsub.s32 32, %v1323_v11  ;;  %v1335_v55 = vshll.u32 %v4157_v63, %v1323_v11  ;;  %v1326_v26 = vshll.u32 %v4163_v57, %v1323_v11  ;;  %4200 = vst [vmem:[#allocation14_spill] sm:$0xff] %v2904_v51 }
  0xd7   : > { %vm784_vm7 = vc.u32 %v2854_v7, %v2846_v2  ;;  %v2268_v13 = vadd.s32 4294967294, %v640_v9  ;;  %v1329_v4 = vshll.u32 %v4161_v59, %v1323_v11  ;;  %v1332_v27 = vshll.u32 %v4159_v61, %v1323_v11 }
  0xd8   : > { %v786_v19 = vsel %vm784_vm7, %v785_v12, %v781_v48  ;;  %v1327_v3 = vshrl.u32 %v4161_v59, %v2859_v17  ;;  %v1330_v8 = vshrl.u32 %v4159_v61, %v2859_v17  ;;  %v1333_v21 = vshrl.u32 %v4157_v63, %v2859_v17 }
  0xd9   : > { %vm2269_vm8 = vcmp.lt.s32.totalorder %v2268_v13, 0  ;;  %v787_v44 = vadd.s32 %v786_v19, %v782_v14  ;;  %v1336_v22 = vshrl.u32 %v4155_v1, %v2859_v17  ;;  %v1339_v31 = vshrl.u32 %v4151_v10, %v2859_v17 }
  0xda   : > { %v643_v23 = vsel %vm2269_vm8, 0, %v2268_v13  ;;  %v2879_v15 = vor.u32 %v1327_v3, %v1326_v26  ;;  %v2881_v30 = vor.u32 %v1330_v8, %v1329_v4  ;;  %v1317_v37 = vor.u32 8388608, %v1316_v20 }
  0xdb   : > { %v788_v25 = vadd.s32 536870912, %v787_v44  ;;  %v1337_v18 = vor.u32 %v1336_v22, %v1335_v55  ;;  %v648_v54 = vsub.s32 4294967266, %v643_v23  ;;  %v1334_v34 = vor.u32 %v1333_v21, %v1332_v27 }
  0xdc   : > { %v1338_v38 = vshll.u32 %v4155_v1, %v1323_v11  ;;  %vm1344_vm9 = vcmp.lt.s32.totalorder %v2863_v49, 4  ;;  %vm1341_vm10 = vcmp.lt.s32.totalorder %v2863_v49, 1  ;;  %v644_v47 = vsub.s32 32, %v643_v23 }
  0xdd   : > { %v2877_v29 = vshrl.u32 %v788_v25, 30  ;;  %v1350_v40 = vsel %vm1344_vm9, %v1337_v18, 920167782  ;;  %vm1343_vm11 = vcmp.lt.s32.totalorder %v2863_v49, 3  ;;  %v1349_v58 = vsel %vm1341_vm10, %v2879_v15, %v2881_v30 }
  0xde   : > { %v1340_v39 = vor.u32 %v1339_v31, %v1338_v38  ;;  %v628_v60 = vadd.s32 %v2797_v46, %v2795_v41  ;;  %v649_v62 = vadd.s32 127, %v648_v54  ;;  %v1351_v0 = vsel %vm1343_vm11, %v1334_v34, %v1350_v40 }
  0xdf   : > { %v790_v24 = vshll.u32 %v2877_v29, 30  ;;  %v2902_v5 = vshll.u32 %v1317_v37, 8  ;;  %vm1342_vm13 = vcmp.lt.s32.totalorder %v2863_v49, 2  ;;  %v1353_v43 = vsel %vm1341_vm10, %v2881_v30, %v1334_v34 }
  0xe0   : > { %v1352_v41 = vsel %vm1342_vm13, %v1349_v58, %v1351_v0  ;;  %v1354_v46 = vsel %vm1344_vm9, %v1340_v39, 1326507024  ;;  %v646_v6 = vshrl.u32 %v628_v60, %v644_v47  ;;  %v1467_v9 = vand.u32 2139095040, %v2904_v51 }
  0xe1   : > { %v2891_v56 = vsub.s32 %v787_v44, %v790_v24  ;;  %v1355_v48 = vsel %vm1343_vm11, %v1337_v18, %v1354_v46  ;;  %v650_v11 = vshll.u32 %v649_v62, 23  ;;  %v1383_v14 = vshrl.u32 %v1352_v41, 16 }
  0xe2   : > { %v1356_v13 = vsel %vm1342_vm13, %v1353_v43, %v1355_v48  ;;  %v1358_v19 = vand.u32 65535, %v2902_v5  ;;  %v1359_v20 = vshrl.u32 %v2902_v5, 16  ;;  %v645_v8 = vshll.u32 %v2838_v50, %v643_v23 }
  0xe3   : > { %vm792_vm12 = vcmp.lt.s32.totalorder %v2891_v56, 0  ;;  %v793_v53 = vsub.s32 0, %v2891_v56  ;;  %v1360_v44 = vand.u32 65535, %v1356_v13  ;;  %v1361_v3 = vshrl.u32 %v1356_v13, 16 }
  0xe4   : > { %v1382_v55 = vand.u32 65535, %v1352_v41  ;;  %v1385_v26 = vmul.u32 %v1383_v14, %v1358_v19  ;;  %v647_v4 = vor.u32 %v646_v6, %v645_v8  ;;  %v651_v27 = vor.u32 4788187, %v650_v11 }
  0xe5   : > { %v794_v45 = vsel %vm792_vm12, %v793_v53, %v2891_v56  ;;  %v1363_v22 = vmul.u32 %v1361_v3, %v1358_v19  ;;  %v1364_v25 = vmul.u32 %v1360_v44, %v1359_v20  ;;  %v1468_v18 = vshrl.u32 %v1467_v9, 23 }
  0xe6   : > { %v795_v12 = vclz %v794_v45  ;;  %v1325_v54 = vshrl.u32 %v4163_v57, %v2859_v17  ;;  %v1362_v37 = vmul.u32 %v1360_v44, %v1358_v19  ;;  %v1346_v39 = vsel %vm1344_vm9, %v1334_v34, 2102212464 }
  0xe7   : > { %v1366_v38 = vshll.u32 %v1363_v22, 16  ;;  %v1365_v50 = vmul.u32 %v1361_v3, %v1359_v20  ;;  %v1386_v23 = vmul.u32 %v1382_v55, %v1359_v20  ;;  %v1368_v40 = vshll.u32 %v1364_v25, 16 }
  0xe8   : > { %v2271_v21 = vadd.s32 4294967294, %v795_v12  ;;  %v1388_v58 = vshll.u32 %v1385_v26, 16  ;;  %v652_v60 = vand.u32 2147483647, %v651_v27  ;;  %v654_v62 = vcvt.s32.f32 %v647_v4 }
  0xe9   : > { %vm1370_vm15 = vc.u32 %v1362_v37, %v1366_v38  ;;  %v1372_v47 = vadd.s32 %v1366_v38, %v1362_v37  ;;  %v2285_v53 = vadd.s32 4294967169, %v1468_v18  ;;  %v1384_v17 = vmul.u32 %v1382_v55, %v1358_v19 }
  0xea   : > { %vm2272_vm14 = vcmp.lt.s32.totalorder %v2271_v21, 0  ;;  %v1371_v0 = vsel %vm1370_vm15, 1, %v4167_v16  ;;  %v1387_v41 = vmul.u32 %v1383_v14, %v1359_v20  ;;  %v1367_v45 = vshrl.u32 %v1363_v22, 16 }
  0xeb   : > { %v798_v31 = vsel %vm2272_vm14, 0, %v2271_v21  ;;  %v1373_v43 = vadd.s32 %v1371_v0, %v1365_v50  ;;  %vm1374_vm0 = vc.u32 %v1372_v47, %v1368_v40  ;;  %v1390_v9 = vshll.u32 %v1386_v23, 16 }
  0xec   : > { %v803_v24 = vsub.s32 4294967266, %v798_v31  ;;  %v799_v46 = vsub.s32 32, %v798_v31  ;;  %v1375_v34 = vsel %vm1374_vm0, 1, %v4167_v16  ;;  %vm1392_vm1 = vc.u32 %v1384_v17, %v1388_v58 }
  0xed   : > { %v1377_v48 = vadd.s32 %v1375_v34, %v1373_v43  ;;  %v1394_v11 = vadd.s32 %v1388_v58, %v1384_v17  ;;  %v783_v12 = vadd.s32 %v2846_v2, %v2854_v7  ;;  %v1345_v13 = vsel %vm1341_vm10, %v1325_v54, %v2879_v15 }
  0xee   : > { %v804_v6 = vadd.s32 127, %v803_v24  ;;  %v1347_v14 = vsel %vm1343_vm11, %v2881_v30, %v1346_v39  ;;  %v1393_v19 = vsel %vm1392_vm1, 1, %v4167_v16  ;;  %v655_v20 = vmul.f32 %v654_v62, %v652_v60 }
  0xef   : > { %v1378_v44 = vadd.s32 %v1377_v48, %v1367_v45  ;;  %v1395_v3 = vadd.s32 %v1393_v19, %v1387_v41  ;;  %vm1396_vm2 = vc.u32 %v1394_v11, %v1390_v9  ;;  %v801_v8 = vshrl.u32 %v783_v12, %v799_v46 }
  0xf0   : > { %v805_v21 = vshll.u32 %v804_v6, 23  ;;  %v1369_v55 = vshrl.u32 %v1364_v25, 16  ;;  %v1397_v22 = vsel %vm1396_vm2, 1, %v4167_v16  ;;  %v1389_v2 = vshrl.u32 %v1385_v26, 16 }
  0xf1   : > { %v1399_v7 = vadd.s32 %v1397_v22, %v1395_v3  ;;  %v4150_v4 = vand.u32 2147483647, %v2904_v51  ;;  %v1474_v15 = vadd.s32 1, %v2285_v53  ;;  %v800_v27 = vshll.u32 %v2891_v56, %v798_v31 }
  0xf2   : > { %v2943_v18 = vadd.s32 %v1378_v44, %v1369_v55  ;;  %v656_v30 = vxor.u32 2147483648, %v655_v20  ;;  %v1348_v54 = vsel %vm1342_vm13, %v1345_v13, %v1347_v14  ;;  %v1391_v37 = vshrl.u32 %v1386_v23, 16 }
  0xf3   : > { %v1400_v38 = vadd.s32 %v1399_v7, %v1389_v2  ;;  %v802_v24 = vor.u32 %v801_v8, %v800_v27  ;;  %v806_v39 = vor.u32 4788187, %v805_v21  ;;  %v2947_v25 = vadd.s32 %v1394_v11, %v1390_v9  ;;  %v2997_v2 = vpop.f32.mrf.mxu0 }
  0xf4   : > { %vm1475_vm3 = vcmp.gt.s32.totalorder %v1474_v15, 0  ;;  %v1471_v50 = vand.u32 8388607, %v4150_v4  ;;  %vm536_vm5 = vcmp.lt.s32.totalorder %v2684_v32, 0  ;;  %v1402_v49 = vmul.u32 %v2902_v5, %v1348_v54  ;;  %4205 = vst [vmem:[#allocation15_spill] sm:$0xff] %v2997_v2 }
  0xf5   : > { %v1401_v26 = vadd.s32 %v1400_v38, %v1391_v37  ;;  %v1476_v40 = vsel %vm1475_vm3, %v1474_v15, 0  ;;  %vm1404_vm4 = vc.u32 %v2943_v18, %v2947_v25  ;;  %v657_v23 = vsel %vm536_vm5, %v656_v30, %v655_v20 }
  0xf6   : > { %v1478_v56 = vand.u32 31, %v1476_v40  ;;  %v807_v47 = vand.u32 2147483647, %v806_v39  ;;  %v809_v58 = vcvt.s32.f32 %v802_v24  ;;  %v1472_v0 = vor.u32 8388608, %v1471_v50 }
  0xf7   : > { %v1405_v31 = vadd.s32 1, %v1401_v26  ;;  %v2973_v12 = vshrl.u32 %v1476_v40, 5  ;;  %vm2984_vm6 = vcmp.le.f32.partialorder %v534_v33, 0.7853982  ;;  %vm2990_vm7 = vcmp.le.f32.partialorder %v689_v36, 0.7853982 }
  0xf8   : > { %v2957_v60 = vsub.s32 32, %v1478_v56  ;;  %v1481_v53 = vshll.u32 %v4163_v57, %v1478_v56  ;;  %v1484_v43 = vshll.u32 %v4161_v59, %v1478_v56  ;;  %v1490_v5 = vshll.u32 %v4157_v63, %v1478_v56 }
  0xf9   : > { %v1406_v62 = vsel %vm1404_vm4, %v1405_v31, %v1401_v26  ;;  %v1493_v46 = vshll.u32 %v4155_v1, %v1478_v56  ;;  %v810_v9 = vmul.f32 %v809_v58, %v807_v47  ;;  %v1487_v13 = vshll.u32 %v4159_v61, %v1478_v56 }
  0xfa   : > { %v1407_v17 = vadd.s32 %v1406_v62, %v1402_v49  ;;  %v1482_v41 = vshrl.u32 %v4161_v59, %v2957_v60  ;;  %v1485_v6 = vshrl.u32 %v4159_v61, %v2957_v60  ;;  %v1488_v45 = vshrl.u32 %v4157_v63, %v2957_v60 }
  0xfb   : > { %v1491_v34 = vshrl.u32 %v4155_v1, %v2957_v60  ;;  %v1494_v48 = vshrl.u32 %v4151_v10, %v2957_v60  ;;  %vm691_vm8 = vcmp.lt.s32.totalorder %v2688_v35, 0  ;;  %v2995_v22 = vshll.u32 %v1472_v0, 8 }
  0xfc   : > { %v1408_v11 = vadd.s32 536870912, %v1407_v17  ;;  %v2976_v14 = vor.u32 %v1482_v41, %v1481_v53  ;;  %v2978_v19 = vor.u32 %v1485_v6, %v1484_v43  ;;  %v1489_v8 = vor.u32 %v1488_v45, %v1487_v13 }
  0xfd   : > { %v1492_v20 = vor.u32 %v1491_v34, %v1490_v5  ;;  %v1495_v44 = vor.u32 %v1494_v48, %v1493_v46  ;;  %v3002_v7 = vsel %vm2984_vm6, %v2684_v32, %v657_v23  ;;  %vm1496_vm9 = vcmp.lt.s32.totalorder %v2973_v12, 1 }
  0xfe   : > { %v2980_v3 = vshrl.u32 %v1408_v11, 30  ;;  %vm1499_vm10 = vcmp.lt.s32.totalorder %v2973_v12, 4  ;;  %v811_v36 = vxor.u32 2147483648, %v810_v9  ;;  %v1504_v15 = vsel %vm1496_vm9, %v2976_v14, %v2978_v19 }
  0xff   : > { %v1505_v27 = vsel %vm1499_vm10, %v1492_v20, 920167782  ;;  %v1509_v30 = vsel %vm1499_vm10, %v1495_v44, 1326507024  ;;  %vm1498_vm11 = vcmp.lt.s32.totalorder %v2973_v12, 3  ;;  %v1508_v37 = vsel %vm1496_vm9, %v2978_v19, %v1489_v8 }
 0x100   : > { %v1410_v33 = vshll.u32 %v2980_v3, 30  ;;  %v1157_v38 = vand.u32 2139095040, %v2997_v2  ;;  %vm1497_vm12 = vcmp.lt.s32.totalorder %v2973_v12, 2  ;;  %v1506_v24 = vsel %vm1498_vm11, %v1489_v8, %v1505_v27 }
 0x101   : > { %v1510_v39 = vsel %vm1498_vm11, %v1492_v20, %v1509_v30  ;;  %v1513_v26 = vand.u32 65535, %v2995_v22  ;;  %v1507_v40 = vsel %vm1497_vm12, %v1504_v15, %v1506_v24  ;;  %v1514_v56 = vshrl.u32 %v2995_v22, 16 }
 0x102   : > { %v3015_v54 = vsub.s32 %v1407_v17, %v1410_v33  ;;  %v812_v49 = vsel %vm691_vm8, %v811_v36, %v810_v9  ;;  %v1511_v31 = vsel %vm1497_vm12, %v1508_v37, %v1510_v39  ;;  %v1537_v23 = vand.u32 65535, %v1507_v40 }
 0x103   : > { %v1538_v47 = vshrl.u32 %v1507_v40, 16  ;;  %v1515_v62 = vand.u32 65535, %v1511_v31  ;;  %v1516_v0 = vshrl.u32 %v1511_v31, 16  ;;  %v1158_v53 = vshrl.u32 %v1157_v38, 23 }
 0x104   : > { %vm1412_vm13 = vcmp.lt.s32.totalorder %v3015_v54, 0  ;;  %v1413_v50 = vsub.s32 0, %v3015_v54  ;;  %v658_v43 = vsub.s32 4, %v2831_v28  ;;  %v3041_v17 = vmul.f32 %v3002_v7, %v3002_v7 }
 0x105   : > { %v1540_v5 = vmul.u32 %v1538_v47, %v1513_v26  ;;  %v3046_v46 = vsel %vm2990_vm7, %v2688_v35, %v812_v49  ;;  %v1518_v6 = vmul.u32 %v1516_v0, %v1513_v26  ;;  %v1519_v45 = vmul.u32 %v1515_v62, %v1514_v56 }
 0x106   : > { %v1414_v58 = vsel %vm1412_vm13, %v1413_v50, %v3015_v54  ;;  %v4149_v34 = vand.u32 2147483647, %v2997_v2  ;;  %v1539_v9 = vmul.u32 %v1537_v23, %v1513_v26  ;;  %v1541_v11 = vmul.u32 %v1537_v23, %v1514_v56 }
 0x107   : > { %v1415_v41 = vclz %v1414_v58  ;;  %v1543_v13 = vshll.u32 %v1540_v5, 16  ;;  %v1501_v20 = vsel %vm1499_vm10, %v1489_v8, 2102212464  ;;  %v1517_v44 = vmul.u32 %v1515_v62, %v1513_v26 }
 0x108   : > { %v1521_v33 = vshll.u32 %v1518_v6, 16  ;;  %v2279_v36 = vadd.s32 4294967169, %v1158_v53  ;;  %v1520_v15 = vmul.u32 %v1516_v0, %v1514_v56  ;;  %v1542_v27 = vmul.u32 %v1538_v47, %v1514_v56 }
 0x109   : > { %v2283_v48 = vadd.s32 4294967294, %v1415_v41  ;;  %vm1547_vm15 = vc.u32 %v1539_v9, %v1543_v13  ;;  %v1523_v30 = vshll.u32 %v1519_v45, 16  ;;  %v1480_v39 = vshrl.u32 %v4163_v57, %v2957_v60 }
 0x10a   : > { %vm1525_vm0 = vc.u32 %v1517_v44, %v1521_v33  ;;  %v1527_v37 = vadd.s32 %v1521_v33, %v1517_v44  ;;  %v1548_v38 = vsel %vm1547_vm15, 1, %v4167_v16  ;;  %v1545_v8 = vshll.u32 %v1541_v11, 16 }
 0x10b   : > { %vm2284_vm14 = vcmp.lt.s32.totalorder %v2283_v48, 0  ;;  %v1526_v50 = vsel %vm1525_vm0, 1, %v4167_v16  ;;  %v1549_v40 = vadd.s32 %v1543_v13, %v1539_v9  ;;  %v1550_v49 = vadd.s32 %v1548_v38, %v1542_v27 }
 0x10c   : > { %v3052_v24 = vsel %vm2284_vm14, 0, %v2283_v48  ;;  %v1528_v26 = vadd.s32 %v1526_v50, %v1520_v15  ;;  %vm1529_vm1 = vc.u32 %v1527_v37, %v1523_v30  ;;  %v3059_v56 = vmul.f32 %v3046_v46, %v3046_v46 }
 0x10d   : > { %v1500_v31 = vsel %vm1496_vm9, %v1480_v39, %v2976_v14  ;;  %v1502_v23 = vsel %vm1498_vm11, %v2978_v19, %v1501_v20  ;;  %v1530_v60 = vsel %vm1529_vm1, 1, %v4167_v16  ;;  %v1522_v47 = vshrl.u32 %v1518_v6, 16 }
 0x10e   : > { %v1532_v58 = vadd.s32 %v1530_v60, %v1528_v26  ;;  %vm1551_vm2 = vc.u32 %v1549_v40, %v1545_v8  ;;  %v1164_v62 = vadd.s32 1, %v2279_v36  ;;  %v1423_v0 = vsub.s32 4294967266, %v3052_v24 }
 0x10f   : > { %v1524_v53 = vshrl.u32 %v1519_v45, 16  ;;  %v1544_v41 = vshrl.u32 %v1540_v5, 16  ;;  %v1552_v48 = vsel %vm1551_vm2, 1, %v4167_v16  ;;  %v1419_v9 = vsub.s32 32, %v3052_v24 }
 0x110   : > { %v1533_v13 = vadd.s32 %v1532_v58, %v1522_v47  ;;  %v1554_v14 = vadd.s32 %v1552_v48, %v1550_v49  ;;  %vm1165_vm3 = vcmp.gt.s32.totalorder %v1164_v62, 0  ;;  %v670_v44 = vmul.f32 -0.00019511016, %v3041_v17 }
 0x111   : > { %v1403_v19 = vadd.s32 %v2947_v25, %v2943_v18  ;;  %v1503_v6 = vsel %vm1497_vm12, %v1500_v31, %v1502_v23  ;;  %v1166_v20 = vsel %vm1165_vm3, %v1164_v62, 0  ;;  %v1546_v45 = vshrl.u32 %v1541_v11, 16 }
 0x112   : > { %v3076_v33 = vadd.s32 %v1533_v13, %v1524_v53  ;;  %v1555_v5 = vadd.s32 %v1554_v14, %v1544_v41  ;;  %v1168_v36 = vand.u32 31, %v1166_v20  ;;  %v825_v15 = vmul.f32 -0.00019511016, %v3059_v56 }
 0x113   : > { %v1424_v27 = vadd.s32 127, %v1423_v0  ;;  %v3079_v30 = vadd.s32 %v1549_v40, %v1545_v8  ;;  %v1161_v37 = vand.u32 8388607, %v4149_v34  ;;  %v1421_v38 = vshrl.u32 %v1403_v19, %v1419_v9 }
 0x114   : > { %v1556_v39 = vadd.s32 %v1555_v5, %v1546_v45  ;;  %v1557_v18 = vmul.u32 %v2995_v22, %v1503_v6  ;;  %v3084_v25 = vsub.s32 32, %v1168_v36  ;;  %v3088_v12 = vshrl.u32 %v1166_v20, 5 }
 0x115   : > { %vm1559_vm4 = vc.u32 %v3076_v33, %v3079_v30  ;;  %v1171_v11 = vshll.u32 %v4163_v57, %v1168_v36  ;;  %v1174_v50 = vshll.u32 %v4161_v59, %v1168_v36  ;;  %v1177_v22 = vshll.u32 %v4159_v61, %v1168_v36 }
 0x116   : > { %v1560_v8 = vadd.s32 1, %v1556_v39  ;;  %v1172_v26 = vshrl.u32 %v4161_v59, %v3084_v25  ;;  %v1175_v40 = vshrl.u32 %v4159_v61, %v3084_v25  ;;  %v1425_v49 = vshll.u32 %v1424_v27, 23 }
 0x117   : > { %v1178_v31 = vshrl.u32 %v4157_v63, %v3084_v25  ;;  %v1180_v23 = vshll.u32 %v4157_v63, %v1168_v36  ;;  %v1181_v60 = vshrl.u32 %v4155_v1, %v3084_v25  ;;  %v1183_v0 = vshll.u32 %v4155_v1, %v1168_v36 }
 0x118   : > { %v1561_v47 = vsel %vm1559_vm4, %v1560_v8, %v1556_v39  ;;  %v3102_v58 = vor.u32 %v1172_v26, %v1171_v11  ;;  %v3104_v62 = vor.u32 %v1175_v40, %v1174_v50  ;;  %v671_v53 = vadd.f32 0.008332121, %v670_v44 }
 0x119   : > { %v1562_v41 = vadd.s32 %v1561_v47, %v1557_v18  ;;  %v1162_v48 = vor.u32 8388608, %v1161_v37  ;;  %v1182_v9 = vor.u32 %v1181_v60, %v1180_v23  ;;  %v1420_v13 = vshll.u32 %v3015_v54, %v3052_v24 }
 0x11a   : > { %v3109_v14 = vor.u32 %v1178_v31, %v1177_v22  ;;  %v1184_v19 = vshrl.u32 %v4151_v10, %v3084_v25  ;;  %vm1186_vm9 = vcmp.lt.s32.totalorder %v3088_v12, 1  ;;  %v1426_v6 = vor.u32 4788187, %v1425_v49 }
 0x11b   : > { %v1563_v20 = vadd.s32 536870912, %v1562_v41  ;;  %vm1188_vm10 = vcmp.lt.s32.totalorder %v3088_v12, 3  ;;  %vm1189_vm11 = vcmp.lt.s32.totalorder %v3088_v12, 4  ;;  %v826_v44 = vadd.f32 0.008332121, %v825_v15 }
 0x11c   : > { %v1422_v45 = vor.u32 %v1421_v38, %v1420_v13  ;;  %v1185_v5 = vor.u32 %v1184_v19, %v1183_v0  ;;  %v1194_v54 = vsel %vm1186_vm9, %v3102_v58, %v3104_v62  ;;  %v3125_v24 = vsel %vm536_vm5, %v658_v43, %v2831_v28 }
 0x11d   : > { %v3127_v36 = vshrl.u32 %v1563_v20, 30  ;;  %v1195_v27 = vsel %vm1189_vm11, %v1182_v9, 920167782  ;;  %v3131_v15 = vshll.u32 %v1162_v48, 8  ;;  %vm1187_vm12 = vcmp.lt.s32.totalorder %v3088_v12, 2  ;;  %v3157_v48 = vpop.f32.mrf.mxu2 }
 0x11e   : > { %v1196_v37 = vsel %vm1188_vm10, %v3109_v14, %v1195_v27  ;;  %v1198_v38 = vsel %vm1186_vm9, %v3104_v62, %v3109_v14  ;;  %v1199_v28 = vsel %vm1189_vm11, %v1185_v5, 1326507024  ;;  %v672_v43 = vmul.f32 %v671_v53, %v3041_v17  ;;  %4206 = vst [vmem:[#allocation16_spill] sm:$0xff] %v3157_v48 }
 0x11f   : > { %v1427_v39 = vand.u32 2147483647, %v1426_v6  ;;  %v1565_v18 = vshll.u32 %v3127_v36, 30  ;;  %v1197_v11 = vsel %vm1187_vm12, %v1194_v54, %v1196_v37  ;;  %v827_v50 = vmul.f32 %v826_v44, %v3059_v56 }
 0x120   : > { %v1429_v8 = vcvt.s32.f32 %v1422_v45  ;;  %v1200_v26 = vsel %vm1188_vm10, %v1182_v9, %v1199_v28  ;;  %v1228_v40 = vshrl.u32 %v1197_v11, 16  ;;  %v1203_v31 = vand.u32 65535, %v3131_v15 }
 0x121   : > { %v3150_v22 = vsub.s32 %v1562_v41, %v1565_v18  ;;  %v1201_v49 = vsel %vm1187_vm12, %v1198_v38, %v1200_v26  ;;  %v1227_v23 = vand.u32 65535, %v1197_v11  ;;  %v813_v60 = vsub.s32 4, %v2877_v29 }
 0x122   : > { %v1204_v47 = vshrl.u32 %v3131_v15, 16  ;;  %v1205_v0 = vand.u32 65535, %v1201_v49  ;;  %v1206_v53 = vshrl.u32 %v1201_v49, 16  ;;  %v1430_v13 = vmul.f32 %v1429_v8, %v1427_v39 }
 0x123   : > { %vm1567_vm5 = vcmp.lt.s32.totalorder %v3150_v22, 0  ;;  %v1568_v41 = vsub.s32 0, %v3150_v22  ;;  %v1230_v9 = vmul.u32 %v1228_v40, %v1203_v31  ;;  %v3161_v19 = vadd.f32 -0.16666654, %v672_v43 }
 0x124   : > { %v3163_v6 = vadd.f32 -0.16666654, %v827_v50  ;;  %vm1311_vm13 = vcmp.lt.s32.totalorder %v2698_v52, 0  ;;  %v1208_v20 = vmul.u32 %v1206_v53, %v1203_v31  ;;  %v1209_v44 = vmul.u32 %v1205_v0, %v1204_v47 }
 0x125   : > { %v1558_v45 = vadd.s32 %v3079_v30, %v3076_v33  ;;  %v1569_v5 = vsel %vm1567_vm5, %v1568_v41, %v3150_v22  ;;  %v1231_v54 = vmul.u32 %v1227_v23, %v1204_v47  ;;  %v4153_v27 = vand.u32 2147483647, %v3157_v48 }
 0x126   : > { %v1570_v37 = vclz %v1569_v5  ;;  %v1170_v38 = vshrl.u32 %v4163_v57, %v3084_v25  ;;  %v1207_v28 = vmul.u32 %v1205_v0, %v1203_v31  ;;  %v1211_v43 = vshll.u32 %v1208_v20, 16 }
 0x127   : > { %v1431_v39 = vxor.u32 2147483648, %v1430_v13  ;;  %v1210_v18 = vmul.u32 %v1206_v53, %v1204_v47  ;;  %v1229_v11 = vmul.u32 %v1227_v23, %v1203_v31  ;;  %v1233_v50 = vshll.u32 %v1230_v9, 16 }
 0x128   : > { %vm3174_vm14 = vcmp.le.f32.partialorder %v1309_v42, 0.7853982  ;;  %v4207_v8 = vmov 0  ;;  %v2286_v33 = vadd.s32 4294967294, %v1570_v37  ;;  %v1213_v30 = vshll.u32 %v1209_v44, 16 }
 0x129   : > { %v4208_v8 = vsel %vm3174_vm14, 4294967295, %v4207_v8  ;;  %vm1215_vm15 = vc.u32 %v1207_v28, %v1211_v43  ;;  %v1217_v26 = vadd.s32 %v1211_v43, %v1207_v28  ;;  %v1232_v41 = vmul.u32 %v1228_v40, %v1204_v47 }
 0x12a   : > { %4209 = vst [vmem:[#allocation17_spill] sm:$0xff] %v4208_v8  ;;  %v1216_v49 = vsel %vm1215_vm15, 1, %v4167_v16  ;;  %v1235_v25 = vshll.u32 %v1231_v54, 16  ;;  %vm1237_vm0 = vc.u32 %v1229_v11, %v1233_v50  ;;  %vm2287_vm1 = vcmp.lt.s32.totalorder %v2286_v33, 0 }
 0x12b   : > { %v1218_v0 = vadd.s32 %v1216_v49, %v1210_v18  ;;  %vm1219_vm2 = vc.u32 %v1217_v26, %v1213_v30  ;;  %v1238_v31 = vsel %vm1237_vm0, 1, %v4167_v16  ;;  %v1573_v23 = vsel %vm2287_vm1, 0, %v2286_v33 }
 0x12c   : > { %v1220_v42 = vsel %vm1219_vm2, 1, %v4167_v16  ;;  %v1239_v53 = vadd.s32 %v1233_v50, %v1229_v11  ;;  %v1240_v5 = vadd.s32 %v1238_v31, %v1232_v41  ;;  %v1574_v34 = vsub.s32 32, %v1573_v23 }
 0x12d   : > { %v1578_v37 = vsub.s32 4294967266, %v1573_v23  ;;  %v1212_v4 = vshrl.u32 %v1208_v20, 16  ;;  %v1222_v10 = vadd.s32 %v1220_v42, %v1218_v0  ;;  %v1432_v28 = vsel %vm1311_vm13, %v1431_v39, %v1430_v13 }
 0x12e   : > { %v1191_v40 = vsel %vm1189_vm11, %v3109_v14, 2102212464  ;;  %vm1241_vm3 = vc.u32 %v1239_v53, %v1235_v25  ;;  %v847_v47 = vand.u32 2139095040, %v3157_v48  ;;  %v1214_v18 = vshrl.u32 %v1209_v44, 16 }
 0x12f   : > { %v1579_v43 = vadd.s32 127, %v1578_v37  ;;  %v1223_v33 = vadd.s32 %v1222_v10, %v1212_v4  ;;  %v1242_v11 = vsel %vm1241_vm3, 1, %v4167_v16  ;;  %v1190_v20 = vsel %vm1186_vm9, %v1170_v38, %v3102_v58 }
 0x130   : > { %v1234_v50 = vshrl.u32 %v1230_v9, 16  ;;  %v1244_v30 = vadd.s32 %v1242_v11, %v1240_v5  ;;  %v848_v26 = vshrl.u32 %v847_v47, 23  ;;  %v1576_v13 = vshrl.u32 %v1558_v45, %v1574_v34 }
 0x131   : > { %v1580_v39 = vshll.u32 %v1579_v43, 23  ;;  %v1192_v14 = vsel %vm1188_vm10, %v3104_v62, %v1191_v40  ;;  %v3194_v49 = vadd.s32 %v1223_v33, %v1214_v18  ;;  %v3199_v10 = vsel %vm3174_vm14, %v2698_v52, %v1432_v28 }
 0x132   : > { %v1236_v4 = vshrl.u32 %v1231_v54, 16  ;;  %v1245_v44 = vadd.s32 %v1244_v30, %v1234_v50  ;;  %v2273_v41 = vadd.s32 4294967169, %v848_v26  ;;  %v1575_v58 = vshll.u32 %v3150_v22, %v1573_v23 }
 0x133   : > { %v1581_v9 = vor.u32 4788187, %v1580_v39  ;;  %v3202_v38 = vadd.s32 %v1239_v53, %v1235_v25  ;;  %v851_v34 = vand.u32 8388607, %v4153_v27  ;;  %v3211_v62 = vsel %vm691_vm8, %v813_v60, %v2877_v29 }
 0x134   : > { %v1193_v45 = vsel %vm1187_vm12, %v1190_v20, %v1192_v14  ;;  %v1246_v54 = vadd.s32 %v1245_v44, %v1236_v4  ;;  %v854_v0 = vadd.s32 1, %v2273_v41  ;;  %v674_v22 = vmul.f32 %v3161_v19, %v3041_v17 }
 0x135   : > { %v1433_v25 = vsub.s32 4, %v2980_v3  ;;  %v1577_v31 = vor.u32 %v1576_v13, %v1575_v58  ;;  %vm1249_vm4 = vc.u32 %v3194_v49, %v3202_v38  ;;  %v829_v23 = vmul.f32 %v3163_v6, %v3059_v56 }
 0x136   : > { %v3224_v29 = vmul.f32 %v3199_v10, %v3199_v10  ;;  %v1250_v12 = vadd.s32 1, %v1246_v54  ;;  %vm855_vm8 = vcmp.gt.s32.totalorder %v854_v0, 0  ;;  %v1582_v60 = vand.u32 2147483647, %v1581_v9 }
 0x137   : > { %v1247_v42 = vmul.u32 %v3131_v15, %v1193_v45  ;;  %v852_v53 = vor.u32 8388608, %v851_v34  ;;  %v856_v19 = vsel %vm855_vm8, %v854_v0, 0  ;;  %v1584_v40 = vcvt.s32.f32 %v1577_v31  ;;  %v3263_v0 = vpop.f32.mrf.mxu3 }
 0x138   : > { %4210 = vst [vmem:[#allocation18_spill] sm:$0xff] %v3224_v29  ;;  %v1251_v5 = vsel %vm1249_vm4, %v1250_v12, %v1246_v54  ;;  %v858_v37 = vand.u32 31, %v856_v19  ;;  %v675_v43 = vadd.f32 1.0, %v674_v22  ;;  %v830_v18 = vadd.f32 1.0, %v829_v23 }
 0x139   : > { %v1252_v47 = vadd.s32 %v1251_v5, %v1247_v42  ;;  %v3236_v15 = vsel %vm1311_vm13, %v1433_v25, %v2980_v3  ;;  %v1445_v11 = vmul.f32 -0.00019511016, %v3224_v29  ;;  %v1585_v20 = vmul.f32 %v1584_v40, %v1582_v60 }
 0x13a   : > { %4211 = vst [vmem:[#allocation19_spill] sm:$0xff] %v3236_v15  ;;  %v3238_v33 = vsub.s32 32, %v858_v37  ;;  %v3241_v30 = vshll.u32 %v852_v53, 8  ;;  %v3243_v26 = vshrl.u32 %v856_v19, 5  ;;  %v861_v13 = vshll.u32 %v4163_v57, %v858_v37 }
 0x13b   : > { %v1253_v50 = vadd.s32 536870912, %v1252_v47  ;;  %v864_v4 = vshll.u32 %v4161_v59, %v858_v37  ;;  %vm1466_vm9 = vcmp.lt.s32.totalorder %v2904_v51, 0  ;;  %v867_v58 = vshll.u32 %v4159_v61, %v858_v37 }
 0x13c   : > { %v862_v39 = vshrl.u32 %v4161_v59, %v3238_v33  ;;  %v865_v14 = vshrl.u32 %v4159_v61, %v3238_v33  ;;  %v868_v44 = vshrl.u32 %v4157_v63, %v3238_v33  ;;  %v871_v41 = vshrl.u32 %v4155_v1, %v3238_v33 }
 0x13d   : > { %v3250_v3 = vshrl.u32 %v1253_v50, 30  ;;  %v870_v9 = vshll.u32 %v4157_v63, %v858_v37  ;;  %v873_v34 = vshll.u32 %v4155_v1, %v858_v37  ;;  %v4212_v45 = vmov 1326507024  }
 0x13e   : > { %v874_v54 = vshrl.u32 %v4212_v45, %v3238_v33  ;;  %v3266_v22 = vmul.f32 %v675_v43, %v3002_v7  ;;  %v3269_v31 = vor.u32 %v862_v39, %v861_v13  ;;  %v3271_v23 = vor.u32 %v865_v14, %v864_v4 }
 0x13f   : > { %v1255_v25 = vshll.u32 %v3250_v3, 30  ;;  %v869_v60 = vor.u32 %v868_v44, %v867_v58  ;;  %v872_v42 = vor.u32 %v871_v41, %v870_v9  ;;  %v3277_v19 = vmul.f32 %v830_v18, %v3046_v46 }
 0x140   : > { %4213 = vst [vmem:[#allocation20_spill] sm:$0xff] %v3266_v22  ;;  %v875_v53 = vor.u32 %v874_v54, %v873_v34  ;;  %v1446_v5 = vadd.f32 0.008332121, %v1445_v11  ;;  %v4215_v7 = vand.u32 2147483647, %v2904_v51  ;;  %v4216_v37 = vmov 0 }
 0x141   : > { %4214 = vst [vmem:[#allocation21_spill] sm:$0xff] %v3277_v19  ;;  %v3285_v40 = vsub.s32 %v1252_v47, %v1255_v25  ;;  %v4154_v43 = vand.u32 2147483647, %v3263_v0  ;;  %v1586_v50 = vxor.u32 2147483648, %v1585_v20  ;;  %vm876_vm11 = vcmp.lt.s32.totalorder %v3243_v26, 1 }
 0x142   : > { %vm3281_vm10 = vcmp.le.f32.partialorder %v4215_v7, 0.7853982  ;;  %v893_v13 = vand.u32 65535, %v3241_v30  ;;  %v1002_v39 = vand.u32 2139095040, %v3263_v0  ;;  %vm879_vm5 = vcmp.lt.s32.totalorder %v3243_v26, 4 }
 0x143   : > { %v4217_v37 = vsel %vm3281_vm10, 4294967295, %v4216_v37  ;;  %vm1257_vm12 = vcmp.lt.s32.totalorder %v3285_v40, 0  ;;  %v1258_v46 = vsub.s32 0, %v3285_v40  ;;  %v884_v47 = vsel %vm876_vm11, %v3269_v31, %v3271_v23 }
 0x144   : > { %4218 = vst [vmem:[#allocation22_spill] sm:$0xff] %v4217_v37  ;;  %vm878_vm13 = vcmp.lt.s32.totalorder %v3243_v26, 3  ;;  %v885_v18 = vsel %vm879_vm5, %v872_v42, 920167782  ;;  %v888_v11 = vsel %vm876_vm11, %v3271_v23, %v869_v60  ;;  %v889_v14 = vsel %vm879_vm5, %v875_v53, 1326507024 }
 0x145   : > { %v1259_v4 = vsel %vm1257_vm12, %v1258_v46, %v3285_v40  ;;  %vm877_vm15 = vcmp.lt.s32.totalorder %v3243_v26, 2  ;;  %v886_v44 = vsel %vm878_vm13, %v869_v60, %v885_v18  ;;  %v890_v41 = vsel %vm878_vm13, %v872_v42, %v889_v14 }
 0x146   : > { %v1260_v58 = vclz %v1259_v4  ;;  %v887_v9 = vsel %vm877_vm15, %v884_v47, %v886_v44  ;;  %v891_v34 = vsel %vm877_vm15, %v888_v11, %v890_v41  ;;  %v1003_v54 = vshrl.u32 %v1002_v39, 23 }
 0x147   : > { %v1587_v25 = vsel %vm1466_vm9, %v1586_v50, %v1585_v20  ;;  %v894_v53 = vshrl.u32 %v3241_v30, 16  ;;  %v895_v7 = vand.u32 65535, %v891_v34  ;;  %v896_v46 = vshrl.u32 %v891_v34, 16 }
 0x148   : > { %v3320_v18 = vmul.f32 %v1446_v5, %v3224_v29  ;;  %v2280_v14 = vadd.s32 4294967294, %v1260_v58  ;;  %v918_v4 = vshrl.u32 %v887_v9, 16  ;;  %v1248_v47 = vadd.s32 %v3202_v38, %v3194_v49 }
 0x149   : > { %v898_v44 = vmul.u32 %v896_v46, %v893_v13  ;;  %v899_v11 = vmul.u32 %v895_v7, %v894_v53  ;;  %v917_v39 = vand.u32 65535, %v887_v9  ;;  %v3328_v20 = vsel %vm3281_vm10, %v2904_v51, %v1587_v25 }
 0x14a   : > { %vm2281_vm0 = vcmp.lt.s32.totalorder %v2280_v14, 0  ;;  %v2276_v50 = vadd.s32 4294967169, %v1003_v54  ;;  %v3332_v5 = vand.u32 8388607, %v4154_v43  ;;  %v897_v58 = vmul.u32 %v895_v7, %v893_v13 }
 0x14b   : > { %v1263_v41 = vsel %vm2281_vm0, 0, %v2280_v14  ;;  %v901_v34 = vshll.u32 %v898_v44, 16  ;;  %v920_v12 = vmul.u32 %v918_v4, %v893_v13  ;;  %v860_v49 = vshrl.u32 %v4163_v57, %v3238_v33 }
 0x14c   : > { %v1268_v6 = vsub.s32 4294967266, %v1263_v41  ;;  %v881_v38 = vsel %vm879_vm5, %v869_v60, 2102212464  ;;  %v900_v9 = vmul.u32 %v896_v46, %v894_v53  ;;  %v903_v25 = vshll.u32 %v899_v11, 16 }
 0x14d   : > { %vm905_vm1 = vc.u32 %v897_v58, %v901_v34  ;;  %v907_v28 = vadd.s32 %v901_v34, %v897_v58  ;;  %v921_v54 = vmul.u32 %v917_v39, %v894_v53  ;;  %v919_v42 = vmul.u32 %v917_v39, %v893_v13 }
 0x14e   : > { %v1269_v27 = vadd.s32 127, %v1268_v6  ;;  %v906_v43 = vsel %vm905_vm1, 1, %v4167_v16  ;;  %v1009_v14 = vadd.s32 1, %v2276_v50  ;;  %v1264_v7 = vsub.s32 32, %v1263_v41 }
 0x14f   : > { %v908_v1 = vadd.s32 %v906_v43, %v900_v9  ;;  %vm909_vm2 = vc.u32 %v907_v28, %v903_v25  ;;  %v923_v63 = vshll.u32 %v920_v12, 16  ;;  %v902_v59 = vshrl.u32 %v898_v44, 16 }
 0x150   : > { %v1270_v61 = vshll.u32 %v1269_v27, 23  ;;  %v910_v33 = vsel %vm909_vm2, 1, %v4167_v16  ;;  %v922_v57 = vmul.u32 %v918_v4, %v894_v53  ;;  %v925_v46 = vshll.u32 %v921_v54, 16 }
 0x151   : > { %v912_v60 = vadd.s32 %v910_v33, %v908_v1  ;;  %vm927_vm3 = vc.u32 %v919_v42, %v923_v63  ;;  %v929_v52 = vadd.s32 %v923_v63, %v919_v42  ;;  %v880_v6 = vsel %vm876_vm11, %v860_v49, %v3269_v31 }
 0x152   : > { %v882_v13 = vsel %vm878_vm13, %v3271_v23, %v881_v38  ;;  %v928_v28 = vsel %vm927_vm3, 1, %v4167_v16  ;;  %vm1010_vm4 = vcmp.gt.s32.totalorder %v1009_v14, 0  ;;  %v1266_v27 = vshrl.u32 %v1248_v47, %v1264_v7 }
 0x153   : > { %v913_v43 = vadd.s32 %v912_v60, %v902_v59  ;;  %v930_v44 = vadd.s32 %v928_v28, %v922_v57  ;;  %vm931_vm8 = vc.u32 %v929_v52, %v925_v46  ;;  %v1271_v53 = vor.u32 4788187, %v1270_v61 }
 0x154   : > { %v904_v1 = vshrl.u32 %v899_v11, 16  ;;  %v932_v4 = vsel %vm931_vm8, 1, %v4167_v16  ;;  %v1011_v63 = vsel %vm1010_vm4, %v1009_v14, 0  ;;  %v1265_v42 = vshll.u32 %v3285_v40, %v1263_v41 }
 0x155   : > { %v924_v39 = vshrl.u32 %v920_v12, 16  ;;  %v934_v31 = vadd.s32 %v932_v4, %v930_v44  ;;  %v1013_v50 = vand.u32 31, %v1011_v63  ;;  %v3351_v23 = vmul.f32 %v3328_v20, %v3328_v20 }
 0x156   : > { %v883_v47 = vsel %vm877_vm15, %v880_v6, %v882_v13  ;;  %v3355_v59 = vadd.s32 %v913_v43, %v904_v1  ;;  %v1007_v57 = vor.u32 8388608, %v3332_v5  ;;  %v1267_v61 = vor.u32 %v1266_v27, %v1265_v42 }
 0x157   : > { %4219 = vst [vmem:[#allocation23_spill] sm:$0xff] %v3351_v23  ;;  %v926_v11 = vshrl.u32 %v921_v54, 16  ;;  %v935_v58 = vadd.s32 %v934_v31, %v924_v39  ;;  %v1014_v34 = vsub.s32 32, %v1013_v50  ;;  %v1272_v49 = vand.u32 2147483647, %v1271_v53 }
 0x158   : > { %v3358_v40 = vadd.s32 %v929_v52, %v925_v46  ;;  %v3360_v12 = vshrl.u32 %v1011_v63, 5  ;;  %v4220_v41 = vmov 683565275   ;;  %v4221_v25 = vmov 2475754826  }
 0x159   : > { %v1016_v38 = vshll.u32 %v4220_v41, %v1013_v50  ;;  %v936_v9 = vadd.s32 %v935_v58, %v926_v11  ;;  %v1017_v14 = vshrl.u32 %v4221_v25, %v1014_v34  ;;  %v1019_v26 = vshll.u32 %v4221_v25, %v1013_v50 }
 0x15a   : > { %v4222_v7 = vmov 2131351028   ;;  %vm939_vm11 = vc.u32 %v3355_v59, %v3358_v40  ;;  %v4223_v5 = vmov 2102212464   ;;  %v4224_v52 = vmov 920167782  }
 0x15b   : > { %v1020_v33 = vshrl.u32 %v4222_v7, %v1014_v34  ;;  %v1023_v54 = vshrl.u32 %v4223_v5, %v1014_v34  ;;  %v1025_v60 = vshll.u32 %v4223_v5, %v1013_v50  ;;  %v1026_v46 = vshrl.u32 %v4224_v52, %v1014_v34 }
 0x15c   : > { %v940_v6 = vadd.s32 1, %v936_v9  ;;  %v1018_v13 = vor.u32 %v1017_v14, %v1016_v38  ;;  %v1022_v27 = vshll.u32 %v4222_v7, %v1013_v50  ;;  %v1600_v43 = vmul.f32 -0.00019511016, %v3351_v23 }
 0x15d   : > { %v3371_v28 = vor.u32 %v1020_v33, %v1019_v26  ;;  %v1274_v44 = vcvt.s32.f32 %v1267_v61  ;;  %v937_v53 = vmul.u32 %v3241_v30, %v883_v47  ;;  %v1027_v1 = vor.u32 %v1026_v46, %v1025_v60 }
 0x15e   : > { %v941_v4 = vsel %vm939_vm11, %v940_v6, %v936_v9  ;;  %v1024_v63 = vor.u32 %v1023_v54, %v1022_v27  ;;  %v1028_v42 = vshll.u32 %v4224_v52, %v1013_v50  ;;  %v1029_v39 = vshrl.u32 %v4212_v45, %v1014_v34 }
 0x15f   : > { %v1448_v31 = vadd.f32 -0.16666654, %v3320_v18  ;;  %vm1156_vm12 = vcmp.lt.s32.totalorder %v2997_v2, 0  ;;  %v942_v11 = vadd.s32 %v941_v4, %v937_v53  ;;  %vm1031_vm5 = vcmp.lt.s32.totalorder %v3360_v12, 1 }
 0x160   : > { %v3381_v58 = vshll.u32 %v1007_v57, 8  ;;  %v1275_v38 = vmul.f32 %v1274_v44, %v1272_v49  ;;  %v1030_v61 = vor.u32 %v1029_v39, %v1028_v42  ;;  %vm1034_vm13 = vcmp.lt.s32.totalorder %v3360_v12, 4  ;;  %v3416_v44 = vpop.f32.mrf.mxu0 }
 0x161   : > { %v1039_v30 = vsel %vm1031_vm5, %v1018_v13, %v3371_v28  ;;  %v1601_v50 = vadd.f32 0.008332121, %v1600_v43  ;;  %v943_v47 = vadd.s32 536870912, %v942_v11  ;;  %vm1033_vm15 = vcmp.lt.s32.totalorder %v3360_v12, 3 }
 0x162   : > { %v1040_v18 = vsel %vm1034_vm13, %v1027_v1, 920167782  ;;  %vm1032_vm0 = vcmp.lt.s32.totalorder %v3360_v12, 2  ;;  %v1043_v49 = vsel %vm1031_vm5, %v3371_v28, %v1024_v63  ;;  %v1044_v9 = vsel %vm1034_vm13, %v1030_v61, 1326507024 }
 0x163   : > { %v1041_v57 = vsel %vm1033_vm15, %v1024_v63, %v1040_v18  ;;  %v4225_v14 = vsub.s32 4, %v3127_v36  ;;  %v3405_v33 = vshrl.u32 %v943_v47, 30  ;;  %v1045_v60 = vsel %vm1033_vm15, %v1027_v1, %v1044_v9 }
 0x164   : > { %v1042_v54 = vsel %vm1032_vm0, %v1039_v30, %v1041_v57  ;;  %v3412_v46 = vmul.f32 %v1448_v31, %v3224_v29  ;;  %v1276_v6 = vxor.u32 2147483648, %v1275_v38  ;;  %v1046_v27 = vsel %vm1032_vm0, %v1043_v49, %v1045_v60 }
 0x165   : > { %v3403_v26 = vsel %vm1466_vm9, %v4225_v14, %v3127_v36  ;;  %v1073_v43 = vshrl.u32 %v1042_v54, 16  ;;  %v945_v36 = vshll.u32 %v3405_v33, 30  ;;  %v1048_v53 = vand.u32 65535, %v3381_v58 }
 0x166   : > { %4226 = vst [vmem:[#allocation24_spill] sm:$0xff] %v3403_v26  ;;  %v1050_v4 = vand.u32 65535, %v1046_v27  ;;  %v1072_v42 = vand.u32 65535, %v1042_v54  ;;  %v3421_v39 = vmul.f32 %v1601_v50, %v3351_v23  ;;  %v1049_v1 = vshrl.u32 %v3381_v58, 16 }
 0x167   : > { %v1051_v31 = vshrl.u32 %v1046_v27, 16  ;;  %v946_v30 = vsub.s32 %v942_v11, %v945_v36  ;;  %v1015_v47 = vshrl.u32 %v4220_v41, %v1014_v34  ;;  %v1075_v18 = vmul.u32 %v1073_v43, %v1048_v53 }
 0x168   : > { %v1932_v57 = vand.u32 2139095040, %v3416_v44  ;;  %v1277_v49 = vsel %vm1156_vm12, %v1276_v6, %v1275_v38  ;;  %v938_v9 = vadd.s32 %v3358_v40, %v3355_v59  ;;  %v1054_v50 = vmul.u32 %v1050_v4, %v1049_v1 }
 0x169   : > { %v1053_v14 = vmul.u32 %v1051_v31, %v1048_v53  ;;  %vm947_vm9 = vcmp.lt.s32.totalorder %v946_v30, 0  ;;  %v948_v54 = vsub.s32 0, %v946_v30  ;;  %v1035_v60 = vsel %vm1031_vm5, %v1015_v47, %v1018_v13 }
 0x16a   : > { %v1076_v27 = vmul.u32 %v1072_v42, %v1049_v1  ;;  %v1036_v34 = vsel %vm1034_vm13, %v1024_v63, 2102212464  ;;  %v1052_v11 = vmul.u32 %v1050_v4, %v1048_v53  ;;  %v1074_v61 = vmul.u32 %v1072_v42, %v1048_v53 }
 0x16b   : > { %v1056_v36 = vshll.u32 %v1053_v14, 16  ;;  %v949_v16 = vsel %vm947_vm9, %v948_v54, %v946_v30  ;;  %v1055_v51 = vmul.u32 %v1051_v31, %v1049_v1  ;;  %v1077_v38 = vmul.u32 %v1073_v43, %v1049_v1 }
 0x16c   : > { %v1078_v6 = vshll.u32 %v1075_v18, 16  ;;  %v4227_v59 = vand.u32 2147483647, %v2997_v2  ;;  %v4228_v40 = vmov 0  ;;  %v950_v19 = vclz %v949_v16 }
 0x16d   : > { %v1058_v22 = vshll.u32 %v1054_v50, 16  ;;  %vm1060_vm2 = vc.u32 %v1052_v11, %v1056_v36  ;;  %v1062_v13 = vadd.s32 %v1056_v36, %v1052_v11  ;;  %v4231_v47 = vmov 0  }
 0x16e   : > { %vm3437_vm1 = vcmp.le.f32.partialorder %v4227_v59, 0.7853982  ;;  %v1061_v35 = vsel %vm1060_vm2, 1, %v4231_v47  ;;  %v1080_v63 = vshll.u32 %v1076_v27, 16  ;;  %vm1082_vm3 = vc.u32 %v1074_v61, %v1078_v6 }
 0x16f   : > { %v4229_v40 = vsel %vm3437_vm1, 4294967295, %v4228_v40  ;;  %v1084_v4 = vadd.s32 %v1078_v6, %v1074_v61  ;;  %v2274_v53 = vadd.s32 4294967294, %v950_v19  ;;  %v1063_v42 = vadd.s32 %v1061_v35, %v1055_v51 }
 0x170   : > { %4230 = vst [vmem:[#allocation25_spill] sm:$0xff] %v4229_v40  ;;  %vm1064_vm4 = vc.u32 %v1062_v13, %v1058_v22  ;;  %v1083_v43 = vsel %vm1082_vm3, 1, %v4231_v47  ;;  %v1037_v1 = vsel %vm1033_vm15, %v3371_v28, %v1036_v34  ;;  %v1057_v54 = vshrl.u32 %v1053_v14, 16 }
 0x171   : > { %v1065_v31 = vsel %vm1064_vm4, 1, %v4231_v47  ;;  %v1085_v16 = vadd.s32 %v1083_v43, %v1077_v38  ;;  %vm1086_vm8 = vc.u32 %v1084_v4, %v1080_v63  ;;  %vm2275_vm11 = vcmp.lt.s32.totalorder %v2274_v53, 0 }
 0x172   : > { %v1067_v11 = vadd.s32 %v1065_v31, %v1063_v42  ;;  %v1087_v36 = vsel %vm1086_vm8, 1, %v4231_v47  ;;  %v953_v59 = vsel %vm2275_vm11, 0, %v2274_v53  ;;  %v1079_v61 = vshrl.u32 %v1075_v18, 16 }
 0x173   : > { %v1089_v19 = vadd.s32 %v1087_v36, %v1085_v16  ;;  %v1933_v35 = vshrl.u32 %v1932_v57, 23  ;;  %v954_v51 = vsub.s32 32, %v953_v59  ;;  %v958_v22 = vsub.s32 4294967266, %v953_v59 }
 0x174   : > { %v1059_v6 = vshrl.u32 %v1054_v50, 16  ;;  %v1068_v13 = vadd.s32 %v1067_v11, %v1057_v54  ;;  %v1081_v32 = vshrl.u32 %v1076_v27, 16  ;;  %v3448_v29 = vadd.s32 %v1084_v4, %v1080_v63 }
 0x175   : > { %v1090_v28 = vadd.s32 %v1089_v19, %v1079_v61  ;;  %v2294_v34 = vadd.s32 4294967169, %v1933_v35  ;;  %v955_v38 = vshll.u32 %v946_v30, %v953_v59  ;;  %v956_v43 = vshrl.u32 %v938_v9, %v954_v51 }
 0x176   : > { %v959_v15 = vadd.s32 127, %v958_v22  ;;  %v3450_v14 = vadd.s32 %v1068_v13, %v1059_v6  ;;  %v3455_v18 = vsel %vm3437_vm1, %v2997_v2, %v1277_v49  ;;  %v1038_v57 = vsel %vm1032_vm0, %v1035_v60, %v1037_v1 }
 0x177   : > { %v1091_v50 = vadd.s32 %v1090_v28, %v1081_v32  ;;  %v1939_v53 = vadd.s32 1, %v2294_v34  ;;  %v957_v27 = vor.u32 %v956_v43, %v955_v38  ;;  %v4232_v30 = vand.u32 2147483647, %v3416_v44 }
 0x178   : > { %v960_v63 = vshll.u32 %v959_v15, 23  ;;  %vm1094_vm5 = vc.u32 %v3450_v14, %v3448_v29  ;;  %v1450_v4 = vadd.f32 1.0, %v3412_v46  ;;  %v1278_v12 = vsub.s32 4, %v3250_v3 }
 0x179   : > { %v1936_v9 = vand.u32 8388607, %v4232_v30  ;;  %v1095_v42 = vadd.s32 1, %v1091_v50  ;;  %vm1940_vm13 = vcmp.gt.s32.totalorder %v1939_v53, 0  ;;  %v1092_v60 = vmul.u32 %v3381_v58, %v1038_v57 }
 0x17a   : > { %v961_v32 = vor.u32 4788187, %v960_v63  ;;  %v1941_v15 = vsel %vm1940_vm13, %v1939_v53, 0  ;;  %v1603_v1 = vadd.f32 -0.16666654, %v3421_v39  ;;  %v3472_v31 = vmul.f32 %v3455_v18, %v3455_v18 }
 0x17b   : > { %v1096_v16 = vsel %vm1094_vm5, %v1095_v42, %v1091_v50  ;;  %v1943_v46 = vand.u32 31, %v1941_v15  ;;  %v964_v11 = vcvt.s32.f32 %v957_v27  ;;  %v1937_v59 = vor.u32 8388608, %v1936_v9  ;;  %v4268_v42 = vld [vmem:[#allocation20_spill] sm:$0xff] }
 0x17c   : > { %v962_v54 = vand.u32 2147483647, %v961_v32  ;;  %v1097_v36 = vadd.s32 %v1096_v16, %v1092_v60  ;;  %v3474_v61 = vshrl.u32 %v1941_v15, 5  ;;  %vm846_vm15 = vcmp.lt.s32.totalorder %v3157_v48, 0 }
 0x17d   : > { %v1944_v19 = vsub.s32 32, %v1943_v46  ;;  %v1946_v35 = vshll.u32 %v4220_v41, %v1943_v46  ;;  %v1949_v58 = vshll.u32 %v4221_v25, %v1943_v46  ;;  %v1952_v22 = vshll.u32 %v4222_v7, %v1943_v46 }
 0x17e   : > { %v965_v39 = vmul.f32 %v964_v11, %v962_v54  ;;  %v1098_v51 = vadd.s32 536870912, %v1097_v36  ;;  %v1955_v6 = vshll.u32 %v4223_v5, %v1943_v46  ;;  %v1958_v38 = vshll.u32 %v4224_v52, %v1943_v46 }
 0x17f   : > { %v1947_v13 = vshrl.u32 %v4221_v25, %v1944_v19  ;;  %v1950_v28 = vshrl.u32 %v4222_v7, %v1944_v19  ;;  %v1953_v34 = vshrl.u32 %v4223_v5, %v1944_v19  ;;  %v1604_v43 = vmul.f32 %v1603_v1, %v3351_v23  ;;  %v3510_v1 = vpop.f32.mrf.mxu2 }
 0x180   : > { %v3486_v57 = vshrl.u32 %v1098_v51, 30  ;;  %v1956_v50 = vshrl.u32 %v4224_v52, %v1944_v19  ;;  %v1959_v53 = vshrl.u32 %v4212_v45, %v1944_v19  ;;  %v3491_v27 = vmul.f32 %v1450_v4, %v3199_v10 }
 0x181   : > { %v3496_v63 = vsel %vm1156_vm12, %v1278_v12, %v3250_v3  ;;  %v1290_v30 = vmul.f32 -0.00019511016, %v3472_v31  ;;  %v4235_v9 = vand.u32 2147483647, %v3157_v48  ;;  %v3505_v32 = vshll.u32 %v1937_v59, 8 }
 0x182   : > { %4233 = vst [vmem:[#allocation26_spill] sm:$0xff] %v3491_v27  ;;  %v966_v60 = vxor.u32 2147483648, %v965_v39  ;;  %v1100_v15 = vshll.u32 %v3486_v57, 30  ;;  %v1948_v10 = vor.u32 %v1947_v13, %v1946_v35  ;;  %v3508_v4 = vor.u32 %v1950_v28, %v1949_v58 }
 0x183   : > { %4234 = vst [vmem:[#allocation27_spill] sm:$0xff] %v3496_v63  ;;  %vm3501_vm0 = vcmp.le.f32.partialorder %v4235_v9, 0.7853982  ;;  %v1954_v3 = vor.u32 %v1953_v34, %v1952_v22  ;;  %v1957_v12 = vor.u32 %v1956_v50, %v1955_v6  ;;  %v1960_v16 = vor.u32 %v1959_v53, %v1958_v38 }
 0x184   : > { %vm1961_vm12 = vcmp.lt.s32.totalorder %v3474_v61, 1  ;;  %v3513_v46 = vadd.f32 1.0, %v1604_v43  ;;  %v1101_v11 = vsub.s32 %v1097_v36, %v1100_v15  ;;  %vm1964_vm9 = vcmp.lt.s32.totalorder %v3474_v61, 4 }
 0x185   : > { %v1291_v59 = vadd.f32 0.008332121, %v1290_v30  ;;  %vm1963_vm2 = vcmp.lt.s32.totalorder %v3474_v61, 3  ;;  %v1978_v35 = vand.u32 65535, %v3505_v32  ;;  %v4180_v58 = vand.u32 2147483647, %v3510_v1 }
 0x186   : > { %vm1102_vm3 = vcmp.lt.s32.totalorder %v1101_v11, 0  ;;  %v1103_v51 = vsub.s32 0, %v1101_v11  ;;  %v1969_v22 = vsel %vm1961_vm12, %v1948_v10, %v3508_v4  ;;  %v1622_v6 = vand.u32 2139095040, %v3510_v1 }
 0x187   : > { %v967_v36 = vsel %vm846_vm15, %v966_v60, %v965_v39  ;;  %v1970_v13 = vsel %vm1964_vm9, %v1957_v12, 920167782  ;;  %v1973_v28 = vsel %vm1961_vm12, %v3508_v4, %v1954_v3  ;;  %v1974_v34 = vsel %vm1964_vm9, %v1960_v16, 1326507024 }
 0x188   : > { %v1104_v38 = vsel %vm1102_vm3, %v1103_v51, %v1101_v11  ;;  %vm1962_vm4 = vcmp.lt.s32.totalorder %v3474_v61, 2  ;;  %v1971_v43 = vsel %vm1963_vm2, %v1954_v3, %v1970_v13  ;;  %v1975_v50 = vsel %vm1963_vm2, %v1957_v12, %v1974_v34 }
 0x189   : > { %v1105_v39 = vclz %v1104_v38  ;;  %v1945_v53 = vshrl.u32 %v4220_v41, %v1944_v19  ;;  %v1972_v30 = vsel %vm1962_vm4, %v1969_v22, %v1971_v43  ;;  %v1976_v9 = vsel %vm1962_vm4, %v1973_v28, %v1975_v50 }
 0x18a   : > { %v3548_v60 = vsel %vm3501_vm0, %v3157_v48, %v967_v36  ;;  %v1979_v15 = vshrl.u32 %v3505_v32, 16  ;;  %v1980_v16 = vand.u32 65535, %v1976_v9  ;;  %v1981_v51 = vshrl.u32 %v1976_v9, 16 }
 0x18b   : > { %v3552_v12 = vmul.f32 %v1291_v59, %v3472_v31  ;;  %v1093_v19 = vadd.s32 %v3448_v29, %v3450_v14  ;;  %v2277_v13 = vadd.s32 4294967294, %v1105_v39  ;;  %v2003_v22 = vshrl.u32 %v1972_v30, 16 }
 0x18c   : > { %v1983_v34 = vmul.u32 %v1981_v51, %v1978_v35  ;;  %v1984_v38 = vmul.u32 %v1980_v16, %v1979_v15  ;;  %v1623_v28 = vshrl.u32 %v1622_v6, 23  ;;  %v3558_v43 = vand.u32 8388607, %v4180_v58 }
 0x18d   : > { %v3562_v36 = vmul.f32 %v3548_v60, %v3548_v60  ;;  %vm2278_vm8 = vcmp.lt.s32.totalorder %v2277_v13, 0  ;;  %v1965_v59 = vsel %vm1961_vm12, %v1945_v53, %v1948_v10  ;;  %v2002_v50 = vand.u32 65535, %v1972_v30 }
 0x18e   : > { %v1108_v9 = vsel %vm2278_vm8, 0, %v2277_v13  ;;  %v1966_v29 = vsel %vm1964_vm9, %v1954_v3, 2102212464  ;;  %v1982_v14 = vmul.u32 %v1980_v16, %v1978_v35  ;;  %v1986_v39 = vshll.u32 %v1983_v34, 16 }
 0x18f   : > { %v1109_v6 = vsub.s32 32, %v1108_v9  ;;  %v1113_v54 = vsub.s32 4294967266, %v1108_v9  ;;  %v1985_v49 = vmul.u32 %v1981_v51, %v1979_v15  ;;  %v2005_v58 = vmul.u32 %v2003_v22, %v1978_v35 }
 0x190   : > { %v1110_v2 = vshll.u32 %v1101_v11, %v1108_v9  ;;  %v1988_v27 = vshll.u32 %v1984_v38, 16  ;;  %vm1990_vm11 = vc.u32 %v1982_v14, %v1986_v39  ;;  %v1992_v63 = vadd.s32 %v1986_v39, %v1982_v14 }
 0x191   : > { %v1111_v40 = vshrl.u32 %v1093_v19, %v1109_v6  ;;  %v1114_v23 = vadd.s32 127, %v1113_v54  ;;  %v1991_v26 = vsel %vm1990_vm11, 1, %v4231_v47  ;;  %v2006_v10 = vmul.u32 %v2002_v50, %v1979_v15 }
 0x192   : > { %v1993_v53 = vadd.s32 %v1991_v26, %v1985_v49  ;;  %vm1994_vm5 = vc.u32 %v1992_v63, %v1988_v27  ;;  %v2004_v30 = vmul.u32 %v2002_v50, %v1978_v35  ;;  %v2288_v13 = vadd.s32 4294967169, %v1623_v28 }
 0x193   : > { %v1112_v3 = vor.u32 %v1111_v40, %v1110_v2  ;;  %v1115_v16 = vshll.u32 %v1114_v23, 23  ;;  %v1995_v37 = vsel %vm1994_vm5, 1, %v4231_v47  ;;  %v2008_v8 = vshll.u32 %v2005_v58, 16 }
 0x194   : > { %v1967_v11 = vsel %vm1963_vm2, %v3508_v4, %v1966_v29  ;;  %v1987_v51 = vshrl.u32 %v1983_v34, 16  ;;  %v1997_v9 = vadd.s32 %v1995_v37, %v1993_v53  ;;  %v2007_v19 = vmul.u32 %v2003_v22, %v1979_v15 }
 0x195   : > { %vm1001_vm13 = vcmp.lt.s32.totalorder %v3263_v0, 0  ;;  %v1116_v54 = vor.u32 4788187, %v1115_v16  ;;  %v2010_v14 = vshll.u32 %v2006_v10, 16  ;;  %vm2012_vm12 = vc.u32 %v2004_v30, %v2008_v8 }
 0x196   : > { %v2014_v26 = vadd.s32 %v2008_v8, %v2004_v30  ;;  %v1989_v49 = vshrl.u32 %v1984_v38, 16  ;;  %v1998_v27 = vadd.s32 %v1997_v9, %v1987_v51  ;;  %v2013_v2 = vsel %vm2012_vm12, 1, %v4231_v47 }
 0x197   : > { %v1629_v23 = vadd.s32 1, %v2288_v13  ;;  %v1117_v40 = vand.u32 2147483647, %v1116_v54  ;;  %v1119_v63 = vcvt.s32.f32 %v1112_v3  ;;  %v2015_v35 = vadd.s32 %v2013_v2, %v2007_v19 }
 0x198   : > { %vm2016_vm9 = vc.u32 %v2014_v26, %v2010_v14  ;;  %v1968_v4 = vsel %vm1962_vm4, %v1965_v59, %v1967_v11  ;;  %v3577_v37 = vadd.s32 %v1998_v27, %v1989_v49  ;;  %v4238_v22 = vand.u32 2147483647, %v3263_v0 }
 0x199   : > { %v2017_v15 = vsel %vm2016_vm9, 1, %v4231_v47  ;;  %vm1630_vm2 = vcmp.gt.s32.totalorder %v1629_v23, 0  ;;  %v1120_v34 = vmul.f32 %v1119_v63, %v1117_v40  ;;  %v2009_v38 = vshrl.u32 %v2005_v58, 16 }
 0x19a   : > { %vm3582_vm3 = vcmp.le.f32.partialorder %v4238_v22, 0.7853982  ;;  %v2019_v28 = vadd.s32 %v2017_v15, %v2015_v35  ;;  %v1631_v50 = vsel %vm1630_vm2, %v1629_v23, 0  ;;  %v3588_v29 = vmul.f32 %v3513_v46, %v3328_v20 }
 0x19b   : > { %v1293_v61 = vadd.f32 -0.16666654, %v3552_v12  ;;  %v3591_v59 = vadd.s32 %v2014_v26, %v2010_v14  ;;  %v1633_v39 = vand.u32 31, %v1631_v50  ;;  %v980_v6 = vmul.f32 -0.00019511016, %v3562_v36 }
 0x19c   : > { %4241 = vst [vmem:[#allocation28_spill] sm:$0xff] %v3588_v29  ;;  %v1121_v53 = vxor.u32 2147483648, %v1120_v34  ;;  %v2011_v30 = vshrl.u32 %v2006_v10, 16  ;;  %v2020_v13 = vadd.s32 %v2019_v28, %v2009_v38  ;;  %v2022_v3 = vmul.u32 %v3505_v32, %v1968_v4 }
 0x19d   : > { %vm2024_vm4 = vc.u32 %v3577_v37, %v3591_v59  ;;  %v1627_v58 = vor.u32 8388608, %v3558_v43  ;;  %v1634_v16 = vsub.s32 32, %v1633_v39  ;;  %v3598_v46 = vshrl.u32 %v1631_v50, 5 }
 0x19e   : > { %v2021_v20 = vadd.s32 %v2020_v13, %v2011_v30  ;;  %v1636_v12 = vshll.u32 %v4220_v41, %v1633_v39  ;;  %v1639_v11 = vshll.u32 %v4221_v25, %v1633_v39  ;;  %v1122_v51 = vsel %vm1001_vm13, %v1121_v53, %v1120_v34 }
 0x19f   : > { %v1637_v10 = vshrl.u32 %v4221_v25, %v1634_v16  ;;  %v1640_v32 = vshrl.u32 %v4222_v7, %v1634_v16  ;;  %v1642_v9 = vshll.u32 %v4222_v7, %v1633_v39  ;;  %v1643_v43 = vshrl.u32 %v4223_v5, %v1634_v16 }
 0x1a0   : > { %v2025_v19 = vadd.s32 1, %v2021_v20  ;;  %v1645_v54 = vshll.u32 %v4223_v5, %v1633_v39  ;;  %v1646_v14 = vshrl.u32 %v4224_v52, %v1634_v16  ;;  %v1648_v27 = vshll.u32 %v4224_v52, %v1633_v39 }
 0x1a1   : > { %v1638_v26 = vor.u32 %v1637_v10, %v1636_v12  ;;  %v3610_v49 = vor.u32 %v1640_v32, %v1639_v11  ;;  %v1649_v2 = vshrl.u32 %v4212_v45, %v1634_v16  ;;  %v981_v23 = vadd.f32 0.008332121, %v980_v6 }
 0x1a2   : > { %v2026_v40 = vsel %vm2024_vm4, %v2025_v19, %v2021_v20  ;;  %v3617_v63 = vor.u32 %v1643_v43, %v1642_v9  ;;  %v1647_v35 = vor.u32 %v1646_v14, %v1645_v54  ;;  %v3622_v4 = vsel %vm3582_vm3, %v3263_v0, %v1122_v51 }
 0x1a3   : > { %v2027_v15 = vadd.s32 %v2026_v40, %v2022_v3  ;;  %v1650_v22 = vor.u32 %v1649_v2, %v1648_v27  ;;  %vm1651_vm8 = vcmp.lt.s32.totalorder %v3598_v46, 1  ;;  %v968_v34 = vsub.s32 4, %v3405_v33 }
 0x1a4   : > { %vm1654_vm11 = vcmp.lt.s32.totalorder %v3598_v46, 4  ;;  %v1659_v38 = vsel %vm1651_vm8, %v1638_v26, %v3610_v49  ;;  %v3630_v28 = vshll.u32 %v1627_v58, 8  ;;  %vm1653_vm5 = vcmp.lt.s32.totalorder %v3598_v46, 3 }
 0x1a5   : > { %v2028_v50 = vadd.s32 536870912, %v2027_v15  ;;  %v1660_v39 = vsel %vm1654_vm11, %v1647_v35, 920167782  ;;  %v1663_v6 = vsel %vm1651_vm8, %v3610_v49, %v3617_v63  ;;  %v3641_v53 = vmul.f32 %v3622_v4, %v3622_v4 }
 0x1a6   : > { %vm1652_vm12 = vcmp.lt.s32.totalorder %v3598_v46, 2  ;;  %v1661_v30 = vsel %vm1653_vm5, %v3617_v63, %v1660_v39  ;;  %v1664_v13 = vsel %vm1654_vm11, %v1650_v22, 1326507024  ;;  %v982_v3 = vmul.f32 %v981_v23, %v3562_v36 }
 0x1a7   : > { %v3650_v58 = vshrl.u32 %v2028_v50, 30  ;;  %v1662_v20 = vsel %vm1652_vm12, %v1659_v38, %v1661_v30  ;;  %v1665_v12 = vsel %vm1653_vm5, %v1647_v35, %v1664_v13  ;;  %v3657_v11 = vmul.f32 %v1293_v61, %v3472_v31 }
 0x1a8   : > { %v1666_v51 = vsel %vm1652_vm12, %v1663_v6, %v1665_v12  ;;  %v1692_v10 = vand.u32 65535, %v1662_v20  ;;  %v1693_v32 = vshrl.u32 %v1662_v20, 16  ;;  %v1668_v19 = vand.u32 65535, %v3630_v28 }
 0x1a9   : > { %v2030_v9 = vshll.u32 %v3650_v58, 30  ;;  %v1670_v43 = vand.u32 65535, %v1666_v51  ;;  %v1671_v54 = vshrl.u32 %v1666_v51, 16  ;;  %v3666_v14 = vsel %vm846_vm15, %v968_v34, %v3405_v33 }
 0x1aa   : > { %v1135_v61 = vmul.f32 -0.00019511016, %v3641_v53  ;;  %v1669_v2 = vshrl.u32 %v3630_v28, 16  ;;  %v3671_v23 = vadd.f32 -0.16666654, %v982_v3  ;;  %v1695_v22 = vmul.u32 %v1693_v32, %v1668_v19 }
 0x1ab   : > { %v2031_v40 = vsub.s32 %v2027_v15, %v2030_v9  ;;  %v1673_v35 = vmul.u32 %v1671_v54, %v1668_v19  ;;  %v2023_v38 = vadd.s32 %v3591_v59, %v3577_v37  ;;  %v1635_v50 = vshrl.u32 %v4220_v41, %v1634_v16 }
 0x1ac   : > { %v1674_v39 = vmul.u32 %v1670_v43, %v1669_v2  ;;  %v1696_v6 = vmul.u32 %v1692_v10, %v1669_v2  ;;  %v1672_v34 = vmul.u32 %v1670_v43, %v1668_v19  ;;  %v1136_v13 = vadd.f32 0.008332121, %v1135_v61  ;;  %v3679_v43 = vpop.f32.mrf.mxu3 }
 0x1ad   : > { %vm2032_vm15 = vcmp.lt.s32.totalorder %v2031_v40, 0  ;;  %v2033_v33 = vsub.s32 0, %v2031_v40  ;;  %v1676_v30 = vshll.u32 %v1673_v35, 16  ;;  %v1675_v20 = vmul.u32 %v1671_v54, %v1669_v2 }
 0x1ae   : > { %v1678_v12 = vshll.u32 %v1674_v39, 16  ;;  %v1694_v51 = vmul.u32 %v1692_v10, %v1668_v19  ;;  %v1698_v9 = vshll.u32 %v1695_v22, 16  ;;  %v1655_v37 = vsel %vm1651_vm8, %v1635_v50, %v1638_v26 }
 0x1af   : > { %v2034_v3 = vsel %vm2032_vm15, %v2033_v33, %v2031_v40  ;;  %vm1680_vm9 = vc.u32 %v1672_v34, %v1676_v30  ;;  %v1682_v15 = vadd.s32 %v1676_v30, %v1672_v34  ;;  %v1697_v16 = vmul.u32 %v1693_v32, %v1669_v2 }
 0x1b0   : > { %v2035_v27 = vclz %v2034_v3  ;;  %v1681_v59 = vsel %vm1680_vm9, 1, %v4231_v47  ;;  %v1700_v29 = vshll.u32 %v1696_v6, 16  ;;  %vm1702_vm4 = vc.u32 %v1694_v51, %v1698_v9 }
 0x1b1   : > { %v1683_v48 = vadd.s32 %v1681_v59, %v1675_v20  ;;  %vm1684_vm2 = vc.u32 %v1682_v15, %v1678_v12  ;;  %v1703_v19 = vsel %vm1702_vm4, 1, %v4231_v47  ;;  %v1704_v61 = vadd.s32 %v1698_v9, %v1694_v51 }
 0x1b2   : > { %v2295_v54 = vadd.s32 4294967294, %v2035_v27  ;;  %v1685_v10 = vsel %vm1684_vm2, 1, %v4231_v47  ;;  %v1656_v33 = vsel %vm1654_vm11, %v3617_v63, 2102212464  ;;  %v1677_v26 = vshrl.u32 %v1673_v35, 16 }
 0x1b3   : > { %v1687_v50 = vadd.s32 %v1685_v10, %v1683_v48  ;;  %v1705_v34 = vadd.s32 %v1703_v19, %v1697_v16  ;;  %v1137_v32 = vmul.f32 %v1136_v13, %v3641_v53  ;;  %vm1706_vm15 = vc.u32 %v1704_v61, %v1700_v29 }
 0x1b4   : > { %vm2296_vm8 = vcmp.lt.s32.totalorder %v2295_v54, 0  ;;  %v1777_v2 = vand.u32 2139095040, %v3679_v43  ;;  %v1679_v27 = vshrl.u32 %v1674_v39, 16  ;;  %v1707_v12 = vsel %vm1706_vm15, 1, %v4231_v47 }
 0x1b5   : > { %v2038_v30 = vsel %vm2296_vm8, 0, %v2295_v54  ;;  %v1688_v20 = vadd.s32 %v1687_v50, %v1677_v26  ;;  %v1699_v15 = vshrl.u32 %v1695_v22, 16  ;;  %v1709_v9 = vadd.s32 %v1707_v12, %v1705_v34 }
 0x1b6   : > { %v2039_v3 = vsub.s32 32, %v2038_v30  ;;  %v2043_v51 = vsub.s32 4294967266, %v2038_v30  ;;  %v1657_v48 = vsel %vm1653_vm5, %v3610_v49, %v1656_v33  ;;  %v1701_v35 = vshrl.u32 %v1696_v6, 16 }
 0x1b7   : > { %v3692_v63 = vadd.s32 %v1688_v20, %v1679_v27  ;;  %v1778_v13 = vshrl.u32 %v1777_v2, 23  ;;  %vm1931_vm11 = vcmp.lt.s32.totalorder %v3416_v44, 0  ;;  %v2040_v59 = vshll.u32 %v2031_v40, %v2038_v30 }
 0x1b8   : > { %v2041_v16 = vshrl.u32 %v2023_v38, %v2039_v3  ;;  %v2044_v39 = vadd.s32 127, %v2043_v51  ;;  %v1710_v54 = vadd.s32 %v1709_v9, %v1699_v15  ;;  %v3698_v22 = vadd.s32 %v1704_v61, %v1700_v29 }
 0x1b9   : > { %v1774_v19 = vand.u32 2147483647, %v3679_v43  ;;  %v2291_v26 = vadd.s32 4294967169, %v1778_v13  ;;  %v1658_v6 = vsel %vm1652_vm12, %v1655_v37, %v1657_v48  ;;  %v1295_v40 = vadd.f32 1.0, %v3657_v11 }
 0x1ba   : > { %v2042_v49 = vor.u32 %v2041_v16, %v2040_v59  ;;  %v2045_v33 = vshll.u32 %v2044_v39, 23  ;;  %v1711_v50 = vadd.s32 %v1710_v54, %v1701_v35  ;;  %v4242_v38 = vsub.s32 4, %v3486_v57 }
 0x1bb   : > { %vm1714_vm5 = vc.u32 %v3692_v63, %v3698_v22  ;;  %v1784_v29 = vadd.s32 1, %v2291_v26  ;;  %v984_v61 = vmul.f32 %v3671_v23, %v3562_v36  ;;  %v1138_v2 = vadd.f32 -0.16666654, %v1137_v32 }
 0x1bc   : > { %v3709_v34 = vsel %vm1001_vm13, %v4242_v38, %v3486_v57  ;;  %v2046_v46 = vor.u32 4788187, %v2045_v33  ;;  %v1715_v37 = vadd.s32 1, %v1711_v50  ;;  %v2053_v30 = vsub.s32 4, %v3650_v58 }
 0x1bd   : > { %v1712_v11 = vmul.u32 %v3630_v28, %v1658_v6  ;;  %v1781_v27 = vand.u32 8388607, %v1774_v19  ;;  %vm1785_vm12 = vcmp.gt.s32.totalorder %v1784_v29, 0  ;;  %v2049_v20 = vcvt.s32.f32 %v2042_v49 }
 0x1be   : > { %v2047_v57 = vand.u32 2147483647, %v2046_v46  ;;  %v1716_v12 = vsel %vm1714_vm5, %v1715_v37, %v1711_v50  ;;  %v1786_v3 = vsel %vm1785_vm12, %v1784_v29, 0  ;;  %v3720_v51 = vmul.f32 %v1295_v40, %v3455_v18 }
 0x1bf   : > { %v4243_v23 = vand.u32 2147483647, %v3416_v44  ;;  %v1717_v15 = vadd.s32 %v1716_v12, %v1712_v11  ;;  %v1788_v9 = vand.u32 31, %v1786_v3  ;;  %v985_v28 = vadd.f32 1.0, %v984_v61 }
 0x1c0   : > { %v1139_v35 = vmul.f32 %v1138_v2, %v3641_v53  ;;  %v2050_v13 = vmul.f32 %v2049_v20, %v2047_v57  ;;  %v3735_v18 = vsel %vm1931_vm11, %v2053_v30, %v3650_v58  ;;  %v1782_v16 = vor.u32 8388608, %v1781_v27 }
 0x1c1   : > { %vm3724_vm13 = vcmp.le.f32.partialorder %v4243_v23, 0.7853982  ;;  %v1718_v59 = vadd.s32 536870912, %v1717_v15  ;;  %v1789_v39 = vsub.s32 32, %v1788_v9  ;;  %v3737_v26 = vshrl.u32 %v1786_v3, 5 }
 0x1c2   : > { %v2051_v54 = vxor.u32 2147483648, %v2050_v13  ;;  %v1791_v49 = vshll.u32 %v4220_v41, %v1788_v9  ;;  %v1794_v33 = vshll.u32 %v4221_v25, %v1788_v9  ;;  %v1800_v38 = vshll.u32 %v4223_v5, %v1788_v9 }
 0x1c3   : > { %v1719_v6 = vshrl.u32 %v1718_v59, 30  ;;  %v1792_v50 = vshrl.u32 %v4221_v25, %v1789_v39  ;;  %v1795_v40 = vshrl.u32 %v4222_v7, %v1789_v39  ;;  %v1798_v29 = vshrl.u32 %v4223_v5, %v1789_v39 }
 0x1c4   : > { %v2052_v58 = vsel %vm1931_vm11, %v2051_v54, %v2050_v13  ;;  %v1801_v61 = vshrl.u32 %v4224_v52, %v1789_v39  ;;  %v1804_v2 = vshrl.u32 %v4212_v45, %v1789_v39  ;;  %v1797_v25 = vshll.u32 %v4222_v7, %v1788_v9 }
 0x1c5   : > { %v3752_v46 = vsel %vm3724_vm13, %v3416_v44, %v2052_v58  ;;  %v1720_v37 = vshll.u32 %v1719_v6, 30  ;;  %v1803_v30 = vshll.u32 %v4224_v52, %v1788_v9  ;;  %v1793_v27 = vor.u32 %v1792_v50, %v1791_v49 }
 0x1c6   : > { %v3758_v11 = vmul.f32 %v3752_v46, %v3752_v46  ;;  %v1796_v5 = vor.u32 %v1795_v40, %v1794_v33  ;;  %v1802_v57 = vor.u32 %v1801_v61, %v1800_v38  ;;  %v3761_v20 = vmul.f32 %v985_v28, %v3548_v60 }
 0x1c7   : > { %v3763_v45 = vadd.f32 1.0, %v1139_v35  ;;  %vm1621_vm9 = vcmp.lt.s32.totalorder %v3510_v1, 0  ;;  %v1721_v12 = vsub.s32 %v1717_v15, %v1720_v37  ;;  %v1799_v3 = vor.u32 %v1798_v29, %v1797_v25 }
 0x1c8   : > { %v2065_v52 = vmul.f32 -0.00019511016, %v3758_v11  ;;  %v1805_v23 = vor.u32 %v1804_v2, %v1803_v30  ;;  %v3770_v9 = vshll.u32 %v1782_v16, 8  ;;  %vm1806_vm4 = vcmp.lt.s32.totalorder %v3737_v26, 1 }
 0x1c9   : > { %vm1722_vm2 = vcmp.lt.s32.totalorder %v1721_v12, 0  ;;  %v1723_v13 = vsub.s32 0, %v1721_v12  ;;  %vm1809_vm8 = vcmp.lt.s32.totalorder %v3737_v26, 4  ;;  %vm1808_vm15 = vcmp.lt.s32.totalorder %v3737_v26, 3 }
 0x1ca   : > { %v2066_v60 = vadd.f32 0.008332121, %v2065_v52  ;;  %v1814_v15 = vsel %vm1806_vm4, %v1793_v27, %v1796_v5  ;;  %v1815_v28 = vsel %vm1809_vm8, %v1802_v57, 920167782  ;;  %v1713_v35 = vadd.s32 %v3698_v22, %v3692_v63 }
 0x1cb   : > { %v1724_v59 = vsel %vm1722_vm2, %v1723_v13, %v1721_v12  ;;  %vm1807_vm11 = vcmp.lt.s32.totalorder %v3737_v26, 2  ;;  %v1816_v16 = vsel %vm1808_vm15, %v1799_v3, %v1815_v28  ;;  %v1743_v49 = vsub.s32 4, %v1719_v6 }
 0x1cc   : > { %v1725_v54 = vclz %v1724_v59  ;;  %v1817_v33 = vsel %vm1807_vm11, %v1814_v15, %v1816_v16  ;;  %v1818_v50 = vsel %vm1806_vm4, %v1796_v5, %v1799_v3  ;;  %v1819_v40 = vsel %vm1809_vm8, %v1805_v23, 1326507024 }
 0x1cd   : > { %v1823_v38 = vand.u32 65535, %v3770_v9  ;;  %v1847_v63 = vand.u32 65535, %v1817_v33  ;;  %v1848_v22 = vshrl.u32 %v1817_v33, 16  ;;  %v2067_v58 = vmul.f32 %v2066_v60, %v3758_v11 }
 0x1ce   : > { %v2289_v29 = vadd.s32 4294967294, %v1725_v54  ;;  %v1811_v61 = vsel %vm1809_vm8, %v1799_v3, 2102212464  ;;  %v1820_v2 = vsel %vm1808_vm15, %v1802_v57, %v1819_v40  ;;  %v1790_v37 = vshrl.u32 %v4220_v41, %v1789_v39 }
 0x1cf   : > { %v1821_v25 = vsel %vm1807_vm11, %v1818_v50, %v1820_v2  ;;  %v1824_v30 = vshrl.u32 %v3770_v9, 16  ;;  %v1850_v52 = vmul.u32 %v1848_v22, %v1823_v38  ;;  %v3802_v23 = vsel %vm1621_vm9, %v1743_v49, %v1719_v6 }
 0x1d0   : > { %vm2290_vm5 = vcmp.lt.s32.totalorder %v2289_v29, 0  ;;  %v1825_v13 = vand.u32 65535, %v1821_v25  ;;  %v1826_v60 = vshrl.u32 %v1821_v25, 16  ;;  %v1810_v3 = vsel %vm1806_vm4, %v1790_v37, %v1793_v27 }
 0x1d1   : > { %v1728_v15 = vsel %vm2290_vm5, 0, %v2289_v29  ;;  %v1812_v41 = vsel %vm1808_vm15, %v1796_v5, %v1811_v61  ;;  %v1851_v39 = vmul.u32 %v1847_v63, %v1824_v30  ;;  %v2068_v57 = vadd.f32 -0.16666654, %v2067_v58 }
 0x1d2   : > { %v1729_v28 = vsub.s32 32, %v1728_v15  ;;  %v1733_v59 = vsub.s32 4294967266, %v1728_v15  ;;  %v1853_v16 = vshll.u32 %v1850_v52, 16  ;;  %v1828_v54 = vmul.u32 %v1826_v60, %v1823_v38 }
 0x1d3   : > { %v1829_v33 = vmul.u32 %v1825_v13, %v1824_v30  ;;  %v1849_v50 = vmul.u32 %v1847_v63, %v1823_v38  ;;  %v4246_v6 = vsel %vm2984_vm6, 0, %v3125_v24  ;;  %v1730_v40 = vshll.u32 %v1721_v12, %v1728_v15 }
 0x1d4   : > { %v678_v49 = vadd.s32 3, %v4246_v6  ;;  %v1731_v29 = vshrl.u32 %v1713_v35, %v1729_v28  ;;  %v1734_v2 = vadd.s32 127, %v1733_v59  ;;  %v1852_v27 = vmul.u32 %v1848_v22, %v1824_v30 }
 0x1d5   : > { %v1827_v37 = vmul.u32 %v1825_v13, %v1823_v38  ;;  %v1830_v25 = vmul.u32 %v1826_v60, %v1824_v30  ;;  %v1831_v5 = vshll.u32 %v1828_v54, 16  ;;  %v1855_v61 = vshll.u32 %v1851_v39, 16 }
 0x1d6   : > { %v1732_v58 = vor.u32 %v1731_v29, %v1730_v40  ;;  %v1735_v7 = vshll.u32 %v1734_v2, 23  ;;  %v1833_v48 = vshll.u32 %v1829_v33, 16  ;;  %vm1857_vm12 = vc.u32 %v1849_v50, %v1853_v16 }
 0x1d7   : > { %vm1835_vm2 = vc.u32 %v1827_v37, %v1831_v5  ;;  %v1837_v10 = vadd.s32 %v1831_v5, %v1827_v37  ;;  %v1858_v63 = vsel %vm1857_vm12, 1, %v4231_v47  ;;  %v1859_v21 = vadd.s32 %v1853_v16, %v1849_v50 }
 0x1d8   : > { %v2069_v24 = vmul.f32 %v2068_v57, %v3758_v11  ;;  %v4247_v12 = vand.u32 2147483647, %v3510_v1  ;;  %v1736_v38 = vor.u32 4788187, %v1735_v7  ;;  %v1836_v22 = vsel %vm1835_vm2, 1, %v4231_v47 }
 0x1d9   : > { %v1860_v30 = vadd.s32 %v1858_v63, %v1852_v27  ;;  %v1739_v13 = vcvt.s32.f32 %v1732_v58  ;;  %v1838_v60 = vadd.s32 %v1836_v22, %v1830_v25  ;;  %vm1839_vm4 = vc.u32 %v1837_v10, %v1833_v48 }
 0x1da   : > { %vm3816_vm6 = vcmp.le.f32.partialorder %v4247_v12, 0.7853982  ;;  %vm1861_vm8 = vc.u32 %v1859_v21, %v1855_v61  ;;  %v1737_v15 = vand.u32 2147483647, %v1736_v38  ;;  %v1840_v28 = vsel %vm1839_vm4, 1, %v4231_v47 }
 0x1db   : > { %v1862_v59 = vsel %vm1861_vm8, 1, %v4231_v47  ;;  %v663_v57 = vmul.f32 -0.001358992, %v3041_v17  ;;  %v1832_v16 = vshrl.u32 %v1828_v54, 16  ;;  %v1842_v50 = vadd.s32 %v1840_v28, %v1838_v60 }
 0x1dc   : > { %v1854_v6 = vshrl.u32 %v1850_v52, 16  ;;  %v1864_v40 = vadd.s32 %v1862_v59, %v1860_v30  ;;  %v2070_v29 = vadd.f32 1.0, %v2069_v24  ;;  %v1740_v7 = vmul.f32 %v1739_v13, %v1737_v15 }
 0x1dd   : > { %v1813_v2 = vsel %vm1807_vm11, %v1810_v3, %v1812_v41  ;;  %v664_v27 = vadd.f32 0.041655596, %v663_v57  ;;  %v1834_v37 = vshrl.u32 %v1829_v33, 16  ;;  %v1843_v10 = vadd.s32 %v1842_v50, %v1832_v16 }
 0x1de   : > { %v1856_v48 = vshrl.u32 %v1851_v39, 16  ;;  %v1865_v25 = vadd.s32 %v1864_v40, %v1854_v6  ;;  %v1741_v5 = vxor.u32 2147483648, %v1740_v7  ;;  %v1863_v58 = vadd.s32 %v1859_v21, %v1855_v61  ;;  %v4252_v61 = vld [vmem:[#allocation19_spill] sm:$0xff] }
 0x1df   : > { %v665_v47 = vmul.f32 %v664_v27, %v3041_v17  ;;  %v818_v63 = vmul.f32 -0.001358992, %v3059_v56  ;;  %v1844_v54 = vadd.s32 %v1843_v10, %v1834_v37  ;;  %v3828_v52 = vand.u32 3, %v678_v49 }
 0x1e0   : > { %v1866_v12 = vadd.s32 %v1865_v25, %v1856_v48  ;;  %v4250_v26 = vsel %vm2990_vm7, 0, %v3211_v62  ;;  %v1742_v41 = vsel %vm1621_vm9, %v1741_v5, %v1740_v7  ;;  %v4253_v21 = vsel %vm3174_vm14, 0, %v4252_v61  ;;  %v4255_v62 = vld [vmem:[#allocation24_spill] sm:$0xff]  ;;  %v4258_v48 = vld [vmem:[#allocation11_spill] sm:$0xff] }
 0x1e1   : > { %v833_v3 = vadd.s32 3, %v4250_v26  ;;  %v666_v39 = vadd.f32 -0.4999988, %v665_v47  ;;  %v819_v33 = vadd.f32 0.041655596, %v818_v63  ;;  %v1453_v38 = vadd.s32 3, %v4253_v21 }
 0x1e2   : > { %v3843_v49 = vsel %vm3816_vm6, %v3510_v1, %v1742_v41  ;;  %vm1869_vm15 = vc.u32 %v1844_v54, %v1863_v58  ;;  %v1870_v55 = vadd.s32 1, %v1866_v12  ;;  %v4256_v30 = vsel %vm3281_vm10, 0, %v4255_v62  ;;  %v4259_v47 = vld [vmem:[#allocation23_spill] sm:$0xff] }
 0x1e3   : > { %v1608_v13 = vadd.s32 3, %v4256_v30  ;;  %v3851_v60 = vmul.f32 %v3843_v49, %v3843_v49  ;;  %v1867_v15 = vmul.u32 %v3770_v9, %v1813_v2  ;;  %v667_v28 = vmul.f32 %v666_v39, %v3041_v17  ;;  %v4262_v39 = vld [vmem:[#allocation27_spill] sm:$0xff] }
 0x1e4   : > { %v820_v59 = vmul.f32 %v819_v33, %v3059_v56  ;;  %v3858_v57 = vmul.f32 %v3763_v45, %v3622_v4  ;;  %v1746_v16 = vsel %vm3816_vm6, 0, %v3802_v23  ;;  %v1871_v50 = vsel %vm1869_vm15, %v1870_v55, %v1866_v12  ;;  %v4257_v45 = vld [vmem:[#allocation18_spill] sm:$0xff] }
 0x1e5   : > { %v3863_v6 = vand.u32 3, %v833_v3  ;;  %v3866_v40 = vmul.f32 %v2070_v29, %v3752_v46  ;;  %v1755_v9 = vmul.f32 -0.00019511016, %v3851_v60  ;;  %vm1776_vm7 = vcmp.lt.s32.totalorder %v3679_v43, 0  ;;  %v4260_v3 = vld [vmem:[#allocation12_spill] sm:$0xff] }
 0x1e6   : > { %v1872_v17 = vadd.s32 %v1871_v50, %v1867_v15  ;;  %vm684_vm14 = vcmp.eq.s32.totalorder %v3828_v52, 2  ;;  %vm681_vm10 = vcmp.eq.s32.totalorder %v3828_v52, 0  ;;  %v821_v4 = vadd.f32 -0.4999988, %v820_v59 }
 0x1e7   : > { %v1438_v7 = vmul.f32 -0.001358992, %v4257_v45  ;;  %v3873_v2 = vand.u32 3, %v1453_v38  ;;  %v3875_v27 = vand.u32 3, %v1608_v13  ;;  %v1756_v37 = vadd.f32 0.008332121, %v1755_v9  ;;  %v435_v9 = vpop.f32.mrf.mxu1 }
 0x1e8   : > { %v3877_v10 = vadd.s32 %v1863_v58, %v1844_v54  ;;  %v1873_v46 = vadd.s32 536870912, %v1872_v17  ;;  %v668_v29 = vadd.f32 1.0, %v667_v28  ;;  %vm680_vm9 = vcmp.lt.s32.totalorder %v3828_v52, 2 }
 0x1e9   : > { %vm677_vm11 = vweird.f32 %v4258_v48  ;;  %v822_v25 = vmul.f32 %v821_v4, %v3059_v56  ;;  %vm835_vm5 = vcmp.lt.s32.totalorder %v3863_v6, 2  ;;  %v1439_v5 = vadd.f32 0.041655596, %v1438_v7  ;;  %v3918_v4 = vld [vmem:[%s4146_s2] sm:$0x1f] }
 0x1ea   : > { %v1593_v63 = vmul.f32 -0.001358992, %v4259_v47  ;;  %v1757_v12 = vmul.f32 %v1756_v37, %v3851_v60  ;;  %v1874_v26 = vshrl.u32 %v1873_v46, 30  ;;  %vm832_vm12 = vweird.f32 %v4260_v3 }
 0x1eb   : > { %vm836_vm2 = vcmp.eq.s32.totalorder %v3863_v6, 0  ;;  %vm839_vm4 = vcmp.eq.s32.totalorder %v3863_v6, 2  ;;  %v823_v58 = vadd.f32 1.0, %v822_v25  ;;  %v1440_v54 = vmul.f32 %v1439_v5, %v4257_v45 }
 0x1ec   : > { %v1594_v41 = vadd.f32 0.041655596, %v1593_v63  ;;  %v4263_v33 = vsel %vm3437_vm1, 0, %v4262_v39  ;;  %v1758_v61 = vadd.f32 -0.16666654, %v1757_v12  ;;  %v1875_v38 = vshll.u32 %v1874_v26, 30 }
 0x1ed   : > { %v1298_v24 = vadd.s32 3, %v4263_v33  ;;  %vm3895_vm8 = vcmp.le.f32.partialorder %v1774_v19, 0.7853982  ;;  %v1898_v55 = vsub.s32 4, %v1874_v26  ;;  %v685_v22 = vxor.u32 2147483648, %v668_v29 }
 0x1ee   : > { %v840_v62 = vxor.u32 2147483648, %v823_v58  ;;  %v1441_v30 = vadd.f32 -0.4999988, %v1440_v54  ;;  %v4266_v13 = vsel %vm3501_vm0, 0, %v3666_v14  ;;  %v4267_v19 = vsel %vm3582_vm3, 0, %v3709_v34 }
 0x1ef   : > { %v3904_v15 = vadd.s32 3, %v4266_v13  ;;  %v3910_v28 = vadd.s32 3, %v4267_v19  ;;  %v1759_v59 = vmul.f32 %v1758_v61, %v3851_v60  ;;  %v3913_v50 = vsub.s32 %v1872_v17, %v1875_v38  ;;  %v4269_v17 = vld [vmem:[#allocation21_spill] sm:$0xff] }
 0x1f0   : > { %v682_v14 = vxor.u32 2147483648, %v4268_v42  ;;  %v1595_v7 = vmul.f32 %v1594_v41, %v4259_v47  ;;  %v3924_v8 = vsel %vm1776_vm7, %v1898_v55, %v1874_v26  ;;  %v686_v34 = vsel %vm684_vm14, %v685_v22, %v4268_v42  ;;  %v4270_v55 = vld [vmem:[#allocation13_spill] sm:$0xff]  ;;  %v458_v22 = vpop.f32.mrf.mxu2 }
 0x1f1   : > { %v837_v37 = vxor.u32 2147483648, %v4269_v17  ;;  %v1283_v46 = vmul.f32 -0.001358992, %v3472_v31  ;;  %vm1877_vm1 = vcmp.lt.s32.totalorder %v3913_v50, 0  ;;  %v1878_v25 = vsub.s32 0, %v3913_v50 }
 0x1f2   : > { %v683_v5 = vsel %vm681_vm10, %v668_v29, %v682_v14  ;;  %v841_v63 = vsel %vm839_vm4, %v840_v62, %v4269_v17  ;;  %vm1456_vm0 = vcmp.eq.s32.totalorder %v3873_v2, 0  ;;  %v2085_v26 = vperm.slane %v3918_v4, 0 }
 0x1f3   : > { %v687_v12 = vsel %vm680_vm9, %v683_v5, %v686_v34  ;;  %v838_v54 = vsel %vm836_vm2, %v823_v58, %v837_v37  ;;  %v2086_v41 = vperm.slane %v3918_v4, 1  ;;  %vm1459_vm3 = vcmp.eq.s32.totalorder %v3873_v2, 2  ;;  %v4273_v37 = vld [vmem:[#allocation28_spill] sm:$0xff] }
 0x1f4   : > { %vm1611_vm15 = vcmp.eq.s32.totalorder %v3875_v27, 0  ;;  %v1760_v29 = vadd.f32 1.0, %v1759_v59  ;;  %v1879_v56 = vsel %vm1877_vm1, %v1878_v25, %v3913_v50  ;;  %v688_v39 = vsel %vm677_vm11, nan, %v687_v12  ;;  %v4271_v59 = vld [vmem:[#allocation14_spill] sm:$0xff] }
 0x1f5   : > { %v842_v52 = vsel %vm835_vm5, %v838_v54, %v841_v63  ;;  %vm1455_vm14 = vcmp.lt.s32.totalorder %v3873_v2, 2  ;;  %v1880_v33 = vclz %v1879_v56  ;;  %v2095_v61 = vmul.f32 %v2085_v26, %v688_v39 }
 0x1f6   : > { %v843_v58 = vsel %vm832_vm12, nan, %v842_v52  ;;  %v1442_v38 = vmul.f32 %v1441_v30, %v4257_v45  ;;  %vm1452_vm10 = vweird.f32 %v4270_v55  ;;  %vm1614_vm9 = vcmp.eq.s32.totalorder %v3875_v27, 2 }
 0x1f7   : > { %v2096_v48 = vmul.f32 %v2086_v41, %v843_v58  ;;  %v1596_v6 = vadd.f32 -0.4999988, %v1595_v7  ;;  %vm1610_vm11 = vcmp.lt.s32.totalorder %v3875_v27, 2  ;;  %v1284_v62 = vadd.f32 0.041655596, %v1283_v46 }
 0x1f8   : > { %v1299_v13 = vand.u32 3, %v1298_v24  ;;  %v2292_v19 = vadd.s32 4294967294, %v1880_v33  ;;  %v1901_v3 = vsel %vm3895_vm8, 0, %v3924_v8  ;;  %v2105_v45 = vadd.f32 %v2095_v61, %v435_v9  ;;  %v4272_v24 = vld [vmem:[#allocation26_spill] sm:$0xff] }
 0x1f9   : > { %v1443_v30 = vadd.f32 1.0, %v1442_v38  ;;  %vm1607_vm5 = vweird.f32 %v4271_v59  ;;  %v3970_v42 = vmul.f32 %v1760_v29, %v3843_v49  ;;  %v2106_v14 = vadd.f32 %v2096_v48, %v458_v22  ;;  %v438_v49 = vpop.f32.mrf.mxu1  ;;  %v4274_v29 = vld [vmem:[#allocation15_spill] sm:$0xff] }
 0x1fa   : > { %v1597_v34 = vmul.f32 %v1596_v6, %v4259_v47  ;;  %v1285_v7 = vmul.f32 %v1284_v62, %v3472_v31  ;;  %vm2293_vm12 = vcmp.lt.s32.totalorder %v2292_v19, 0  ;;  %2115 = vst [vmem:[%s3975_s6] sm:$0xff] %v2105_v45  ;;  %v1457_v17 = vxor.u32 2147483648, %v4272_v24 }
 0x1fb   : > { %v1460_v9 = vxor.u32 2147483648, %v1443_v30  ;;  %v1612_v46 = vxor.u32 2147483648, %v4273_v37  ;;  %v1883_v25 = vsel %vm2293_vm12, 0, %v2292_v19  ;;  %2116 = vst [vmem:[%s3975_s6 + $0x8] sm:$0xff] %v2106_v14  ;;  %vm1301_vm2 = vcmp.eq.s32.totalorder %v1299_v13, 0 }
 0x1fc   : > { %v1598_v5 = vadd.f32 1.0, %v1597_v34  ;;  %v1286_v63 = vadd.f32 -0.4999988, %v1285_v7  ;;  %v1884_v47 = vsub.s32 32, %v1883_v25  ;;  %v1888_v12 = vsub.s32 4294967266, %v1883_v25 }
 0x1fd   : > { %v1458_v54 = vsel %vm1456_vm0, %v1443_v30, %v1457_v17  ;;  %vm1297_vm4 = vweird.f32 %v4274_v29  ;;  %v1302_v56 = vxor.u32 2147483648, %v3720_v51  ;;  %v1461_v39 = vsel %vm1459_vm3, %v1460_v9, %v4272_v24 }
 0x1fe   : > { %v1613_v52 = vsel %vm1611_vm15, %v1598_v5, %v1612_v46  ;;  %v1615_v33 = vxor.u32 2147483648, %v1598_v5  ;;  %v1287_v61 = vmul.f32 %v1286_v63, %v3472_v31  ;;  %v1885_v58 = vshll.u32 %v3913_v50, %v1883_v25 }
 0x1ff   : > { %v1886_v38 = vshrl.u32 %v3877_v10, %v1884_v47  ;;  %v1889_v22 = vadd.s32 127, %v1888_v12  ;;  %v1462_v48 = vsel %vm1455_vm14, %v1458_v54, %v1461_v39  ;;  %vm1304_vm1 = vcmp.eq.s32.totalorder %v1299_v13, 2  ;;  %v461_v10 = vpop.f32.mrf.mxu2 }
 0x200   : > { %v1463_v6 = vsel %vm1452_vm10, nan, %v1462_v48  ;;  %v1616_v62 = vsel %vm1614_vm9, %v1615_v33, %v4273_v37  ;;  %v1288_v19 = vadd.f32 1.0, %v1287_v61  ;;  %v973_v34 = vmul.f32 -0.001358992, %v3562_v36 }
 0x201   : > { %v1887_v45 = vor.u32 %v1886_v38, %v1885_v58  ;;  %v1890_v30 = vshll.u32 %v1889_v22, 23  ;;  %v2100_v31 = vmul.f32 %v2085_v26, %v1463_v6  ;;  %v1617_v50 = vsel %vm1610_vm11, %v1613_v52, %v1616_v62  ;;  %v527_v63 = vpop.f32.mrf.mxu1  ;;  %v4275_v52 = vld [vmem:[#allocation16_spill] sm:$0xff] }
 0x202   : > { %v1618_v2 = vsel %vm1607_vm5, nan, %v1617_v50  ;;  %v1303_v55 = vsel %vm1301_vm2, %v1288_v19, %v1302_v56  ;;  %v1305_v14 = vxor.u32 2147483648, %v1288_v19  ;;  %v2089_v26 = vperm.slane %v3918_v4, 4 }
 0x203   : > { %v1891_v7 = vor.u32 4788187, %v1890_v30  ;;  %v2110_v24 = vadd.f32 %v2100_v31, %v438_v49  ;;  %v2101_v17 = vmul.f32 %v2086_v41, %v1618_v2  ;;  %vm1300_vm0 = vcmp.lt.s32.totalorder %v1299_v13, 2 }
 0x204   : > { %v1306_v27 = vsel %vm1304_vm1, %v1305_v14, %v3720_v51  ;;  %v974_v9 = vadd.f32 0.041655596, %v973_v34  ;;  %v989_v59 = vand.u32 3, %v3904_v15  ;;  %v1894_v46 = vcvt.s32.f32 %v1887_v45 }
 0x205   : > { %v1892_v37 = vand.u32 2147483647, %v1891_v7  ;;  %2121 = vst [vmem:[%s3975_s6 + $0x28] sm:$0xff] %v2110_v24  ;;  %v2111_v25 = vadd.f32 %v2101_v17, %v461_v10  ;;  %v1307_v5 = vsel %vm1300_vm0, %v1303_v55, %v1306_v27  ;;  %vm2119_vm3 = vcmask 130048  }
 0x206   : > { %v1308_v49 = vsel %vm1297_vm4, nan, %v1307_v5  ;;  %v975_v41 = vmul.f32 %v974_v9, %v3562_v36  ;;  %v992_v47 = vxor.u32 2147483648, %v3761_v20  ;;  %v2087_v15 = vperm.slane %v3918_v4, 2 }
 0x207   : > { %v1895_v13 = vmul.f32 %v1894_v46, %v1892_v37  ;;  %2122 = vst [vmem:[%s3975_s6 + $0x30] sm:$0xff] %v2111_v25  ;;  %v2099_v51 = vmul.f32 %v2089_v26, %v1308_v49  ;;  %v1128_v12 = vmul.f32 -0.001358992, %v3641_v53  ;;  %vm990_vm15 = vcmp.lt.s32.totalorder %v989_v59, 2 }
 0x208   : > { %v976_v54 = vadd.f32 -0.4999988, %v975_v41  ;;  %vm991_vm14 = vcmp.eq.s32.totalorder %v989_v59, 0  ;;  %v1144_v29 = vand.u32 3, %v3910_v28  ;;  %vm987_vm10 = vweird.f32 %v4275_v52 }
 0x209   : > { %v1896_v56 = vxor.u32 2147483648, %v1895_v13  ;;  %v2109_v39 = vadd.f32 %v2099_v51, %v527_v63  ;;  %v1129_v33 = vadd.f32 0.041655596, %v1128_v12  ;;  %v2058_v61 = vmul.f32 -0.001358992, %v3758_v11 }
 0x20a   : > { %v977_v58 = vmul.f32 %v976_v54, %v3562_v36  ;;  %vm994_vm9 = vcmp.eq.s32.totalorder %v989_v59, 2  ;;  %v1147_v38 = vxor.u32 2147483648, %v3858_v57  ;;  %v2088_v22 = vperm.slane %v3918_v4, 3 }
 0x20b   : > { %v1897_v48 = vsel %vm1776_vm7, %v1896_v56, %v1895_v13  ;;  %2120 = vst.msk [vmem:[%s3975_s6 + $0x20] sm:$0xff] %vm2119_vm3, %v2109_v39  ;;  %v1130_v28 = vmul.f32 %v1129_v33, %v3641_v53  ;;  %v2059_v6 = vadd.f32 0.041655596, %v2058_v61  ;;  %v4276_v62 = vsel %vm3724_vm13, 0, %v3735_v18  ;;  %v504_v61 = vpop.f32.mrf.mxu0 }
 0x20c   : > { %v2073_v19 = vadd.s32 3, %v4276_v62  ;;  %v4039_v36 = vsel %vm3895_vm8, %v3679_v43, %v1897_v48  ;;  %v978_v45 = vadd.f32 1.0, %v977_v58  ;;  %vm1146_vm11 = vcmp.eq.s32.totalorder %v1144_v29, 0 }
 0x20d   : > { %v1748_v30 = vmul.f32 -0.001358992, %v3851_v60  ;;  %v4044_v31 = vmul.f32 %v4039_v36, %v4039_v36  ;;  %v1131_v50 = vadd.f32 -0.4999988, %v1130_v28  ;;  %vm1145_vm7 = vcmp.lt.s32.totalorder %v1144_v29, 2 }
 0x20e   : > { %v2060_v32 = vmul.f32 %v2059_v6, %v3758_v11  ;;  %v2074_v10 = vand.u32 3, %v2073_v19  ;;  %v993_v18 = vsel %vm991_vm14, %v978_v45, %v992_v47  ;;  %v995_v2 = vxor.u32 2147483648, %v978_v45 }
 0x20f   : > { %vm1142_vm13 = vweird.f32 %v3263_v0  ;;  %v1749_v55 = vadd.f32 0.041655596, %v1748_v30  ;;  %v1763_v14 = vadd.s32 3, %v1746_v16  ;;  %v1910_v34 = vmul.f32 -0.00019511016, %v4044_v31  ;;  %v481_v16 = vpop.f32.mrf.mxu3  ;;  %v530_v0 = vpop.f32.mrf.mxu1 }
 0x210   : > { %v1132_v7 = vmul.f32 %v1131_v50, %v3641_v53  ;;  %vm1149_vm5 = vcmp.eq.s32.totalorder %v1144_v29, 2  ;;  %v2061_v24 = vadd.f32 -0.4999988, %v2060_v32  ;;  %v996_v17 = vsel %vm994_vm9, %v995_v2, %v3761_v20 }
 0x211   : > { %vm2075_vm12 = vcmp.lt.s32.totalorder %v2074_v10, 2  ;;  %v2077_v27 = vxor.u32 2147483648, %v3866_v40  ;;  %v1750_v9 = vmul.f32 %v1749_v55, %v3851_v60  ;;  %v1911_v37 = vadd.f32 0.008332121, %v1910_v34 }
 0x212   : > { %v997_v35 = vsel %vm990_vm15, %v993_v18, %v996_v17  ;;  %v1133_v46 = vadd.f32 1.0, %v1132_v7  ;;  %v2062_v23 = vmul.f32 %v2061_v24, %v3758_v11  ;;  %vm2072_vm6 = vweird.f32 %v3416_v44 }
 0x213   : > { %v998_v53 = vsel %vm987_vm10, nan, %v997_v35  ;;  %vm2076_vm2 = vcmp.eq.s32.totalorder %v2074_v10, 0  ;;  %v1751_v25 = vadd.f32 -0.4999988, %v1750_v9  ;;  %v1764_v20 = vand.u32 3, %v1763_v14  ;;  %v507_v7 = vpop.f32.mrf.mxu0 }
 0x214   : > { %v1912_v5 = vmul.f32 %v1911_v37, %v4044_v31  ;;  %v2097_v63 = vmul.f32 %v2087_v15, %v998_v53  ;;  %v1148_v59 = vsel %vm1146_vm11, %v1133_v46, %v1147_v38  ;;  %v1150_v49 = vxor.u32 2147483648, %v1133_v46 }
 0x215   : > { %vm1762_vm4 = vweird.f32 %v3510_v1  ;;  %v2063_v11 = vadd.f32 1.0, %v2062_v23  ;;  %vm2079_vm1 = vcmp.eq.s32.totalorder %v2074_v10, 2  ;;  %v1752_v41 = vmul.f32 %v1751_v25, %v3851_v60 }
 0x216   : > { %v1767_v47 = vxor.u32 2147483648, %v3970_v42  ;;  %v1913_v13 = vadd.f32 -0.16666654, %v1912_v5  ;;  %v2107_v51 = vadd.f32 %v2097_v63, %v481_v16  ;;  %v1151_v12 = vsel %vm1149_vm5, %v1150_v49, %v3858_v57 }
 0x217   : > { %vm1765_vm0 = vcmp.lt.s32.totalorder %v1764_v20, 2  ;;  %v1152_v54 = vsel %vm1145_vm7, %v1148_v59, %v1151_v12  ;;  %v2078_v56 = vsel %vm2076_vm2, %v2063_v11, %v2077_v27  ;;  %v2080_v39 = vxor.u32 2147483648, %v2063_v11  ;;  %v484_v44 = vpop.f32.mrf.mxu3 }
 0x218   : > { %v1753_v52 = vadd.f32 1.0, %v1752_v41  ;;  %v1914_v33 = vmul.f32 %v1913_v13, %v4044_v31  ;;  %2117 = vst [vmem:[%s3975_s6 + $0x10] sm:$0xff] %v2107_v51  ;;  %v1153_v60 = vsel %vm1142_vm13, nan, %v1152_v54  ;;  %vm1766_vm15 = vcmp.eq.s32.totalorder %v1764_v20, 0 }
 0x219   : > { %v1903_v58 = vmul.f32 -0.001358992, %v4044_v31  ;;  %v2098_v57 = vmul.f32 %v2088_v22, %v1153_v60  ;;  %v2081_v29 = vsel %vm2079_vm1, %v2080_v39, %v3866_v40  ;;  %vm1769_vm14 = vcmp.eq.s32.totalorder %v1764_v20, 2 }
 0x21a   : > { %v1768_v38 = vsel %vm1766_vm15, %v1753_v52, %v1767_v47  ;;  %v1770_v48 = vxor.u32 2147483648, %v1753_v52  ;;  %v1915_v28 = vadd.f32 1.0, %v1914_v33  ;;  %v2082_v6 = vsel %vm2075_vm12, %v2078_v56, %v2081_v29 }
 0x21b   : > { %v1904_v62 = vadd.f32 0.041655596, %v1903_v58  ;;  %v2108_v19 = vadd.f32 %v2098_v57, %v504_v61  ;;  %v2083_v45 = vsel %vm2072_vm6, nan, %v2082_v6  ;;  %v1918_v40 = vadd.s32 3, %v1901_v3 }
 0x21c   : > { %v1771_v30 = vsel %vm1769_vm14, %v1770_v48, %v3970_v42  ;;  %v1916_v50 = vmul.f32 %v1915_v28, %v4039_v36  ;;  %v2104_v32 = vmul.f32 %v2089_v26, %v2083_v45 }
 0x21d   : > { %v1772_v10 = vsel %vm1765_vm0, %v1768_v38, %v1771_v30  ;;  %v1905_v18 = vmul.f32 %v1904_v62, %v4044_v31  ;;  %2118 = vst [vmem:[%s3975_s6 + $0x18] sm:$0xff] %v2108_v19  ;;  %v1919_v2 = vand.u32 3, %v1918_v40 }
 0x21e   : > { %v1773_v42 = vsel %vm1762_vm4, nan, %v1772_v10  ;;  %v2114_v21 = vadd.f32 %v2104_v32, %v530_v0  ;;  %v1922_v55 = vxor.u32 2147483648, %v1916_v50 }
 0x21f   : > { %v2102_v8 = vmul.f32 %v2087_v15, %v1773_v42  ;;  %v1906_v3 = vadd.f32 -0.4999988, %v1905_v18  ;;  %vm1921_vm8 = vcmp.eq.s32.totalorder %v1919_v2, 0  ;;  %vm1924_vm10 = vcmp.eq.s32.totalorder %v1919_v2, 2 }
 0x220   : > { %2125 = vst.msk [vmem:[%s3975_s6 + $0x48] sm:$0xff] %vm2119_vm3, %v2114_v21  ;;  %vm1920_vm9 = vcmp.lt.s32.totalorder %v1919_v2, 2  ;;  %vm1917_vm3 = vweird.f32 %v3679_v43 }
 0x221   : > { %v2112_v36 = vadd.f32 %v2102_v8, %v484_v44  ;;  %v1907_v26 = vmul.f32 %v1906_v3, %v4044_v31 }
 0x223   : > { %2123 = vst [vmem:[%s3975_s6 + $0x38] sm:$0xff] %v2112_v36  ;;  %v1908_v14 = vadd.f32 1.0, %v1907_v26 }
 0x225   : > { %v1923_v34 = vsel %vm1921_vm8, %v1908_v14, %v1922_v55  ;;  %v1925_v1 = vxor.u32 2147483648, %v1908_v14 }
 0x227   : > { %v1926_v15 = vsel %vm1924_vm10, %v1925_v1, %v1916_v50 }
 0x228   : > { %v1927_v31 = vsel %vm1920_vm9, %v1923_v34, %v1926_v15 }
 0x229   : > { %v1928_v24 = vsel %vm1917_vm3, nan, %v1927_v31 }
 0x22a   : > { %v2103_v17 = vmul.f32 %v2088_v22, %v1928_v24 }
 0x22c   : > { %v2113_v27 = vadd.f32 %v2103_v17, %v507_v7 }
 0x22e   : > { %2124 = vst [vmem:[%s3975_s6 + $0x40] sm:$0xff] %v2113_v27 }
 0x22f   : > { %2468 = shalt.err (!%p2465_p8)
}
 0x230   : > { %s2524_s28 = smov 640   ;;  %s2525_s30 = smov 40  }
 0x231   : > { %2318 = dma.vmem_to_hbm [thread:$0]  (%p2589_p5), %s2141_s11, 1280, %s2143_s19, %s2127_s12, %s2524_s28, %s2524_s28, %s2525_s30  }
 0x232 PF: > { %p2335_p9 = scmp.ge.s32.totalorder %s2511_s18, 2  ;;  %s2157_s5 = sand.u32 1, %s2499_s15  }
 0x233   : > { %s2158_s6 = scalar_lea.sflag [#allocation4], %s2157_s5 }
 0x234   : > { %p2328_p10 = pnand %p2335_p9, %p2593_p6 }
 0x236   : > { %p2329_p11 = pneg %p2328_p10 }
 0x238   : > { %2494 = dma.done.wait (%p2329_p11), %s2158_s6, 1280  }
 0x239   : > { %2496 = vsyncadd (%p2329_p11), %s2158_s6, 4294966016  ;;  %p16_p12 = scmp.ge.s32.totalorder %s2576_s21, 6   ;;  %s4277_s15 = smov %s2503_s16 }
 0x23a   : > { %s4278_s16 = smov %s2507_s17  ;;  %s4279_s17 = smov %s2587_s24 }
 0x23b   : > { %s4280_s18 = smov %s2576_s21  ;;  %18 = sbr.rel (!%p16_p12) target bundleno = 5 (0x5), region = 80 }
 0x240   :  { %2164 = vsyncpa [#allocation3], 1 }
 0x241   :  { %2166 = vsyncpa [#allocation3 + $0x1], 1 }
 0x242   :  { %2167 = vsyncpa [#allocation6], 1 }
 0x243   :  { %2168 = vsyncpa [#allocation4], 1 }
 0x244   :  { %2170 = vsyncpa [#allocation4 + $0x1], 1 }

</bundles_post_ra>
